<compile_context>
chip_gen: v7x
topology: tpu7x:2x2x1
jax: 0.10.0
libtpu: 0.0.40
codegen_flags: <defaults>
</compile_context>

<pallas_src>
import functools

import jax
import jax.numpy as jnp
import numpy as np
from jax.experimental import pallas as pl
from jax.experimental.pallas import tpu as pltpu

KSIZE = 7
PAD = (KSIZE - 1) // 2          # 3
# Pooled planes are written at an (8,128)-aligned offset inside the padded scratch so every
# scratch store is tile-aligned; the conv taps read at (cheap) unaligned offsets instead.
ROW_OFF = 8                      # >= PAD, multiple of 8 (sublane tile)
COL_OFF = 128                    # >= PAD, multiple of 128 (lane tile)

BLOCK_BUDGET_BYTES = 4 * 1024 * 1024     # per-array, per-block (before double buffering)
VMEM_LIMIT_BYTES = 32 * 1024 * 1024      # <= physical VMEM on v5e/v6e/v7x


def _pick_channel_block(C, elems_per_channel, budget_bytes, sublane_multiple=1):
    """Largest divisor of C whose f32 block stays under budget_bytes.

    If sublane_multiple > 1 the block must either be the full C (always layout-legal)
    or a multiple of sublane_multiple (TPU (8,128) rule on the second-to-last block dim)."""
    max_c = max(1, budget_bytes // (elems_per_channel * 4))
    best = None
    for d in range(1, C + 1):
        if C % d or d > max_c:
            continue
        if d == C or sublane_multiple == 1 or d % sublane_multiple == 0:
            best = d
    if best is None:
        best = C   # fall back to the full channel block (layout-legal, may exceed budget)
    return best


def _pool_conv_kernel(x_ref, w_ref, conv_ref, sum_ref, sq_ref, pad_ref):
    """Channel pool + 7x7 conv for one batch item, C accumulated across grid axis 1.

    x_ref   : (1, c_blk, H, W) VMEM   channel slice of one batch item
    w_ref   : SMEM f32[98]            [0:49] max-channel taps, [49:98] mean-channel taps * (1/C)
    conv_ref: (1, H, W)               conv output for this batch item
    sum_ref : (1, 1, 1)               per-batch sum of conv        (BN partial stats)
    sq_ref  : (1, 1, 1)               per-batch sum of conv^2
    pad_ref : VMEM (2, ROW_OFF+H+PAD, COL_OFF+W+PAD) zero-padded pooled planes
              (plane 0 = running channel max, plane 1 = running channel sum).
    """
    c = pl.program_id(1)
    H = conv_ref.shape[1]
    W = conv_ref.shape[2]

    xb = x_ref[0]                          # (c_blk, H, W)
    blk_max = jnp.max(xb, axis=0)          # (H, W)
    blk_sum = jnp.sum(xb, axis=0)          # (H, W)

    @pl.when(c == 0)
    def _init():
        pad_ref[...] = jnp.zeros_like(pad_ref)
        pad_ref[0, ROW_OFF:ROW_OFF + H, COL_OFF:COL_OFF + W] = blk_max
        pad_ref[1, ROW_OFF:ROW_OFF + H, COL_OFF:COL_OFF + W] = blk_sum

    @pl.when(c != 0)
    def _accumulate():
        pad_ref[0, ROW_OFF:ROW_OFF + H, COL_OFF:COL_OFF + W] = jnp.maximum(
            pad_ref[0, ROW_OFF:ROW_OFF + H, COL_OFF:COL_OFF + W], blk_max)
        pad_ref[1, ROW_OFF:ROW_OFF + H, COL_OFF:COL_OFF + W] = (
            pad_ref[1, ROW_OFF:ROW_OFF + H, COL_OFF:COL_OFF + W] + blk_sum)

    @pl.when(c == pl.num_programs(1) - 1)
    def _conv():
        acc = jnp.zeros((H, W), jnp.float32)
        c0 = COL_OFF - PAD
        for i in range(KSIZE):
            r0 = ROW_OFF - PAD + i
            # Hoisted sublane-shifted row slabs (one pair per i, reused across the 7 j taps).
            rmax = pad_ref[0, r0:r0 + H, c0:c0 + W + 2 * PAD]   # (H, W + 6)
            rsum = pad_ref[1, r0:r0 + H, c0:c0 + W + 2 * PAD]
            for j in range(KSIZE):
                w_max = w_ref[i * KSIZE + j]
                w_sum = w_ref[KSIZE * KSIZE + i * KSIZE + j]
                acc = acc + w_max * rmax[:, j:j + W] + w_sum * rsum[:, j:j + W]
        conv_ref[0, :, :] = acc
        sum_ref[...] = jnp.sum(acc).reshape(1, 1, 1)
        sq_ref[...] = jnp.sum(acc * acc).reshape(1, 1, 1)


def _gate_kernel(x_ref, s_ref, ab_ref, out_ref):
    """out = x * sigmoid(a * conv + b), lane-dense over H*W.

    x_ref/out_ref: (1, c_blk, H*W); s_ref: (1, 1, H*W); ab_ref: SMEM f32[2] = (a, b)."""
    scale = jax.nn.sigmoid(ab_ref[0] * s_ref[0] + ab_ref[1])   # (1, H*W)
    out_ref[0] = x_ref[0] * scale                              # broadcast over channels


@functools.partial(jax.jit, static_argnames=("eps",))
def spatial_gate(x, conv_w, gamma, beta, eps=1e-5):
    """x: f32[N, C, H, W]; conv_w: f32[1, 2, 7, 7]; gamma/beta: BN affine scalars."""
    N, C, H, W = x.shape
    HW = H * W
    x = x.astype(jnp.float32)

    # ChannelPool order is (max, mean).  The mean plane is carried as a channel *sum*
    # inside the kernel, so fold 1/C into the mean-channel taps here.
    w_flat = jnp.concatenate([
        conv_w[0, 0].reshape(-1),
        conv_w[0, 1].reshape(-1) * (1.0 / C),
    ]).astype(jnp.float32)                                     # (98,)

    # ---- Kernel 1: channel pool + 7x7 conv + per-batch BN partial stats ----
    c_blk1 = _pick_channel_block(C, H * W, BLOCK_BUDGET_BYTES)
    hp = ROW_OFF + H + PAD
    wq = COL_OFF + W + PAD

    conv_out, s_sum, s_sq = pl.pallas_call(
        _pool_conv_kernel,
        out_shape=(
            jax.ShapeDtypeStruct((N, H, W), jnp.float32),
            jax.ShapeDtypeStruct((N, 1, 1), jnp.float32),
            jax.ShapeDtypeStruct((N, 1, 1), jnp.float32),
        ),
        grid_spec=pltpu.PrefetchScalarGridSpec(
            num_scalar_prefetch=0,
            grid=(N, C // c_blk1),
            in_specs=[
                pl.BlockSpec((1, c_blk1, H, W), lambda n, c: (n, c, 0, 0)),
                pl.BlockSpec(memory_space=pltpu.SMEM),
            ],
            out_specs=[
                pl.BlockSpec((1, H, W), lambda n, c: (n, 0, 0)),
                pl.BlockSpec((1, 1, 1), lambda n, c: (n, 0, 0)),
                pl.BlockSpec((1, 1, 1), lambda n, c: (n, 0, 0)),
            ],
            scratch_shapes=[pltpu.VMEM((2, hp, wq), jnp.float32)],
        ),
        compiler_params=pltpu.CompilerParams(
            dimension_semantics=("parallel", "arbitrary"),
            vmem_limit_bytes=VMEM_LIMIT_BYTES),
    )(x, w_flat)

    # ---- BatchNorm2d(1), training-mode batch statistics (biased variance). ----
    count = float(N * H * W)
    mean = jnp.sum(s_sum) / count
    # Note: E[x^2]-E[x]^2 in f32 can cancel for very large N*H*W; clamp at 0 and
    # switch to a two-pass/Welford variance if that regime matters.
    var = jnp.maximum(jnp.sum(s_sq) / count - mean * mean, 0.0)
    invstd = jax.lax.rsqrt(var + eps)
    a = gamma * invstd
    b = beta - mean * a
    ab = jnp.stack([a, b]).astype(jnp.float32)                 # (2,)

    # ---- Kernel 2: lane-dense sigmoid gate, tiled over channels. ----
    c_blk2 = _pick_channel_block(C, HW, BLOCK_BUDGET_BYTES, sublane_multiple=8)
    x_flat = x.reshape(N, C, HW)
    s_flat = conv_out.reshape(N, 1, HW)

    out_flat = pl.pallas_call(
        _gate_kernel,
        out_shape=jax.ShapeDtypeStruct((N, C, HW), jnp.float32),
        grid_spec=pltpu.PrefetchScalarGridSpec(
            num_scalar_prefetch=0,
            grid=(N, C // c_blk2),
            in_specs=[
                pl.BlockSpec((1, c_blk2, HW), lambda n, c: (n, c, 0)),
                pl.BlockSpec((1, 1, HW), lambda n, c: (n, 0, 0)),
                pl.BlockSpec(memory_space=pltpu.SMEM),
            ],
            out_specs=pl.BlockSpec((1, c_blk2, HW), lambda n, c: (n, c, 0)),
        ),
        compiler_params=pltpu.CompilerParams(
            dimension_semantics=("parallel", "parallel"),
            vmem_limit_bytes=VMEM_LIMIT_BYTES),
    )(x_flat, s_flat, ab)
    return out_flat.reshape(N, C, H, W)


def _reference(x, conv_w, gamma, beta, eps=1e-5):
    """Pure-JAX reference mirroring the PyTorch forward pass."""
    pooled = jnp.stack([jnp.max(x, axis=1), jnp.mean(x, axis=1)], axis=1)     # (N,2,H,W)
    conv = jax.lax.conv_general_dilated(
        pooled, conv_w, window_strides=(1, 1), padding=[(PAD, PAD), (PAD, PAD)],
        dimension_numbers=("NCHW", "OIHW", "NCHW"))                            # (N,1,H,W)
    mean = jnp.mean(conv)
    var = jnp.var(conv)                                                        # biased, like BN train
    bn = (conv - mean) * jax.lax.rsqrt(var + eps) * gamma + beta
    return x * jax.nn.sigmoid(bn)


if __name__ == "__main__":
    key = jax.random.PRNGKey(0)
    kx, kw = jax.random.split(key)

    N, C, H, W = 2, 4, 16, 16
    x = jax.random.normal(kx, (N, C, H, W), dtype=jnp.float32)

    # Deterministic parameter init (synthetic): conv weight (1,2,7,7), BN gamma=1, beta=0.
    conv_w = 0.05 * jax.random.normal(kw, (1, 2, KSIZE, KSIZE), dtype=jnp.float32)
    gamma = jnp.float32(1.0)
    beta = jnp.float32(0.0)

    out = spatial_gate(x, conv_w, gamma, beta)
    out = jax.block_until_ready(out)

    ref = _reference(x, conv_w, gamma, beta)
    np.testing.assert_allclose(np.asarray(out), np.asarray(ref), rtol=1e-4, atol=1e-5)

    print("KERNEL_OK")
</pallas_src>

<mosaic_0001>
module attributes {stable_mosaic.version = 11 : i64} {
  func.func @_gate_kernel(%arg0: i32, %arg1: i32, %arg2: memref<1x4x256xf32, #tpu.memory_space<vmem>>, %arg3: memref<1x1x256xf32, #tpu.memory_space<vmem>>, %arg4: memref<2xf32, #tpu.memory_space<smem>>, %arg5: memref<1x4x256xf32, #tpu.memory_space<vmem>>) attributes {dimension_semantics = [#tpu.dimension_semantics<parallel>, #tpu.dimension_semantics<parallel>], iteration_bounds = array<i64: 2, 1>, scalar_prefetch = 0 : i64, scratch_operands = 0 : i64, tpu.core_type = #tpu.core_type<tc>, window_params = [{transform_indices = @transform_0, window_bounds = array<i64: 1, 4, 256>}, {transform_indices = @transform_1, window_bounds = array<i64: 1, 1, 256>}, {transform_indices = @transform_2, window_bounds = array<i64: 2>}, {transform_indices = @transform_3, window_bounds = array<i64: 1, 4, 256>}]} {
    %c0 = arith.constant 0 : index
    %0 = memref.load %arg4[%c0] : memref<2xf32, #tpu.memory_space<smem>>
    %c0_0 = arith.constant 0 : index
    %c0_1 = arith.constant 0 : index
    %c0_2 = arith.constant 0 : index
    %1 = vector.load %arg3[%c0_0, %c0_1, %c0_2] : memref<1x1x256xf32, #tpu.memory_space<vmem>>, vector<1x1x256xf32>
    %2 = vector.shape_cast %1 : vector<1x1x256xf32> to vector<1x256xf32>
    %3 = vector.broadcast %0 : f32 to vector<1x256xf32>
    %4 = arith.mulf %3, %2 : vector<1x256xf32>
    %c1 = arith.constant 1 : index
    %5 = memref.load %arg4[%c1] : memref<2xf32, #tpu.memory_space<smem>>
    %6 = vector.broadcast %5 : f32 to vector<1x256xf32>
    %7 = arith.addf %4, %6 : vector<1x256xf32>
    %8 = arith.negf %7 : vector<1x256xf32>
    %9 = math.exp %8 : vector<1x256xf32>
    %cst = arith.constant 1.000000e+00 : f32
    %10 = vector.broadcast %cst : f32 to vector<1x256xf32>
    %11 = arith.addf %10, %9 : vector<1x256xf32>
    %12 = arith.divf %10, %11 : vector<1x256xf32>
    %c0_3 = arith.constant 0 : index
    %c0_4 = arith.constant 0 : index
    %c0_5 = arith.constant 0 : index
    %13 = vector.load %arg2[%c0_3, %c0_4, %c0_5] : memref<1x4x256xf32, #tpu.memory_space<vmem>>, vector<1x4x256xf32>
    %14 = vector.shape_cast %13 : vector<1x4x256xf32> to vector<4x256xf32>
    %15 = vector.broadcast %12 : vector<1x256xf32> to vector<4x256xf32>
    %16 = arith.mulf %14, %15 : vector<4x256xf32>
    %c0_6 = arith.constant 0 : index
    %c0_7 = arith.constant 0 : index
    %c0_8 = arith.constant 0 : index
    %17 = vector.load %arg5[%c0_6, %c0_7, %c0_8] : memref<1x4x256xf32, #tpu.memory_space<vmem>>, vector<1x4x256xf32>
    %18 = vector.shape_cast %17 : vector<1x4x256xf32> to vector<4x256xf32>
    %19 = vector.shape_cast %16 : vector<4x256xf32> to vector<1x4x256xf32>
    tpu.vector_store %arg5[%c0_6, %c0_7, %c0_8], %19 {strides = array<i32>} : memref<1x4x256xf32, #tpu.memory_space<vmem>>, vector<1x4x256xf32>,
    return
  }
  func.func @transform_0(%arg0: i32, %arg1: i32) -> (i32, i32, i32) {
    %c0_i32 = arith.constant 0 : i32
    %c0_i32_0 = arith.constant 0 : i32
    return %arg0, %arg1, %c0_i32 : i32, i32, i32
  }
  func.func @transform_1(%arg0: i32, %arg1: i32) -> (i32, i32, i32) {
    %c0_i32 = arith.constant 0 : i32
    %c0_i32_0 = arith.constant 0 : i32
    %c0_i32_1 = arith.constant 0 : i32
    return %arg0, %c0_i32, %c0_i32_0 : i32, i32, i32
  }
  func.func @transform_2(%arg0: i32, %arg1: i32) -> i32 {
    %c0_i32 = arith.constant 0 : i32
    %c0_i32_0 = arith.constant 0 : i32
    return %c0_i32 : i32
  }
  func.func @transform_3(%arg0: i32, %arg1: i32) -> (i32, i32, i32) {
    %c0_i32 = arith.constant 0 : i32
    %c0_i32_0 = arith.constant 0 : i32
    return %arg0, %arg1, %c0_i32 : i32, i32, i32
  }
}

module attributes {stable_mosaic.version = 11 : i64} {
  func.func @_pool_conv_kernel(%arg0: i32, %arg1: i32, %arg2: memref<1x4x16x16xf32, #tpu.memory_space<vmem>>, %arg3: memref<98xf32, #tpu.memory_space<smem>>, %arg4: memref<1x16x16xf32, #tpu.memory_space<vmem>>, %arg5: memref<1x1x1xf32, #tpu.memory_space<vmem>>, %arg6: memref<1x1x1xf32, #tpu.memory_space<vmem>>, %arg7: memref<2x27x147xf32, #tpu.memory_space<vmem>>) attributes {dimension_semantics = [#tpu.dimension_semantics<parallel>, #tpu.dimension_semantics<arbitrary>], iteration_bounds = array<i64: 2, 1>, scalar_prefetch = 0 : i64, scratch_operands = 1 : i64, tpu.core_type = #tpu.core_type<tc>, window_params = [{transform_indices = @transform_0, window_bounds = array<i64: 1, 4, 16, 16>}, {transform_indices = @transform_1, window_bounds = array<i64: 98>}, {transform_indices = @transform_2, window_bounds = array<i64: 1, 16, 16>}, {transform_indices = @transform_3, window_bounds = array<i64: 1, 1, 1>}, {transform_indices = @transform_4, window_bounds = array<i64: 1, 1, 1>}]} {
    %c0 = arith.constant 0 : index
    %c0_0 = arith.constant 0 : index
    %c0_1 = arith.constant 0 : index
    %c0_2 = arith.constant 0 : index
    %0 = vector.load %arg2[%c0, %c0_0, %c0_1, %c0_2] : memref<1x4x16x16xf32, #tpu.memory_space<vmem>>, vector<1x4x16x16xf32>
    %1 = vector.shape_cast %0 : vector<1x4x16x16xf32> to vector<4x16x16xf32>
    %cst = arith.constant dense<0xFF800000> : vector<16x16xf32>
    %2 = vector.multi_reduction <maximumf>, %1, %cst [0] : vector<4x16x16xf32> to vector<16x16xf32>
    %cst_3 = arith.constant dense<0.000000e+00> : vector<16x16xf32>
    %3 = vector.multi_reduction <add>, %1, %cst_3 [0] : vector<4x16x16xf32> to vector<16x16xf32>
    %c0_i32 = arith.constant 0 : i32
    %4 = arith.cmpi eq, %arg1, %c0_i32 : i32
    %5 = arith.extui %4 : i1 to i32
    %c0_i32_4 = arith.constant 0 : i32
    %6 = arith.cmpi ne, %5, %c0_i32_4 : i32
    scf.if %6 {
      %cst_9 = arith.constant 0.000000e+00 : f32
      %13 = vector.broadcast %cst_9 : f32 to vector<2x27x147xf32>
      %c0_10 = arith.constant 0 : index
      %c0_11 = arith.constant 0 : index
      %c0_12 = arith.constant 0 : index
      %14 = vector.load %arg7[%c0_10, %c0_11, %c0_12] : memref<2x27x147xf32, #tpu.memory_space<vmem>>, vector<2x27x147xf32>
      tpu.vector_store %arg7[%c0_10, %c0_11, %c0_12], %13 {strides = array<i32>} : memref<2x27x147xf32, #tpu.memory_space<vmem>>, vector<2x27x147xf32>,
      %c0_13 = arith.constant 0 : index
      %c8 = arith.constant 8 : index
      %c128 = arith.constant 128 : index
      %15 = vector.load %arg7[%c0_13, %c8, %c128] : memref<2x27x147xf32, #tpu.memory_space<vmem>>, vector<1x16x16xf32>
      %16 = vector.shape_cast %15 : vector<1x16x16xf32> to vector<16x16xf32>
      %17 = vector.shape_cast %2 : vector<16x16xf32> to vector<1x16x16xf32>
      tpu.vector_store %arg7[%c0_13, %c8, %c128], %17 {strides = array<i32>} : memref<2x27x147xf32, #tpu.memory_space<vmem>>, vector<1x16x16xf32>,
      %c1 = arith.constant 1 : index
      %c8_14 = arith.constant 8 : index
      %c128_15 = arith.constant 128 : index
      %18 = vector.load %arg7[%c1, %c8_14, %c128_15] : memref<2x27x147xf32, #tpu.memory_space<vmem>>, vector<1x16x16xf32>
      %19 = vector.shape_cast %18 : vector<1x16x16xf32> to vector<16x16xf32>
      %20 = vector.shape_cast %3 : vector<16x16xf32> to vector<1x16x16xf32>
      tpu.vector_store %arg7[%c1, %c8_14, %c128_15], %20 {strides = array<i32>} : memref<2x27x147xf32, #tpu.memory_space<vmem>>, vector<1x16x16xf32>,
    } else {
    }
    %c0_i32_5 = arith.constant 0 : i32
    %7 = arith.cmpi ne, %arg1, %c0_i32_5 : i32
    %8 = arith.extui %7 : i1 to i32
    %c0_i32_6 = arith.constant 0 : i32
    %9 = arith.cmpi ne, %8, %c0_i32_6 : i32
    scf.if %9 {
      %c0_9 = arith.constant 0 : index
      %c8 = arith.constant 8 : index
      %c128 = arith.constant 128 : index
      %13 = vector.load %arg7[%c0_9, %c8, %c128] : memref<2x27x147xf32, #tpu.memory_space<vmem>>, vector<1x16x16xf32>
      %14 = vector.shape_cast %13 : vector<1x16x16xf32> to vector<16x16xf32>
      %15 = arith.maximumf %14, %2 : vector<16x16xf32>
      %c0_10 = arith.constant 0 : index
      %c8_11 = arith.constant 8 : index
      %c128_12 = arith.constant 128 : index
      %16 = vector.load %arg7[%c0_10, %c8_11, %c128_12] : memref<2x27x147xf32, #tpu.memory_space<vmem>>, vector<1x16x16xf32>
      %17 = vector.shape_cast %16 : vector<1x16x16xf32> to vector<16x16xf32>
      %18 = vector.shape_cast %15 : vector<16x16xf32> to vector<1x16x16xf32>
      tpu.vector_store %arg7[%c0_10, %c8_11, %c128_12], %18 {strides = array<i32>} : memref<2x27x147xf32, #tpu.memory_space<vmem>>, vector<1x16x16xf32>,
      %c1 = arith.constant 1 : index
      %c8_13 = arith.constant 8 : index
      %c128_14 = arith.constant 128 : index
      %19 = vector.load %arg7[%c1, %c8_13, %c128_14] : memref<2x27x147xf32, #tpu.memory_space<vmem>>, vector<1x16x16xf32>
      %20 = vector.shape_cast %19 : vector<1x16x16xf32> to vector<16x16xf32>
      %21 = arith.addf %20, %3 : vector<16x16xf32>
      %c1_15 = arith.constant 1 : index
      %c8_16 = arith.constant 8 : index
      %c128_17 = arith.constant 128 : index
      %22 = vector.load %arg7[%c1_15, %c8_16, %c128_17] : memref<2x27x147xf32, #tpu.memory_space<vmem>>, vector<1x16x16xf32>
      %23 = vector.shape_cast %22 : vector<1x16x16xf32> to vector<16x16xf32>
      %24 = vector.shape_cast %21 : vector<16x16xf32> to vector<1x16x16xf32>
      tpu.vector_store %arg7[%c1_15, %c8_16, %c128_17], %24 {strides = array<i32>} : memref<2x27x147xf32, #tpu.memory_space<vmem>>, vector<1x16x16xf32>,
    } else {
    }
    %c0_i32_7 = arith.constant 0 : i32
    %10 = arith.cmpi eq, %arg1, %c0_i32_7 : i32
    %11 = arith.extui %10 : i1 to i32
    %c0_i32_8 = arith.constant 0 : i32
    %12 = arith.cmpi ne, %11, %c0_i32_8 : i32
    scf.if %12 {
      %cst_9 = arith.constant 0.000000e+00 : f32
      %13 = vector.broadcast %cst_9 : f32 to vector<16x16xf32>
      %c0_10 = arith.constant 0 : index
      %c5 = arith.constant 5 : index
      %c125 = arith.constant 125 : index
      %14 = vector.load %arg7[%c0_10, %c5, %c125] : memref<2x27x147xf32, #tpu.memory_space<vmem>>, vector<1x16x22xf32>
      %15 = vector.shape_cast %14 : vector<1x16x22xf32> to vector<16x22xf32>
      %c1 = arith.constant 1 : index
      %c5_11 = arith.constant 5 : index
      %c125_12 = arith.constant 125 : index
      %16 = vector.load %arg7[%c1, %c5_11, %c125_12] : memref<2x27x147xf32, #tpu.memory_space<vmem>>, vector<1x16x22xf32>
      %17 = vector.shape_cast %16 : vector<1x16x22xf32> to vector<16x22xf32>
      %c0_13 = arith.constant 0 : index
      %18 = memref.load %arg3[%c0_13] : memref<98xf32, #tpu.memory_space<smem>>
      %c49 = arith.constant 49 : index
      %19 = memref.load %arg3[%c49] : memref<98xf32, #tpu.memory_space<smem>>
      %20 = vector.extract_strided_slice %15 {offsets = [0, 0], sizes = [16, 16], strides = [1, 1]} : vector<16x22xf32> to vector<16x16xf32>
      %21 = vector.broadcast %18 : f32 to vector<16x16xf32>
      %22 = arith.mulf %21, %20 : vector<16x16xf32>
      %23 = arith.addf %13, %22 : vector<16x16xf32>
      %24 = vector.extract_strided_slice %17 {offsets = [0, 0], sizes = [16, 16], strides = [1, 1]} : vector<16x22xf32> to vector<16x16xf32>
      %25 = vector.broadcast %19 : f32 to vector<16x16xf32>
      %26 = arith.mulf %25, %24 : vector<16x16xf32>
      %27 = arith.addf %23, %26 : vector<16x16xf32>
      %c1_14 = arith.constant 1 : index
      %28 = memref.load %arg3[%c1_14] : memref<98xf32, #tpu.memory_space<smem>>
      %c50 = arith.constant 50 : index
      %29 = memref.load %arg3[%c50] : memref<98xf32, #tpu.memory_space<smem>>
      %30 = vector.extract_strided_slice %15 {offsets = [0, 1], sizes = [16, 16], strides = [1, 1]} : vector<16x22xf32> to vector<16x16xf32>
      %31 = vector.broadcast %28 : f32 to vector<16x16xf32>
      %32 = arith.mulf %31, %30 : vector<16x16xf32>
      %33 = arith.addf %27, %32 : vector<16x16xf32>
      %34 = vector.extract_strided_slice %17 {offsets = [0, 1], sizes = [16, 16], strides = [1, 1]} : vector<16x22xf32> to vector<16x16xf32>
      %35 = vector.broadcast %29 : f32 to vector<16x16xf32>
      %36 = arith.mulf %35, %34 : vector<16x16xf32>
      %37 = arith.addf %33, %36 : vector<16x16xf32>
      %c2 = arith.constant 2 : index
      %38 = memref.load %arg3[%c2] : memref<98xf32, #tpu.memory_space<smem>>
      %c51 = arith.constant 51 : index
      %39 = memref.load %arg3[%c51] : memref<98xf32, #tpu.memory_space<smem>>
      %40 = vector.extract_strided_slice %15 {offsets = [0, 2], sizes = [16, 16], strides = [1, 1]} : vector<16x22xf32> to vector<16x16xf32>
      %41 = vector.broadcast %38 : f32 to vector<16x16xf32>
      %42 = arith.mulf %41, %40 : vector<16x16xf32>
      %43 = arith.addf %37, %42 : vector<16x16xf32>
      %44 = vector.extract_strided_slice %17 {offsets = [0, 2], sizes = [16, 16], strides = [1, 1]} : vector<16x22xf32> to vector<16x16xf32>
      %45 = vector.broadcast %39 : f32 to vector<16x16xf32>
      %46 = arith.mulf %45, %44 : vector<16x16xf32>
      %47 = arith.addf %43, %46 : vector<16x16xf32>
      %c3 = arith.constant 3 : index
      %48 = memref.load %arg3[%c3] : memref<98xf32, #tpu.memory_space<smem>>
      %c52 = arith.constant 52 : index
      %49 = memref.load %arg3[%c52] : memref<98xf32, #tpu.memory_space<smem>>
      %50 = vector.extract_strided_slice %15 {offsets = [0, 3], sizes = [16, 16], strides = [1, 1]} : vector<16x22xf32> to vector<16x16xf32>
      %51 = vector.broadcast %48 : f32 to vector<16x16xf32>
      %52 = arith.mulf %51, %50 : vector<16x16xf32>
      %53 = arith.addf %47, %52 : vector<16x16xf32>
      %54 = vector.extract_strided_slice %17 {offsets = [0, 3], sizes = [16, 16], strides = [1, 1]} : vector<16x22xf32> to vector<16x16xf32>
      %55 = vector.broadcast %49 : f32 to vector<16x16xf32>
      %56 = arith.mulf %55, %54 : vector<16x16xf32>
      %57 = arith.addf %53, %56 : vector<16x16xf32>
      %c4 = arith.constant 4 : index
      %58 = memref.load %arg3[%c4] : memref<98xf32, #tpu.memory_space<smem>>
      %c53 = arith.constant 53 : index
      %59 = memref.load %arg3[%c53] : memref<98xf32, #tpu.memory_space<smem>>
      %60 = vector.extract_strided_slice %15 {offsets = [0, 4], sizes = [16, 16], strides = [1, 1]} : vector<16x22xf32> to vector<16x16xf32>
      %61 = vector.broadcast %58 : f32 to vector<16x16xf32>
      %62 = arith.mulf %61, %60 : vector<16x16xf32>
      %63 = arith.addf %57, %62 : vector<16x16xf32>
      %64 = vector.extract_strided_slice %17 {offsets = [0, 4], sizes = [16, 16], strides = [1, 1]} : vector<16x22xf32> to vector<16x16xf32>
      %65 = vector.broadcast %59 : f32 to vector<16x16xf32>
      %66 = arith.mulf %65, %64 : vector<16x16xf32>
      %67 = arith.addf %63, %66 : vector<16x16xf32>
      %c5_15 = arith.constant 5 : index
      %68 = memref.load %arg3[%c5_15] : memref<98xf32, #tpu.memory_space<smem>>
      %c54 = arith.constant 54 : index
      %69 = memref.load %arg3[%c54] : memref<98xf32, #tpu.memory_space<smem>>
      %70 = vector.extract_strided_slice %15 {offsets = [0, 5], sizes = [16, 16], strides = [1, 1]} : vector<16x22xf32> to vector<16x16xf32>
      %71 = vector.broadcast %68 : f32 to vector<16x16xf32>
      %72 = arith.mulf %71, %70 : vector<16x16xf32>
      %73 = arith.addf %67, %72 : vector<16x16xf32>
      %74 = vector.extract_strided_slice %17 {offsets = [0, 5], sizes = [16, 16], strides = [1, 1]} : vector<16x22xf32> to vector<16x16xf32>
      %75 = vector.broadcast %69 : f32 to vector<16x16xf32>
      %76 = arith.mulf %75, %74 : vector<16x16xf32>
      %77 = arith.addf %73, %76 : vector<16x16xf32>
      %c6 = arith.constant 6 : index
      %78 = memref.load %arg3[%c6] : memref<98xf32, #tpu.memory_space<smem>>
      %c55 = arith.constant 55 : index
      %79 = memref.load %arg3[%c55] : memref<98xf32, #tpu.memory_space<smem>>
      %80 = vector.extract_strided_slice %15 {offsets = [0, 6], sizes = [16, 16], strides = [1, 1]} : vector<16x22xf32> to vector<16x16xf32>
      %81 = vector.broadcast %78 : f32 to vector<16x16xf32>
      %82 = arith.mulf %81, %80 : vector<16x16xf32>
      %83 = arith.addf %77, %82 : vector<16x16xf32>
      %84 = vector.extract_strided_slice %17 {offsets = [0, 6], sizes = [16, 16], strides = [1, 1]} : vector<16x22xf32> to vector<16x16xf32>
      %85 = vector.broadcast %79 : f32 to vector<16x16xf32>
      %86 = arith.mulf %85, %84 : vector<16x16xf32>
      %87 = arith.addf %83, %86 : vector<16x16xf32>
      %c0_16 = arith.constant 0 : index
      %c6_17 = arith.constant 6 : index
      %c125_18 = arith.constant 125 : index
      %88 = vector.load %arg7[%c0_16, %c6_17, %c125_18] : memref<2x27x147xf32, #tpu.memory_space<vmem>>, vector<1x16x22xf32>
      %89 = vector.shape_cast %88 : vector<1x16x22xf32> to vector<16x22xf32>
      %c1_19 = arith.constant 1 : index
      %c6_20 = arith.constant 6 : index
      %c125_21 = arith.constant 125 : index
      %90 = vector.load %arg7[%c1_19, %c6_20, %c125_21] : memref<2x27x147xf32, #tpu.memory_space<vmem>>, vector<1x16x22xf32>
      %91 = vector.shape_cast %90 : vector<1x16x22xf32> to vector<16x22xf32>
      %c7 = arith.constant 7 : index
      %92 = memref.load %arg3[%c7] : memref<98xf32, #tpu.memory_space<smem>>
      %c56 = arith.constant 56 : index
      %93 = memref.load %arg3[%c56] : memref<98xf32, #tpu.memory_space<smem>>
      %94 = vector.extract_strided_slice %89 {offsets = [0, 0], sizes = [16, 16], strides = [1, 1]} : vector<16x22xf32> to vector<16x16xf32>
      %95 = vector.broadcast %92 : f32 to vector<16x16xf32>
      %96 = arith.mulf %95, %94 : vector<16x16xf32>
      %97 = arith.addf %87, %96 : vector<16x16xf32>
      %98 = vector.extract_strided_slice %91 {offsets = [0, 0], sizes = [16, 16], strides = [1, 1]} : vector<16x22xf32> to vector<16x16xf32>
      %99 = vector.broadcast %93 : f32 to vector<16x16xf32>
      %100 = arith.mulf %99, %98 : vector<16x16xf32>
      %101 = arith.addf %97, %100 : vector<16x16xf32>
      %c8 = arith.constant 8 : index
      %102 = memref.load %arg3[%c8] : memref<98xf32, #tpu.memory_space<smem>>
      %c57 = arith.constant 57 : index
      %103 = memref.load %arg3[%c57] : memref<98xf32, #tpu.memory_space<smem>>
      %104 = vector.extract_strided_slice %89 {offsets = [0, 1], sizes = [16, 16], strides = [1, 1]} : vector<16x22xf32> to vector<16x16xf32>
      %105 = vector.broadcast %102 : f32 to vector<16x16xf32>
      %106 = arith.mulf %105, %104 : vector<16x16xf32>
      %107 = arith.addf %101, %106 : vector<16x16xf32>
      %108 = vector.extract_strided_slice %91 {offsets = [0, 1], sizes = [16, 16], strides = [1, 1]} : vector<16x22xf32> to vector<16x16xf32>
      %109 = vector.broadcast %103 : f32 to vector<16x16xf32>
      %110 = arith.mulf %109, %108 : vector<16x16xf32>
      %111 = arith.addf %107, %110 : vector<16x16xf32>
      %c9 = arith.constant 9 : index
      %112 = memref.load %arg3[%c9] : memref<98xf32, #tpu.memory_space<smem>>
      %c58 = arith.constant 58 : index
      %113 = memref.load %arg3[%c58] : memref<98xf32, #tpu.memory_space<smem>>
      %114 = vector.extract_strided_slice %89 {offsets = [0, 2], sizes = [16, 16], strides = [1, 1]} : vector<16x22xf32> to vector<16x16xf32>
      %115 = vector.broadcast %112 : f32 to vector<16x16xf32>
      %116 = arith.mulf %115, %114 : vector<16x16xf32>
      %117 = arith.addf %111, %116 : vector<16x16xf32>
      %118 = vector.extract_strided_slice %91 {offsets = [0, 2], sizes = [16, 16], strides = [1, 1]} : vector<16x22xf32> to vector<16x16xf32>
      %119 = vector.broadcast %113 : f32 to vector<16x16xf32>
      %120 = arith.mulf %119, %118 : vector<16x16xf32>
      %121 = arith.addf %117, %120 : vector<16x16xf32>
      %c10 = arith.constant 10 : index
      %122 = memref.load %arg3[%c10] : memref<98xf32, #tpu.memory_space<smem>>
      %c59 = arith.constant 59 : index
      %123 = memref.load %arg3[%c59] : memref<98xf32, #tpu.memory_space<smem>>
      %124 = vector.extract_strided_slice %89 {offsets = [0, 3], sizes = [16, 16], strides = [1, 1]} : vector<16x22xf32> to vector<16x16xf32>
      %125 = vector.broadcast %122 : f32 to vector<16x16xf32>
      %126 = arith.mulf %125, %124 : vector<16x16xf32>
      %127 = arith.addf %121, %126 : vector<16x16xf32>
      %128 = vector.extract_strided_slice %91 {offsets = [0, 3], sizes = [16, 16], strides = [1, 1]} : vector<16x22xf32> to vector<16x16xf32>
      %129 = vector.broadcast %123 : f32 to vector<16x16xf32>
      %130 = arith.mulf %129, %128 : vector<16x16xf32>
      %131 = arith.addf %127, %130 : vector<16x16xf32>
      %c11 = arith.constant 11 : index
      %132 = memref.load %arg3[%c11] : memref<98xf32, #tpu.memory_space<smem>>
      %c60 = arith.constant 60 : index
      %133 = memref.load %arg3[%c60] : memref<98xf32, #tpu.memory_space<smem>>
      %134 = vector.extract_strided_slice %89 {offsets = [0, 4], sizes = [16, 16], strides = [1, 1]} : vector<16x22xf32> to vector<16x16xf32>
      %135 = vector.broadcast %132 : f32 to vector<16x16xf32>
      %136 = arith.mulf %135, %134 : vector<16x16xf32>
      %137 = arith.addf %131, %136 : vector<16x16xf32>
      %138 = vector.extract_strided_slice %91 {offsets = [0, 4], sizes = [16, 16], strides = [1, 1]} : vector<16x22xf32> to vector<16x16xf32>
      %139 = vector.broadcast %133 : f32 to vector<16x16xf32>
      %140 = arith.mulf %139, %138 : vector<16x16xf32>
      %141 = arith.addf %137, %140 : vector<16x16xf32>
      %c12 = arith.constant 12 : index
      %142 = memref.load %arg3[%c12] : memref<98xf32, #tpu.memory_space<smem>>
      %c61 = arith.constant 61 : index
      %143 = memref.load %arg3[%c61] : memref<98xf32, #tpu.memory_space<smem>>
      %144 = vector.extract_strided_slice %89 {offsets = [0, 5], sizes = [16, 16], strides = [1, 1]} : vector<16x22xf32> to vector<16x16xf32>
      %145 = vector.broadcast %142 : f32 to vector<16x16xf32>
      %146 = arith.mulf %145, %144 : vector<16x16xf32>
      %147 = arith.addf %141, %146 : vector<16x16xf32>
      %148 = vector.extract_strided_slice %91 {offsets = [0, 5], sizes = [16, 16], strides = [1, 1]} : vector<16x22xf32> to vector<16x16xf32>
      %149 = vector.broadcast %143 : f32 to vector<16x16xf32>
      %150 = arith.mulf %149, %148 : vector<16x16xf32>
      %151 = arith.addf %147, %150 : vector<16x16xf32>
      %c13 = arith.constant 13 : index
      %152 = memref.load %arg3[%c13] : memref<98xf32, #tpu.memory_space<smem>>
      %c62 = arith.constant 62 : index
      %153 = memref.load %arg3[%c62] : memref<98xf32, #tpu.memory_space<smem>>
      %154 = vector.extract_strided_slice %89 {offsets = [0, 6], sizes = [16, 16], strides = [1, 1]} : vector<16x22xf32> to vector<16x16xf32>
      %155 = vector.broadcast %152 : f32 to vector<16x16xf32>
      %156 = arith.mulf %155, %154 : vector<16x16xf32>
      %157 = arith.addf %151, %156 : vector<16x16xf32>
      %158 = vector.extract_strided_slice %91 {offsets = [0, 6], sizes = [16, 16], strides = [1, 1]} : vector<16x22xf32> to vector<16x16xf32>
      %159 = vector.broadcast %153 : f32 to vector<16x16xf32>
      %160 = arith.mulf %159, %158 : vector<16x16xf32>
      %161 = arith.addf %157, %160 : vector<16x16xf32>
      %c0_22 = arith.constant 0 : index
      %c7_23 = arith.constant 7 : index
      %c125_24 = arith.constant 125 : index
      %162 = vector.load %arg7[%c0_22, %c7_23, %c125_24] : memref<2x27x147xf32, #tpu.memory_space<vmem>>, vector<1x16x22xf32>
      %163 = vector.shape_cast %162 : vector<1x16x22xf32> to vector<16x22xf32>
      %c1_25 = arith.constant 1 : index
      %c7_26 = arith.constant 7 : index
      %c125_27 = arith.constant 125 : index
      %164 = vector.load %arg7[%c1_25, %c7_26, %c125_27] : memref<2x27x147xf32, #tpu.memory_space<vmem>>, vector<1x16x22xf32>
      %165 = vector.shape_cast %164 : vector<1x16x22xf32> to vector<16x22xf32>
      %c14 = arith.constant 14 : index
      %166 = memref.load %arg3[%c14] : memref<98xf32, #tpu.memory_space<smem>>
      %c63 = arith.constant 63 : index
      %167 = memref.load %arg3[%c63] : memref<98xf32, #tpu.memory_space<smem>>
      %168 = vector.extract_strided_slice %163 {offsets = [0, 0], sizes = [16, 16], strides = [1, 1]} : vector<16x22xf32> to vector<16x16xf32>
      %169 = vector.broadcast %166 : f32 to vector<16x16xf32>
      %170 = arith.mulf %169, %168 : vector<16x16xf32>
      %171 = arith.addf %161, %170 : vector<16x16xf32>
      %172 = vector.extract_strided_slice %165 {offsets = [0, 0], sizes = [16, 16], strides = [1, 1]} : vector<16x22xf32> to vector<16x16xf32>
      %173 = vector.broadcast %167 : f32 to vector<16x16xf32>
      %174 = arith.mulf %173, %172 : vector<16x16xf32>
      %175 = arith.addf %171, %174 : vector<16x16xf32>
      %c15 = arith.constant 15 : index
      %176 = memref.load %arg3[%c15] : memref<98xf32, #tpu.memory_space<smem>>
      %c64 = arith.constant 64 : index
      %177 = memref.load %arg3[%c64] : memref<98xf32, #tpu.memory_space<smem>>
      %178 = vector.extract_strided_slice %163 {offsets = [0, 1], sizes = [16, 16], strides = [1, 1]} : vector<16x22xf32> to vector<16x16xf32>
      %179 = vector.broadcast %176 : f32 to vector<16x16xf32>
      %180 = arith.mulf %179, %178 : vector<16x16xf32>
      %181 = arith.addf %175, %180 : vector<16x16xf32>
      %182 = vector.extract_strided_slice %165 {offsets = [0, 1], sizes = [16, 16], strides = [1, 1]} : vector<16x22xf32> to vector<16x16xf32>
      %183 = vector.broadcast %177 : f32 to vector<16x16xf32>
      %184 = arith.mulf %183, %182 : vector<16x16xf32>
      %185 = arith.addf %181, %184 : vector<16x16xf32>
      %c16 = arith.constant 16 : index
      %186 = memref.load %arg3[%c16] : memref<98xf32, #tpu.memory_space<smem>>
      %c65 = arith.constant 65 : index
      %187 = memref.load %arg3[%c65] : memref<98xf32, #tpu.memory_space<smem>>
      %188 = vector.extract_strided_slice %163 {offsets = [0, 2], sizes = [16, 16], strides = [1, 1]} : vector<16x22xf32> to vector<16x16xf32>
      %189 = vector.broadcast %186 : f32 to vector<16x16xf32>
      %190 = arith.mulf %189, %188 : vector<16x16xf32>
      %191 = arith.addf %185, %190 : vector<16x16xf32>
      %192 = vector.extract_strided_slice %165 {offsets = [0, 2], sizes = [16, 16], strides = [1, 1]} : vector<16x22xf32> to vector<16x16xf32>
      %193 = vector.broadcast %187 : f32 to vector<16x16xf32>
      %194 = arith.mulf %193, %192 : vector<16x16xf32>
      %195 = arith.addf %191, %194 : vector<16x16xf32>
      %c17 = arith.constant 17 : index
      %196 = memref.load %arg3[%c17] : memref<98xf32, #tpu.memory_space<smem>>
      %c66 = arith.constant 66 : index
      %197 = memref.load %arg3[%c66] : memref<98xf32, #tpu.memory_space<smem>>
      %198 = vector.extract_strided_slice %163 {offsets = [0, 3], sizes = [16, 16], strides = [1, 1]} : vector<16x22xf32> to vector<16x16xf32>
      %199 = vector.broadcast %196 : f32 to vector<16x16xf32>
      %200 = arith.mulf %199, %198 : vector<16x16xf32>
      %201 = arith.addf %195, %200 : vector<16x16xf32>
      %202 = vector.extract_strided_slice %165 {offsets = [0, 3], sizes = [16, 16], strides = [1, 1]} : vector<16x22xf32> to vector<16x16xf32>
      %203 = vector.broadcast %197 : f32 to vector<16x16xf32>
      %204 = arith.mulf %203, %202 : vector<16x16xf32>
      %205 = arith.addf %201, %204 : vector<16x16xf32>
      %c18 = arith.constant 18 : index
      %206 = memref.load %arg3[%c18] : memref<98xf32, #tpu.memory_space<smem>>
      %c67 = arith.constant 67 : index
      %207 = memref.load %arg3[%c67] : memref<98xf32, #tpu.memory_space<smem>>
      %208 = vector.extract_strided_slice %163 {offsets = [0, 4], sizes = [16, 16], strides = [1, 1]} : vector<16x22xf32> to vector<16x16xf32>
      %209 = vector.broadcast %206 : f32 to vector<16x16xf32>
      %210 = arith.mulf %209, %208 : vector<16x16xf32>
      %211 = arith.addf %205, %210 : vector<16x16xf32>
      %212 = vector.extract_strided_slice %165 {offsets = [0, 4], sizes = [16, 16], strides = [1, 1]} : vector<16x22xf32> to vector<16x16xf32>
      %213 = vector.broadcast %207 : f32 to vector<16x16xf32>
      %214 = arith.mulf %213, %212 : vector<16x16xf32>
      %215 = arith.addf %211, %214 : vector<16x16xf32>
      %c19 = arith.constant 19 : index
      %216 = memref.load %arg3[%c19] : memref<98xf32, #tpu.memory_space<smem>>
      %c68 = arith.constant 68 : index
      %217 = memref.load %arg3[%c68] : memref<98xf32, #tpu.memory_space<smem>>
      %218 = vector.extract_strided_slice %163 {offsets = [0, 5], sizes = [16, 16], strides = [1, 1]} : vector<16x22xf32> to vector<16x16xf32>
      %219 = vector.broadcast %216 : f32 to vector<16x16xf32>
      %220 = arith.mulf %219, %218 : vector<16x16xf32>
      %221 = arith.addf %215, %220 : vector<16x16xf32>
      %222 = vector.extract_strided_slice %165 {offsets = [0, 5], sizes = [16, 16], strides = [1, 1]} : vector<16x22xf32> to vector<16x16xf32>
      %223 = vector.broadcast %217 : f32 to vector<16x16xf32>
      %224 = arith.mulf %223, %222 : vector<16x16xf32>
      %225 = arith.addf %221, %224 : vector<16x16xf32>
      %c20 = arith.constant 20 : index
      %226 = memref.load %arg3[%c20] : memref<98xf32, #tpu.memory_space<smem>>
      %c69 = arith.constant 69 : index
      %227 = memref.load %arg3[%c69] : memref<98xf32, #tpu.memory_space<smem>>
      %228 = vector.extract_strided_slice %163 {offsets = [0, 6], sizes = [16, 16], strides = [1, 1]} : vector<16x22xf32> to vector<16x16xf32>
      %229 = vector.broadcast %226 : f32 to vector<16x16xf32>
      %230 = arith.mulf %229, %228 : vector<16x16xf32>
      %231 = arith.addf %225, %230 : vector<16x16xf32>
      %232 = vector.extract_strided_slice %165 {offsets = [0, 6], sizes = [16, 16], strides = [1, 1]} : vector<16x22xf32> to vector<16x16xf32>
      %233 = vector.broadcast %227 : f32 to vector<16x16xf32>
      %234 = arith.mulf %233, %232 : vector<16x16xf32>
      %235 = arith.addf %231, %234 : vector<16x16xf32>
      %c0_28 = arith.constant 0 : index
      %c8_29 = arith.constant 8 : index
      %c125_30 = arith.constant 125 : index
      %236 = vector.load %arg7[%c0_28, %c8_29, %c125_30] : memref<2x27x147xf32, #tpu.memory_space<vmem>>, vector<1x16x22xf32>
      %237 = vector.shape_cast %236 : vector<1x16x22xf32> to vector<16x22xf32>
      %c1_31 = arith.constant 1 : index
      %c8_32 = arith.constant 8 : index
      %c125_33 = arith.constant 125 : index
      %238 = vector.load %arg7[%c1_31, %c8_32, %c125_33] : memref<2x27x147xf32, #tpu.memory_space<vmem>>, vector<1x16x22xf32>
      %239 = vector.shape_cast %238 : vector<1x16x22xf32> to vector<16x22xf32>
      %c21 = arith.constant 21 : index
      %240 = memref.load %arg3[%c21] : memref<98xf32, #tpu.memory_space<smem>>
      %c70 = arith.constant 70 : index
      %241 = memref.load %arg3[%c70] : memref<98xf32, #tpu.memory_space<smem>>
      %242 = vector.extract_strided_slice %237 {offsets = [0, 0], sizes = [16, 16], strides = [1, 1]} : vector<16x22xf32> to vector<16x16xf32>
      %243 = vector.broadcast %240 : f32 to vector<16x16xf32>
      %244 = arith.mulf %243, %242 : vector<16x16xf32>
      %245 = arith.addf %235, %244 : vector<16x16xf32>
      %246 = vector.extract_strided_slice %239 {offsets = [0, 0], sizes = [16, 16], strides = [1, 1]} : vector<16x22xf32> to vector<16x16xf32>
      %247 = vector.broadcast %241 : f32 to vector<16x16xf32>
      %248 = arith.mulf %247, %246 : vector<16x16xf32>
      %249 = arith.addf %245, %248 : vector<16x16xf32>
      %c22 = arith.constant 22 : index
      %250 = memref.load %arg3[%c22] : memref<98xf32, #tpu.memory_space<smem>>
      %c71 = arith.constant 71 : index
      %251 = memref.load %arg3[%c71] : memref<98xf32, #tpu.memory_space<smem>>
      %252 = vector.extract_strided_slice %237 {offsets = [0, 1], sizes = [16, 16], strides = [1, 1]} : vector<16x22xf32> to vector<16x16xf32>
      %253 = vector.broadcast %250 : f32 to vector<16x16xf32>
      %254 = arith.mulf %253, %252 : vector<16x16xf32>
      %255 = arith.addf %249, %254 : vector<16x16xf32>
      %256 = vector.extract_strided_slice %239 {offsets = [0, 1], sizes = [16, 16], strides = [1, 1]} : vector<16x22xf32> to vector<16x16xf32>
      %257 = vector.broadcast %251 : f32 to vector<16x16xf32>
      %258 = arith.mulf %257, %256 : vector<16x16xf32>
      %259 = arith.addf %255, %258 : vector<16x16xf32>
      %c23 = arith.constant 23 : index
      %260 = memref.load %arg3[%c23] : memref<98xf32, #tpu.memory_space<smem>>
      %c72 = arith.constant 72 : index
      %261 = memref.load %arg3[%c72] : memref<98xf32, #tpu.memory_space<smem>>
      %262 = vector.extract_strided_slice %237 {offsets = [0, 2], sizes = [16, 16], strides = [1, 1]} : vector<16x22xf32> to vector<16x16xf32>
      %263 = vector.broadcast %260 : f32 to vector<16x16xf32>
      %264 = arith.mulf %263, %262 : vector<16x16xf32>
      %265 = arith.addf %259, %264 : vector<16x16xf32>
      %266 = vector.extract_strided_slice %239 {offsets = [0, 2], sizes = [16, 16], strides = [1, 1]} : vector<16x22xf32> to vector<16x16xf32>
      %267 = vector.broadcast %261 : f32 to vector<16x16xf32>
      %268 = arith.mulf %267, %266 : vector<16x16xf32>
      %269 = arith.addf %265, %268 : vector<16x16xf32>
      %c24 = arith.constant 24 : index
      %270 = memref.load %arg3[%c24] : memref<98xf32, #tpu.memory_space<smem>>
      %c73 = arith.constant 73 : index
      %271 = memref.load %arg3[%c73] : memref<98xf32, #tpu.memory_space<smem>>
      %272 = vector.extract_strided_slice %237 {offsets = [0, 3], sizes = [16, 16], strides = [1, 1]} : vector<16x22xf32> to vector<16x16xf32>
      %273 = vector.broadcast %270 : f32 to vector<16x16xf32>
      %274 = arith.mulf %273, %272 : vector<16x16xf32>
      %275 = arith.addf %269, %274 : vector<16x16xf32>
      %276 = vector.extract_strided_slice %239 {offsets = [0, 3], sizes = [16, 16], strides = [1, 1]} : vector<16x22xf32> to vector<16x16xf32>
      %277 = vector.broadcast %271 : f32 to vector<16x16xf32>
      %278 = arith.mulf %277, %276 : vector<16x16xf32>
      %279 = arith.addf %275, %278 : vector<16x16xf32>
      %c25 = arith.constant 25 : index
      %280 = memref.load %arg3[%c25] : memref<98xf32, #tpu.memory_space<smem>>
      %c74 = arith.constant 74 : index
      %281 = memref.load %arg3[%c74] : memref<98xf32, #tpu.memory_space<smem>>
      %282 = vector.extract_strided_slice %237 {offsets = [0, 4], sizes = [16, 16], strides = [1, 1]} : vector<16x22xf32> to vector<16x16xf32>
      %283 = vector.broadcast %280 : f32 to vector<16x16xf32>
      %284 = arith.mulf %283, %282 : vector<16x16xf32>
      %285 = arith.addf %279, %284 : vector<16x16xf32>
      %286 = vector.extract_strided_slice %239 {offsets = [0, 4], sizes = [16, 16], strides = [1, 1]} : vector<16x22xf32> to vector<16x16xf32>
      %287 = vector.broadcast %281 : f32 to vector<16x16xf32>
      %288 = arith.mulf %287, %286 : vector<16x16xf32>
      %289 = arith.addf %285, %288 : vector<16x16xf32>
      %c26 = arith.constant 26 : index
      %290 = memref.load %arg3[%c26] : memref<98xf32, #tpu.memory_space<smem>>
      %c75 = arith.constant 75 : index
      %291 = memref.load %arg3[%c75] : memref<98xf32, #tpu.memory_space<smem>>
      %292 = vector.extract_strided_slice %237 {offsets = [0, 5], sizes = [16, 16], strides = [1, 1]} : vector<16x22xf32> to vector<16x16xf32>
      %293 = vector.broadcast %290 : f32 to vector<16x16xf32>
      %294 = arith.mulf %293, %292 : vector<16x16xf32>
      %295 = arith.addf %289, %294 : vector<16x16xf32>
      %296 = vector.extract_strided_slice %239 {offsets = [0, 5], sizes = [16, 16], strides = [1, 1]} : vector<16x22xf32> to vector<16x16xf32>
      %297 = vector.broadcast %291 : f32 to vector<16x16xf32>
      %298 = arith.mulf %297, %296 : vector<16x16xf32>
      %299 = arith.addf %295, %298 : vector<16x16xf32>
      %c27 = arith.constant 27 : index
      %300 = memref.load %arg3[%c27] : memref<98xf32, #tpu.memory_space<smem>>
      %c76 = arith.constant 76 : index
      %301 = memref.load %arg3[%c76] : memref<98xf32, #tpu.memory_space<smem>>
      %302 = vector.extract_strided_slice %237 {offsets = [0, 6], sizes = [16, 16], strides = [1, 1]} : vector<16x22xf32> to vector<16x16xf32>
      %303 = vector.broadcast %300 : f32 to vector<16x16xf32>
      %304 = arith.mulf %303, %302 : vector<16x16xf32>
      %305 = arith.addf %299, %304 : vector<16x16xf32>
      %306 = vector.extract_strided_slice %239 {offsets = [0, 6], sizes = [16, 16], strides = [1, 1]} : vector<16x22xf32> to vector<16x16xf32>
      %307 = vector.broadcast %301 : f32 to vector<16x16xf32>
      %308 = arith.mulf %307, %306 : vector<16x16xf32>
      %309 = arith.addf %305, %308 : vector<16x16xf32>
      %c0_34 = arith.constant 0 : index
      %c9_35 = arith.constant 9 : index
      %c125_36 = arith.constant 125 : index
      %310 = vector.load %arg7[%c0_34, %c9_35, %c125_36] : memref<2x27x147xf32, #tpu.memory_space<vmem>>, vector<1x16x22xf32>
      %311 = vector.shape_cast %310 : vector<1x16x22xf32> to vector<16x22xf32>
      %c1_37 = arith.constant 1 : index
      %c9_38 = arith.constant 9 : index
      %c125_39 = arith.constant 125 : index
      %312 = vector.load %arg7[%c1_37, %c9_38, %c125_39] : memref<2x27x147xf32, #tpu.memory_space<vmem>>, vector<1x16x22xf32>
      %313 = vector.shape_cast %312 : vector<1x16x22xf32> to vector<16x22xf32>
      %c28 = arith.constant 28 : index
      %314 = memref.load %arg3[%c28] : memref<98xf32, #tpu.memory_space<smem>>
      %c77 = arith.constant 77 : index
      %315 = memref.load %arg3[%c77] : memref<98xf32, #tpu.memory_space<smem>>
      %316 = vector.extract_strided_slice %311 {offsets = [0, 0], sizes = [16, 16], strides = [1, 1]} : vector<16x22xf32> to vector<16x16xf32>
      %317 = vector.broadcast %314 : f32 to vector<16x16xf32>
      %318 = arith.mulf %317, %316 : vector<16x16xf32>
      %319 = arith.addf %309, %318 : vector<16x16xf32>
      %320 = vector.extract_strided_slice %313 {offsets = [0, 0], sizes = [16, 16], strides = [1, 1]} : vector<16x22xf32> to vector<16x16xf32>
      %321 = vector.broadcast %315 : f32 to vector<16x16xf32>
      %322 = arith.mulf %321, %320 : vector<16x16xf32>
      %323 = arith.addf %319, %322 : vector<16x16xf32>
      %c29 = arith.constant 29 : index
      %324 = memref.load %arg3[%c29] : memref<98xf32, #tpu.memory_space<smem>>
      %c78 = arith.constant 78 : index
      %325 = memref.load %arg3[%c78] : memref<98xf32, #tpu.memory_space<smem>>
      %326 = vector.extract_strided_slice %311 {offsets = [0, 1], sizes = [16, 16], strides = [1, 1]} : vector<16x22xf32> to vector<16x16xf32>
      %327 = vector.broadcast %324 : f32 to vector<16x16xf32>
      %328 = arith.mulf %327, %326 : vector<16x16xf32>
      %329 = arith.addf %323, %328 : vector<16x16xf32>
      %330 = vector.extract_strided_slice %313 {offsets = [0, 1], sizes = [16, 16], strides = [1, 1]} : vector<16x22xf32> to vector<16x16xf32>
      %331 = vector.broadcast %325 : f32 to vector<16x16xf32>
      %332 = arith.mulf %331, %330 : vector<16x16xf32>
      %333 = arith.addf %329, %332 : vector<16x16xf32>
      %c30 = arith.constant 30 : index
      %334 = memref.load %arg3[%c30] : memref<98xf32, #tpu.memory_space<smem>>
      %c79 = arith.constant 79 : index
      %335 = memref.load %arg3[%c79] : memref<98xf32, #tpu.memory_space<smem>>
      %336 = vector.extract_strided_slice %311 {offsets = [0, 2], sizes = [16, 16], strides = [1, 1]} : vector<16x22xf32> to vector<16x16xf32>
      %337 = vector.broadcast %334 : f32 to vector<16x16xf32>
      %338 = arith.mulf %337, %336 : vector<16x16xf32>
      %339 = arith.addf %333, %338 : vector<16x16xf32>
      %340 = vector.extract_strided_slice %313 {offsets = [0, 2], sizes = [16, 16], strides = [1, 1]} : vector<16x22xf32> to vector<16x16xf32>
      %341 = vector.broadcast %335 : f32 to vector<16x16xf32>
      %342 = arith.mulf %341, %340 : vector<16x16xf32>
      %343 = arith.addf %339, %342 : vector<16x16xf32>
      %c31 = arith.constant 31 : index
      %344 = memref.load %arg3[%c31] : memref<98xf32, #tpu.memory_space<smem>>
      %c80 = arith.constant 80 : index
      %345 = memref.load %arg3[%c80] : memref<98xf32, #tpu.memory_space<smem>>
      %346 = vector.extract_strided_slice %311 {offsets = [0, 3], sizes = [16, 16], strides = [1, 1]} : vector<16x22xf32> to vector<16x16xf32>
      %347 = vector.broadcast %344 : f32 to vector<16x16xf32>
      %348 = arith.mulf %347, %346 : vector<16x16xf32>
      %349 = arith.addf %343, %348 : vector<16x16xf32>
      %350 = vector.extract_strided_slice %313 {offsets = [0, 3], sizes = [16, 16], strides = [1, 1]} : vector<16x22xf32> to vector<16x16xf32>
      %351 = vector.broadcast %345 : f32 to vector<16x16xf32>
      %352 = arith.mulf %351, %350 : vector<16x16xf32>
      %353 = arith.addf %349, %352 : vector<16x16xf32>
      %c32 = arith.constant 32 : index
      %354 = memref.load %arg3[%c32] : memref<98xf32, #tpu.memory_space<smem>>
      %c81 = arith.constant 81 : index
      %355 = memref.load %arg3[%c81] : memref<98xf32, #tpu.memory_space<smem>>
      %356 = vector.extract_strided_slice %311 {offsets = [0, 4], sizes = [16, 16], strides = [1, 1]} : vector<16x22xf32> to vector<16x16xf32>
      %357 = vector.broadcast %354 : f32 to vector<16x16xf32>
      %358 = arith.mulf %357, %356 : vector<16x16xf32>
      %359 = arith.addf %353, %358 : vector<16x16xf32>
      %360 = vector.extract_strided_slice %313 {offsets = [0, 4], sizes = [16, 16], strides = [1, 1]} : vector<16x22xf32> to vector<16x16xf32>
      %361 = vector.broadcast %355 : f32 to vector<16x16xf32>
      %362 = arith.mulf %361, %360 : vector<16x16xf32>
      %363 = arith.addf %359, %362 : vector<16x16xf32>
      %c33 = arith.constant 33 : index
      %364 = memref.load %arg3[%c33] : memref<98xf32, #tpu.memory_space<smem>>
      %c82 = arith.constant 82 : index
      %365 = memref.load %arg3[%c82] : memref<98xf32, #tpu.memory_space<smem>>
      %366 = vector.extract_strided_slice %311 {offsets = [0, 5], sizes = [16, 16], strides = [1, 1]} : vector<16x22xf32> to vector<16x16xf32>
      %367 = vector.broadcast %364 : f32 to vector<16x16xf32>
      %368 = arith.mulf %367, %366 : vector<16x16xf32>
      %369 = arith.addf %363, %368 : vector<16x16xf32>
      %370 = vector.extract_strided_slice %313 {offsets = [0, 5], sizes = [16, 16], strides = [1, 1]} : vector<16x22xf32> to vector<16x16xf32>
      %371 = vector.broadcast %365 : f32 to vector<16x16xf32>
      %372 = arith.mulf %371, %370 : vector<16x16xf32>
      %373 = arith.addf %369, %372 : vector<16x16xf32>
      %c34 = arith.constant 34 : index
      %374 = memref.load %arg3[%c34] : memref<98xf32, #tpu.memory_space<smem>>
      %c83 = arith.constant 83 : index
      %375 = memref.load %arg3[%c83] : memref<98xf32, #tpu.memory_space<smem>>
      %376 = vector.extract_strided_slice %311 {offsets = [0, 6], sizes = [16, 16], strides = [1, 1]} : vector<16x22xf32> to vector<16x16xf32>
      %377 = vector.broadcast %374 : f32 to vector<16x16xf32>
      %378 = arith.mulf %377, %376 : vector<16x16xf32>
      %379 = arith.addf %373, %378 : vector<16x16xf32>
      %380 = vector.extract_strided_slice %313 {offsets = [0, 6], sizes = [16, 16], strides = [1, 1]} : vector<16x22xf32> to vector<16x16xf32>
      %381 = vector.broadcast %375 : f32 to vector<16x16xf32>
      %382 = arith.mulf %381, %380 : vector<16x16xf32>
      %383 = arith.addf %379, %382 : vector<16x16xf32>
      %c0_40 = arith.constant 0 : index
      %c10_41 = arith.constant 10 : index
      %c125_42 = arith.constant 125 : index
      %384 = vector.load %arg7[%c0_40, %c10_41, %c125_42] : memref<2x27x147xf32, #tpu.memory_space<vmem>>, vector<1x16x22xf32>
      %385 = vector.shape_cast %384 : vector<1x16x22xf32> to vector<16x22xf32>
      %c1_43 = arith.constant 1 : index
      %c10_44 = arith.constant 10 : index
      %c125_45 = arith.constant 125 : index
      %386 = vector.load %arg7[%c1_43, %c10_44, %c125_45] : memref<2x27x147xf32, #tpu.memory_space<vmem>>, vector<1x16x22xf32>
      %387 = vector.shape_cast %386 : vector<1x16x22xf32> to vector<16x22xf32>
      %c35 = arith.constant 35 : index
      %388 = memref.load %arg3[%c35] : memref<98xf32, #tpu.memory_space<smem>>
      %c84 = arith.constant 84 : index
      %389 = memref.load %arg3[%c84] : memref<98xf32, #tpu.memory_space<smem>>
      %390 = vector.extract_strided_slice %385 {offsets = [0, 0], sizes = [16, 16], strides = [1, 1]} : vector<16x22xf32> to vector<16x16xf32>
      %391 = vector.broadcast %388 : f32 to vector<16x16xf32>
      %392 = arith.mulf %391, %390 : vector<16x16xf32>
      %393 = arith.addf %383, %392 : vector<16x16xf32>
      %394 = vector.extract_strided_slice %387 {offsets = [0, 0], sizes = [16, 16], strides = [1, 1]} : vector<16x22xf32> to vector<16x16xf32>
      %395 = vector.broadcast %389 : f32 to vector<16x16xf32>
      %396 = arith.mulf %395, %394 : vector<16x16xf32>
      %397 = arith.addf %393, %396 : vector<16x16xf32>
      %c36 = arith.constant 36 : index
      %398 = memref.load %arg3[%c36] : memref<98xf32, #tpu.memory_space<smem>>
      %c85 = arith.constant 85 : index
      %399 = memref.load %arg3[%c85] : memref<98xf32, #tpu.memory_space<smem>>
      %400 = vector.extract_strided_slice %385 {offsets = [0, 1], sizes = [16, 16], strides = [1, 1]} : vector<16x22xf32> to vector<16x16xf32>
      %401 = vector.broadcast %398 : f32 to vector<16x16xf32>
      %402 = arith.mulf %401, %400 : vector<16x16xf32>
      %403 = arith.addf %397, %402 : vector<16x16xf32>
      %404 = vector.extract_strided_slice %387 {offsets = [0, 1], sizes = [16, 16], strides = [1, 1]} : vector<16x22xf32> to vector<16x16xf32>
      %405 = vector.broadcast %399 : f32 to vector<16x16xf32>
      %406 = arith.mulf %405, %404 : vector<16x16xf32>
      %407 = arith.addf %403, %406 : vector<16x16xf32>
      %c37 = arith.constant 37 : index
      %408 = memref.load %arg3[%c37] : memref<98xf32, #tpu.memory_space<smem>>
      %c86 = arith.constant 86 : index
      %409 = memref.load %arg3[%c86] : memref<98xf32, #tpu.memory_space<smem>>
      %410 = vector.extract_strided_slice %385 {offsets = [0, 2], sizes = [16, 16], strides = [1, 1]} : vector<16x22xf32> to vector<16x16xf32>
      %411 = vector.broadcast %408 : f32 to vector<16x16xf32>
      %412 = arith.mulf %411, %410 : vector<16x16xf32>
      %413 = arith.addf %407, %412 : vector<16x16xf32>
      %414 = vector.extract_strided_slice %387 {offsets = [0, 2], sizes = [16, 16], strides = [1, 1]} : vector<16x22xf32> to vector<16x16xf32>
      %415 = vector.broadcast %409 : f32 to vector<16x16xf32>
      %416 = arith.mulf %415, %414 : vector<16x16xf32>
      %417 = arith.addf %413, %416 : vector<16x16xf32>
      %c38 = arith.constant 38 : index
      %418 = memref.load %arg3[%c38] : memref<98xf32, #tpu.memory_space<smem>>
      %c87 = arith.constant 87 : index
      %419 = memref.load %arg3[%c87] : memref<98xf32, #tpu.memory_space<smem>>
      %420 = vector.extract_strided_slice %385 {offsets = [0, 3], sizes = [16, 16], strides = [1, 1]} : vector<16x22xf32> to vector<16x16xf32>
      %421 = vector.broadcast %418 : f32 to vector<16x16xf32>
      %422 = arith.mulf %421, %420 : vector<16x16xf32>
      %423 = arith.addf %417, %422 : vector<16x16xf32>
      %424 = vector.extract_strided_slice %387 {offsets = [0, 3], sizes = [16, 16], strides = [1, 1]} : vector<16x22xf32> to vector<16x16xf32>
      %425 = vector.broadcast %419 : f32 to vector<16x16xf32>
      %426 = arith.mulf %425, %424 : vector<16x16xf32>
      %427 = arith.addf %423, %426 : vector<16x16xf32>
      %c39 = arith.constant 39 : index
      %428 = memref.load %arg3[%c39] : memref<98xf32, #tpu.memory_space<smem>>
      %c88 = arith.constant 88 : index
      %429 = memref.load %arg3[%c88] : memref<98xf32, #tpu.memory_space<smem>>
      %430 = vector.extract_strided_slice %385 {offsets = [0, 4], sizes = [16, 16], strides = [1, 1]} : vector<16x22xf32> to vector<16x16xf32>
      %431 = vector.broadcast %428 : f32 to vector<16x16xf32>
      %432 = arith.mulf %431, %430 : vector<16x16xf32>
      %433 = arith.addf %427, %432 : vector<16x16xf32>
      %434 = vector.extract_strided_slice %387 {offsets = [0, 4], sizes = [16, 16], strides = [1, 1]} : vector<16x22xf32> to vector<16x16xf32>
      %435 = vector.broadcast %429 : f32 to vector<16x16xf32>
      %436 = arith.mulf %435, %434 : vector<16x16xf32>
      %437 = arith.addf %433, %436 : vector<16x16xf32>
      %c40 = arith.constant 40 : index
      %438 = memref.load %arg3[%c40] : memref<98xf32, #tpu.memory_space<smem>>
      %c89 = arith.constant 89 : index
      %439 = memref.load %arg3[%c89] : memref<98xf32, #tpu.memory_space<smem>>
      %440 = vector.extract_strided_slice %385 {offsets = [0, 5], sizes = [16, 16], strides = [1, 1]} : vector<16x22xf32> to vector<16x16xf32>
      %441 = vector.broadcast %438 : f32 to vector<16x16xf32>
      %442 = arith.mulf %441, %440 : vector<16x16xf32>
      %443 = arith.addf %437, %442 : vector<16x16xf32>
      %444 = vector.extract_strided_slice %387 {offsets = [0, 5], sizes = [16, 16], strides = [1, 1]} : vector<16x22xf32> to vector<16x16xf32>
      %445 = vector.broadcast %439 : f32 to vector<16x16xf32>
      %446 = arith.mulf %445, %444 : vector<16x16xf32>
      %447 = arith.addf %443, %446 : vector<16x16xf32>
      %c41 = arith.constant 41 : index
      %448 = memref.load %arg3[%c41] : memref<98xf32, #tpu.memory_space<smem>>
      %c90 = arith.constant 90 : index
      %449 = memref.load %arg3[%c90] : memref<98xf32, #tpu.memory_space<smem>>
      %450 = vector.extract_strided_slice %385 {offsets = [0, 6], sizes = [16, 16], strides = [1, 1]} : vector<16x22xf32> to vector<16x16xf32>
      %451 = vector.broadcast %448 : f32 to vector<16x16xf32>
      %452 = arith.mulf %451, %450 : vector<16x16xf32>
      %453 = arith.addf %447, %452 : vector<16x16xf32>
      %454 = vector.extract_strided_slice %387 {offsets = [0, 6], sizes = [16, 16], strides = [1, 1]} : vector<16x22xf32> to vector<16x16xf32>
      %455 = vector.broadcast %449 : f32 to vector<16x16xf32>
      %456 = arith.mulf %455, %454 : vector<16x16xf32>
      %457 = arith.addf %453, %456 : vector<16x16xf32>
      %c0_46 = arith.constant 0 : index
      %c11_47 = arith.constant 11 : index
      %c125_48 = arith.constant 125 : index
      %458 = vector.load %arg7[%c0_46, %c11_47, %c125_48] : memref<2x27x147xf32, #tpu.memory_space<vmem>>, vector<1x16x22xf32>
      %459 = vector.shape_cast %458 : vector<1x16x22xf32> to vector<16x22xf32>
      %c1_49 = arith.constant 1 : index
      %c11_50 = arith.constant 11 : index
      %c125_51 = arith.constant 125 : index
      %460 = vector.load %arg7[%c1_49, %c11_50, %c125_51] : memref<2x27x147xf32, #tpu.memory_space<vmem>>, vector<1x16x22xf32>
      %461 = vector.shape_cast %460 : vector<1x16x22xf32> to vector<16x22xf32>
      %c42 = arith.constant 42 : index
      %462 = memref.load %arg3[%c42] : memref<98xf32, #tpu.memory_space<smem>>
      %c91 = arith.constant 91 : index
      %463 = memref.load %arg3[%c91] : memref<98xf32, #tpu.memory_space<smem>>
      %464 = vector.extract_strided_slice %459 {offsets = [0, 0], sizes = [16, 16], strides = [1, 1]} : vector<16x22xf32> to vector<16x16xf32>
      %465 = vector.broadcast %462 : f32 to vector<16x16xf32>
      %466 = arith.mulf %465, %464 : vector<16x16xf32>
      %467 = arith.addf %457, %466 : vector<16x16xf32>
      %468 = vector.extract_strided_slice %461 {offsets = [0, 0], sizes = [16, 16], strides = [1, 1]} : vector<16x22xf32> to vector<16x16xf32>
      %469 = vector.broadcast %463 : f32 to vector<16x16xf32>
      %470 = arith.mulf %469, %468 : vector<16x16xf32>
      %471 = arith.addf %467, %470 : vector<16x16xf32>
      %c43 = arith.constant 43 : index
      %472 = memref.load %arg3[%c43] : memref<98xf32, #tpu.memory_space<smem>>
      %c92 = arith.constant 92 : index
      %473 = memref.load %arg3[%c92] : memref<98xf32, #tpu.memory_space<smem>>
      %474 = vector.extract_strided_slice %459 {offsets = [0, 1], sizes = [16, 16], strides = [1, 1]} : vector<16x22xf32> to vector<16x16xf32>
      %475 = vector.broadcast %472 : f32 to vector<16x16xf32>
      %476 = arith.mulf %475, %474 : vector<16x16xf32>
      %477 = arith.addf %471, %476 : vector<16x16xf32>
      %478 = vector.extract_strided_slice %461 {offsets = [0, 1], sizes = [16, 16], strides = [1, 1]} : vector<16x22xf32> to vector<16x16xf32>
      %479 = vector.broadcast %473 : f32 to vector<16x16xf32>
      %480 = arith.mulf %479, %478 : vector<16x16xf32>
      %481 = arith.addf %477, %480 : vector<16x16xf32>
      %c44 = arith.constant 44 : index
      %482 = memref.load %arg3[%c44] : memref<98xf32, #tpu.memory_space<smem>>
      %c93 = arith.constant 93 : index
      %483 = memref.load %arg3[%c93] : memref<98xf32, #tpu.memory_space<smem>>
      %484 = vector.extract_strided_slice %459 {offsets = [0, 2], sizes = [16, 16], strides = [1, 1]} : vector<16x22xf32> to vector<16x16xf32>
      %485 = vector.broadcast %482 : f32 to vector<16x16xf32>
      %486 = arith.mulf %485, %484 : vector<16x16xf32>
      %487 = arith.addf %481, %486 : vector<16x16xf32>
      %488 = vector.extract_strided_slice %461 {offsets = [0, 2], sizes = [16, 16], strides = [1, 1]} : vector<16x22xf32> to vector<16x16xf32>
      %489 = vector.broadcast %483 : f32 to vector<16x16xf32>
      %490 = arith.mulf %489, %488 : vector<16x16xf32>
      %491 = arith.addf %487, %490 : vector<16x16xf32>
      %c45 = arith.constant 45 : index
      %492 = memref.load %arg3[%c45] : memref<98xf32, #tpu.memory_space<smem>>
      %c94 = arith.constant 94 : index
      %493 = memref.load %arg3[%c94] : memref<98xf32, #tpu.memory_space<smem>>
      %494 = vector.extract_strided_slice %459 {offsets = [0, 3], sizes = [16, 16], strides = [1, 1]} : vector<16x22xf32> to vector<16x16xf32>
      %495 = vector.broadcast %492 : f32 to vector<16x16xf32>
      %496 = arith.mulf %495, %494 : vector<16x16xf32>
      %497 = arith.addf %491, %496 : vector<16x16xf32>
      %498 = vector.extract_strided_slice %461 {offsets = [0, 3], sizes = [16, 16], strides = [1, 1]} : vector<16x22xf32> to vector<16x16xf32>
      %499 = vector.broadcast %493 : f32 to vector<16x16xf32>
      %500 = arith.mulf %499, %498 : vector<16x16xf32>
      %501 = arith.addf %497, %500 : vector<16x16xf32>
      %c46 = arith.constant 46 : index
      %502 = memref.load %arg3[%c46] : memref<98xf32, #tpu.memory_space<smem>>
      %c95 = arith.constant 95 : index
      %503 = memref.load %arg3[%c95] : memref<98xf32, #tpu.memory_space<smem>>
      %504 = vector.extract_strided_slice %459 {offsets = [0, 4], sizes = [16, 16], strides = [1, 1]} : vector<16x22xf32> to vector<16x16xf32>
      %505 = vector.broadcast %502 : f32 to vector<16x16xf32>
      %506 = arith.mulf %505, %504 : vector<16x16xf32>
      %507 = arith.addf %501, %506 : vector<16x16xf32>
      %508 = vector.extract_strided_slice %461 {offsets = [0, 4], sizes = [16, 16], strides = [1, 1]} : vector<16x22xf32> to vector<16x16xf32>
      %509 = vector.broadcast %503 : f32 to vector<16x16xf32>
      %510 = arith.mulf %509, %508 : vector<16x16xf32>
      %511 = arith.addf %507, %510 : vector<16x16xf32>
      %c47 = arith.constant 47 : index
      %512 = memref.load %arg3[%c47] : memref<98xf32, #tpu.memory_space<smem>>
      %c96 = arith.constant 96 : index
      %513 = memref.load %arg3[%c96] : memref<98xf32, #tpu.memory_space<smem>>
      %514 = vector.extract_strided_slice %459 {offsets = [0, 5], sizes = [16, 16], strides = [1, 1]} : vector<16x22xf32> to vector<16x16xf32>
      %515 = vector.broadcast %512 : f32 to vector<16x16xf32>
      %516 = arith.mulf %515, %514 : vector<16x16xf32>
      %517 = arith.addf %511, %516 : vector<16x16xf32>
      %518 = vector.extract_strided_slice %461 {offsets = [0, 5], sizes = [16, 16], strides = [1, 1]} : vector<16x22xf32> to vector<16x16xf32>
      %519 = vector.broadcast %513 : f32 to vector<16x16xf32>
      %520 = arith.mulf %519, %518 : vector<16x16xf32>
      %521 = arith.addf %517, %520 : vector<16x16xf32>
      %c48 = arith.constant 48 : index
      %522 = memref.load %arg3[%c48] : memref<98xf32, #tpu.memory_space<smem>>
      %c97 = arith.constant 97 : index
      %523 = memref.load %arg3[%c97] : memref<98xf32, #tpu.memory_space<smem>>
      %524 = vector.extract_strided_slice %459 {offsets = [0, 6], sizes = [16, 16], strides = [1, 1]} : vector<16x22xf32> to vector<16x16xf32>
      %525 = vector.broadcast %522 : f32 to vector<16x16xf32>
      %526 = arith.mulf %525, %524 : vector<16x16xf32>
      %527 = arith.addf %521, %526 : vector<16x16xf32>
      %528 = vector.extract_strided_slice %461 {offsets = [0, 6], sizes = [16, 16], strides = [1, 1]} : vector<16x22xf32> to vector<16x16xf32>
      %529 = vector.broadcast %523 : f32 to vector<16x16xf32>
      %530 = arith.mulf %529, %528 : vector<16x16xf32>
      %531 = arith.addf %527, %530 : vector<16x16xf32>
      %c0_52 = arith.constant 0 : index
      %c0_53 = arith.constant 0 : index
      %c0_54 = arith.constant 0 : index
      %532 = vector.load %arg4[%c0_52, %c0_53, %c0_54] : memref<1x16x16xf32, #tpu.memory_space<vmem>>, vector<1x16x16xf32>
      %533 = vector.shape_cast %532 : vector<1x16x16xf32> to vector<16x16xf32>
      %534 = vector.shape_cast %531 : vector<16x16xf32> to vector<1x16x16xf32>
      tpu.vector_store %arg4[%c0_52, %c0_53, %c0_54], %534 {strides = array<i32>} : memref<1x16x16xf32, #tpu.memory_space<vmem>>, vector<1x16x16xf32>,
      %535 = vector.shape_cast %531 : vector<16x16xf32> to vector<1x16x16xf32>
      %cst_55 = arith.constant dense<0.000000e+00> : vector<1xf32>
      %536 = vector.multi_reduction <add>, %535, %cst_55 [1, 2] : vector<1x16x16xf32> to vector<1xf32>
      %537 = vector.shape_cast %536 : vector<1xf32> to vector<1x1x1xf32>
      %538 = vector.extract %537[0, 0, 0] : f32 from vector<1x1x1xf32>
      %539 = vector.broadcast %538 : f32 to vector<1x1x1xf32>
      %c0_56 = arith.constant 0 : index
      %c0_57 = arith.constant 0 : index
      %c0_58 = arith.constant 0 : index
      %540 = vector.load %arg5[%c0_56, %c0_57, %c0_58] : memref<1x1x1xf32, #tpu.memory_space<vmem>>, vector<1x1x1xf32>
      tpu.vector_store %arg5[%c0_56, %c0_57, %c0_58], %539 {strides = array<i32>} : memref<1x1x1xf32, #tpu.memory_space<vmem>>, vector<1x1x1xf32>,
      %541 = arith.mulf %531, %531 : vector<16x16xf32>
      %542 = vector.shape_cast %541 : vector<16x16xf32> to vector<1x16x16xf32>
      %cst_59 = arith.constant dense<0.000000e+00> : vector<1xf32>
      %543 = vector.multi_reduction <add>, %542, %cst_59 [1, 2] : vector<1x16x16xf32> to vector<1xf32>
      %544 = vector.shape_cast %543 : vector<1xf32> to vector<1x1x1xf32>
      %545 = vector.extract %544[0, 0, 0] : f32 from vector<1x1x1xf32>
      %546 = vector.broadcast %545 : f32 to vector<1x1x1xf32>
      %c0_60 = arith.constant 0 : index
      %c0_61 = arith.constant 0 : index
      %c0_62 = arith.constant 0 : index
      %547 = vector.load %arg6[%c0_60, %c0_61, %c0_62] : memref<1x1x1xf32, #tpu.memory_space<vmem>>, vector<1x1x1xf32>
      tpu.vector_store %arg6[%c0_60, %c0_61, %c0_62], %546 {strides = array<i32>} : memref<1x1x1xf32, #tpu.memory_space<vmem>>, vector<1x1x1xf32>,
    } else {
    }
    return
  }
  func.func @transform_0(%arg0: i32, %arg1: i32) -> (i32, i32, i32, i32) {
    %c0_i32 = arith.constant 0 : i32
    %c0_i32_0 = arith.constant 0 : i32
    %c0_i32_1 = arith.constant 0 : i32
    return %arg0, %arg1, %c0_i32, %c0_i32_0 : i32, i32, i32, i32
  }
  func.func @transform_1(%arg0: i32, %arg1: i32) -> i32 {
    %c0_i32 = arith.constant 0 : i32
    %c0_i32_0 = arith.constant 0 : i32
    return %c0_i32 : i32
  }
  func.func @transform_2(%arg0: i32, %arg1: i32) -> (i32, i32, i32) {
    %c0_i32 = arith.constant 0 : i32
    %c0_i32_0 = arith.constant 0 : i32
    %c0_i32_1 = arith.constant 0 : i32
    return %arg0, %c0_i32, %c0_i32_0 : i32, i32, i32
  }
  func.func @transform_3(%arg0: i32, %arg1: i32) -> (i32, i32, i32) {
    %c0_i32 = arith.constant 0 : i32
    %c0_i32_0 = arith.constant 0 : i32
    %c0_i32_1 = arith.constant 0 : i32
    return %arg0, %c0_i32, %c0_i32_0 : i32, i32, i32
  }
  func.func @transform_4(%arg0: i32, %arg1: i32) -> (i32, i32, i32) {
    %c0_i32 = arith.constant 0 : i32
    %c0_i32_0 = arith.constant 0 : i32
    %c0_i32_1 = arith.constant 0 : i32
    return %arg0, %c0_i32, %c0_i32_0 : i32, i32, i32
  }
}

</mosaic_0001>

<bundles_post_ra>
// kernel: squeeze.2
= control target key start
LH: loop header
LB: loop body
LE: loop exit
PB: predicated region body
PF: predicated region fallthrough
CT: control target
= control target key end

     0   :  { %s59_s10 = smov 42   ;;  %s60_s11 = smov 28   ;;  %vm3_vm0 = vcmask 56320   ;;  %vm9_vm1 = vcmask 400720   ;;  %vm15_vm2 = vcmask 343320   ;;  %vm21_vm3 = vcmask 285920   ;;  %s99_s0 = inlined_call_operand.vmem [shape: f32[7,7], index: 0, kind: input, shape index: {}]   ;;  %s100_s1 = inlined_call_operand.vmem [shape: f32[49], index: 1, kind: output, shape index: {}]  }
   0x1   :  { %v47_v0 = vld [vmem:[%s99_s0 + $0x6] sm:$0x1]   ;;  %v49_v1 = vld [vmem:[%s99_s0 + $0x4] sm:$0x1]   ;;  %v48_v2 = vld [vmem:[%s99_s0 + $0x5] sm:$0x1]  }
   0x2   :  { %7 = vrot.lane.b32.xlu0 %v47_v0, %s59_s10  ;;  %19 = vrot.lane.b32.xlu1 %v49_v1, %s60_s11  ;;  %v50_v3 = vld [vmem:[%s99_s0 + $0x3] sm:$0x1]   ;;  %v2_v4 = vld [vmem:[%s99_s0] sm:$0x1]   ;;  %s61_s18 = smov 35   ;;  %s62_s19 = smov 21  }
   0x3   :  { %4 = vst.msk [vmem:[#allocation0] sm:$0x1] %vm3_vm0, %v2_v4   ;;  %v51_v5 = vld [vmem:[%s99_s0 + $0x2] sm:$0x1]   ;;  %v52_v6 = vld [vmem:[%s99_s0 + $0x1] sm:$0x1]  }
   0x4   :  { %s63_s0 = smov 14   ;;  %s64_s24 = smov 7   ;;  %vm27_vm4 = vcmask 228520   ;;  %vm33_vm5 = vcmask 171120   ;;  %vm39_vm6 = vcmask 113720  }
   0x6   :  { %13 = vrot.lane.b32.xlu0 %v48_v2, %s61_s18  ;;  %25 = vrot.lane.b32.xlu1 %v50_v3, %s62_s19 }
   0xa   :  { %31 = vrot.lane.b32.xlu0 %v51_v5, %s63_s0  ;;  %37 = vrot.lane.b32.xlu1 %v52_v6, %s64_s24 }
  0x74   :  { %v8_v7 = vpop.permute.xlu0 %7   ;;  %v20_v8 = vpop.permute.xlu1 %19  }
  0x75   :  { %10 = vst.msk [vmem:[#allocation0] sm:$0x1] %vm9_vm1, %v8_v7  }
  0x78   :  { %v14_v9 = vpop.permute.xlu0 %13   ;;  %v26_v10 = vpop.permute.xlu1 %25  }
  0x79   :  { %16 = vst.msk [vmem:[#allocation0] sm:$0x1] %vm15_vm2, %v14_v9  }
  0x7a   :  { %22 = vst.msk [vmem:[#allocation0] sm:$0x1] %vm21_vm3, %v20_v8  }
  0x7b   :  { %28 = vst.msk [vmem:[#allocation0] sm:$0x1] %vm27_vm4, %v26_v10  }
  0x7c   :  { %v32_v11 = vpop.permute.xlu0 %31   ;;  %v38_v12 = vpop.permute.xlu1 %37  }
  0x7d   :  { %34 = vst.msk [vmem:[#allocation0] sm:$0x1] %vm33_vm5, %v32_v11  }
  0x7e   :  { %40 = vst.msk [vmem:[#allocation0] sm:$0x1] %vm39_vm6, %v38_v12  }
  0x85   :  { %v44_v13 = vld [vmem:[#allocation0] sm:$0x1] }
  0x86   :  { %46 = vst [vmem:[%s100_s1] sm:$0x1] %v44_v13 }

// kernel: spatial_gate.3
= control target key start
LH: loop header
LB: loop body
LE: loop exit
PB: predicated region body
PF: predicated region fallthrough
CT: control target
= control target key end

     0   :  { %8 = vsyncpa [#allocation3], 0  ;;  %s503_s12 = smov 0   ;;  %s505_s13 = smov 0   ;;  %s565_s0 = inlined_call_operand.vmem [shape: f32[2,4,256], index: 0, kind: input, shape index: {}]   ;;  %s566_s1 = inlined_call_operand.vmem [shape: f32[2,1,256], index: 1, kind: input, shape index: {}]   ;;  %s567_s2 = inlined_call_operand.vmem [shape: f32[2], index: 2, kind: input, shape index: {}]   ;;  %s568_s3 = inlined_call_operand.vmem [shape: f32[2,4,256], index: 3, kind: output, shape index: {}]  }
   0x1   :  { %s507_s14 = smov 0  }
   0x2 LB: > { %s382_s15 = sadd.s32 4294967295, %s480_s14   ;;  %s26_s16 = sadd.s32 1, %s476_s13  ;;  %s480_s14 = sphi %s507_s14, %s14_s14   ;;  %s476_s13 = sphi %s505_s13, %s572_s13   ;;  %s472_s12 = sphi %s503_s12, %s571_s12  }
   0x3   : > { %p28_p0 = scmp.ge.s32.totalorder %s26_s16, 2  ;;  %p384_p1 = scmp.ge.s32.totalorder %s480_s14, 1 }
   0x4   : > { %p134_p2 = scmp.lt.s32.totalorder %s480_s14, 3  ;;  %p528_p4 = scmp.eq.s32.totalorder %s382_s15, 0 }
   0x5   : > { %s574_s16 = smov (%p28_p0, %s26_s16), 0  ;;  %s147_s21 = sshll.u32 %s567_s2, 4  ;;  %s148_s21 = int_to_ptr.vmem [resolvable:$true] %s147_s21 }
   0x6   : > { %p524_p3 = pnand %p384_p1, %p134_p2  ;;  %s439_s22 = scalar_lea.vmem %s148_s21, 16 }
   0x7   : > { %p440_p7 = scmp.ne.s32.totalorder %s148_s21, %s439_s22  ;;  %p447_p11 = scmp.lt.s32.totalorder %s148_s21, %s148_s21 }
   0x8   : > { %p404_p5 = pneg %p524_p3  ;;  %p448_p12 = scmp.lt.s32.totalorder %s439_s22, %s439_s22 }
   0xa   : > { %p405_p6 = pnand %p528_p4, %p404_p5  ;;  %p449_p13 = por %p448_p12, %p447_p11 }
   0xc   : > { %p441_p8 = pneg %p405_p6 }
   0xe   : > { %p442_p9 = pnand %p441_p8, %p440_p7 }
  0x10   : > { %p443_p10 = pneg %p442_p9 }
  0x12   : > { %p450_p0 = pnand %p449_p13, %p443_p10 }
  0x14   : > { %453 = shalt.err (!%p450_p0)
}
  0x15   : > { %s482_s23 = smov [#allocation2]   ;;  %179 = sbr.rel (%p524_p3) target bundleno = 75 (0x4b), region = 32 }
  0x16   : > { %407 = dma.vmem_to_smem (!%p405_p6), %s148_s21, 16, %s482_s23, [#allocation3]  }
  0x1c   : > { %467 = dma.done.wait (%p528_p4), [#allocation3], 16  }
  0x1d   : > { %469 = vsyncadd (%p528_p4), [#allocation3], 4294967280 }
  0x1e   : > { %185 = sfence }
  0x1f   : > { %p216_p1 = scmp.lt.s32.totalorder %s472_s12, 1  ;;  %s238_s24 = sld [smem:[#allocation2]]  ;;  %v253_v8 = vlaneseq }
  0x20   : > { %s394_s25 = sld [smem:[#allocation2 + $0x1]] }
  0x21   : > { %s576_s12 = smov (!%p216_p1, %s472_s12), 1  ;;  %v254_v9 = vshrl.u32 %v253_v8, 7 }
  0x22   : > { %s391_s26 = sshll.u32 %s576_s12, 1  ;;  %s398_s30 = sshll.u32 %s576_s12, 3 }
  0x23   : > { %s228_s29 = scalar_lea.vmem %s566_s1, %s391_s26  ;;  %v255_v10 = vsub.s32 0, %v254_v9  ;;  %v259_v11 = vsub.s32 1, %v254_v9  ;;  %s224_s6 = scalar_lea.vmem %s565_s0, %s398_s30 }
  0x24   : > { %v239_v0 = vld [vmem:[%s228_s29] sm:$0x3]  ;;  %s237_s9 = scalar_lea.vmem %s568_s3, %s398_s30 }
  0x25   : > { %v240_v1 = vstv %s238_s24  ;;  %v251_v15 = vld [vmem:[%s224_s6] sm:$0xff] }
  0x26   : > { %v241_v2 = vmul.f32 %v240_v1, %v239_v0  ;;  %v243_v3 = vstv %s394_s25 }
  0x28   : > { %v244_v4 = vadd.f32 %v243_v3, %v241_v2 }
  0x2a   : > { %v395_v5 = vmul.f32 -1.442695, %v244_v4 }
  0x2c   : > { %435 = vpow2.f32 %v395_v5 }
  0x36   : > { %v436_v6 = vpop.eup %435 }
  0x37   : > { %v248_v7 = vadd.f32 1.0, %v436_v6 }
  0x39   : > { %437 = vrcp.f32 %v248_v7 }
  0x43   : > { %v438_v12 = vpop.eup %437 }
  0x44   : > { %v256_v13 = vrot.slane %v438_v12, %v255_v10  ;;  %v260_v14 = vrot.slane %v438_v12, %v259_v11 }
  0x46   : > { %v261_v16 = vcombine.low %v256_v13, %v260_v14 }
  0x48   : > { %v263_v17 = vmul.f32 %v261_v16, %v251_v15 }
  0x4a   : > { %264 = vst [vmem:[%s237_s9] sm:$0xff] %v263_v17 }
  0x4b PF: > { %s14_s14 = sadd.s32 1, %s480_s14   ;;  %s571_s12 = smov %s476_s13 }
  0x4c   : > { %p11_p2 = scmp.ge.s32.totalorder %s14_s14, 4   ;;  %s572_s13 = smov %s574_s16 }
  0x4e   :  { %13 = sbr.rel (!%p11_p2) target bundleno = 2 (0x2), region = 70 }
  0x55   :  { %294 = vsyncpa [#allocation3], 1 }
  0x56   :  { %296 = vsyncpa [#allocation3 + $0x1], 1 }

// kernel: spatial_gate.2
= control target key start
LH: loop header
LB: loop body
LE: loop exit
PB: predicated region body
PF: predicated region fallthrough
CT: control target
= control target key end

     0   :  { %10 = vsyncpa [#allocation4], 0  ;;  %s4234_s15 = smov 0   ;;  %s4236_s16 = smov 0   ;;  %s7246_s0 = inlined_call_operand.vmem [shape: f32[2,4,16,16], index: 0, kind: input, shape index: {}]   ;;  %s7247_s1 = inlined_call_operand.vmem [shape: f32[98], index: 1, kind: input, shape index: {}]   ;;  %s7248_s2 = inlined_call_operand.vmem [shape: f32[2,16,16], index: 2, kind: output, shape index: {0}]   ;;  %s7249_s3 = inlined_call_operand.vmem [shape: f32[2,1,1], index: 3, kind: output, shape index: {1}]   ;;  %s7250_s4 = inlined_call_operand.vmem [shape: f32[2,1,1], index: 4, kind: output, shape index: {2}]  }
   0x1   :  { %s4238_s17 = smov 0  }
   0x2 LB: > { %s3959_s18 = sadd.s32 4294967295, %s4198_s17   ;;  %s28_s19 = sadd.s32 1, %s4194_s16  ;;  %s4198_s17 = sphi %s4238_s17, %s16_s17   ;;  %s4194_s16 = sphi %s4236_s16, %s7781_s16   ;;  %s4190_s15 = sphi %s4234_s15, %s7780_s15  }
   0x3   : > { %p30_p0 = scmp.ge.s32.totalorder %s28_s19, 2  ;;  %p3961_p1 = scmp.ge.s32.totalorder %s4198_s17, 1 }
   0x4   : > { %p160_p2 = scmp.lt.s32.totalorder %s4198_s17, 3  ;;  %p4259_p4 = scmp.eq.s32.totalorder %s3959_s18, 0 }
   0x5   : > { %s7783_s19 = smov (%p30_p0, %s28_s19), 0  ;;  %s173_s24 = sshll.u32 %s7247_s1, 4  ;;  %s174_s24 = int_to_ptr.vmem [resolvable:$true] %s173_s24 }
   0x6   : > { %p4255_p3 = pnand %p3961_p1, %p160_p2  ;;  %s4157_s25 = scalar_lea.vmem %s174_s24, 16 }
   0x7   : > { %p4158_p7 = scmp.ne.s32.totalorder %s174_s24, %s4157_s25  ;;  %p4165_p11 = scmp.lt.s32.totalorder %s174_s24, %s174_s24 }
   0x8   : > { %p4079_p5 = pneg %p4255_p3  ;;  %p4166_p12 = scmp.lt.s32.totalorder %s4157_s25, %s4157_s25 }
   0xa   : > { %p4080_p6 = pnand %p4259_p4, %p4079_p5  ;;  %p4167_p13 = por %p4166_p12, %p4165_p11 }
   0xc   : > { %p4159_p8 = pneg %p4080_p6 }
   0xe   : > { %p4160_p9 = pnand %p4159_p8, %p4158_p7 }
  0x10   : > { %p4161_p10 = pneg %p4160_p9 }
  0x12   : > { %p4168_p0 = pnand %p4167_p13, %p4161_p10 }
  0x14   : > { %4171 = shalt.err (!%p4168_p0)
}
  0x15   : > { %s4200_s26 = smov [#allocation3]   ;;  %200 = sbr.rel (%p4255_p3) target bundleno = 1172 (0x494), region = 28 }
  0x16   : > { %4082 = dma.vmem_to_smem (!%p4080_p6), %s174_s24, 16, %s4200_s26, [#allocation4]  }
  0x1c   : > { %4185 = dma.done.wait (%p4259_p4), [#allocation4], 16  }
  0x1d   : > { %4187 = vsyncadd (%p4259_p4), [#allocation4], 4294967280 }
  0x1e   : > { %206 = sfence }
  0x1f   : > { %s3971_s27 = sld [smem:[#allocation3 + $0x1]]  ;;  %vm302_vm0 = vcmask 154624   ;;  %v4201_v0 = vmov 0.0   ;;  %s3972_s28 = sld [smem:[#allocation3 + $0x32]]  ;;  %vm268_vm1 = vcmask 130048   ;;  %vm758_vm2 = vcmask 1046528  }
  0x20   : > { %304 = vst [vmem:[#allocation2 + $0x10] sm:$0xff] %v4201_v0  ;;  %301 = vst [vmem:[#allocation2] sm:$0xff] %v4201_v0  ;;  %p239_p1 = scmp.lt.s32.totalorder %s4190_s15, 1  ;;  %s3973_s29 = sld [smem:[#allocation3 + $0x2]]  ;;  %vm412_vm3 = vcmask 1039360   ;;  %vm495_vm4 = vcmask 1031168  }
  0x21   : > { %306 = vst [vmem:[#allocation2 + $0x20] sm:$0xff] %v4201_v0  ;;  %308 = vst [vmem:[#allocation2 + $0x30] sm:$0x7] %v4201_v0  ;;  %s4202_s8 = smov 127   ;;  %s4203_s9 = smov 126   ;;  %vm1267_vm5 = vcmask 1045504  }
  0x22   : > { %311 = vst [vmem:[#allocation2 + $0x40] sm:$0xff] %v4201_v0  ;;  %313 = vst [vmem:[#allocation2 + $0x50] sm:$0xff] %v4201_v0  ;;  %s7785_s15 = smov (!%p239_p1, %s4190_s15), 1  ;;  %s357_s10 = sld [smem:[#allocation3]]  ;;  %vm309_vm6 = vcmask 149504   ;;  %vm1768_vm7 = vcmask 1044480  }
  0x23   : > { %315 = vst [vmem:[#allocation2 + $0x60] sm:$0xff] %v4201_v0  ;;  %317 = vst [vmem:[#allocation2 + $0x70] sm:$0x7] %v4201_v0  ;;  %s4069_s30 = sshll.u32 %s7785_s15, 6  ;;  %s3970_s11 = sld [smem:[#allocation3 + $0x31]]  ;;  %vm2205_vm8 = vcmask 1043456  }
  0x24   : > { %305 = vst.msk [vmem:[#allocation2 + $0x18] sm:$0xff] %vm302_vm0, %v4201_v0  ;;  %312 = vst.msk [vmem:[#allocation2 + $0x48] sm:$0xff] %vm302_vm0, %v4201_v0  ;;  %s4295_s7 = scalar_lea.vmem %s7246_s0, %s4069_s30  ;;  %s3974_s12 = sld [smem:[#allocation3 + $0x33]]  ;;  %vm2714_vm9 = vcmask 1042432   ;;  %vm3223_vm10 = vcmask 1041408   ;;  %vm3727_vm11 = vcmask 23552  }
  0x25   : > { %314 = vst.msk [vmem:[#allocation2 + $0x58] sm:$0xff] %vm302_vm0, %v4201_v0  ;;  %303 = vst.msk [vmem:[#allocation2 + $0x8] sm:$0xff] %vm302_vm0, %v4201_v0  ;;  %v4286_v1 = vstv %s3971_s27  ;;  %v4290_v3 = vstv %s3972_s28  ;;  %v260_v6 = vld [vmem:[%s4295_s7] sm:$0xff]  ;;  %v262_v10 = vld [vmem:[%s4295_s7 + $0x10] sm:$0xff]  ;;  %s3975_s13 = sld [smem:[#allocation3 + $0x3]]  ;;  %s3976_s14 = sld [smem:[#allocation3 + $0x34]] }
  0x26   : > { %307 = vst.msk [vmem:[#allocation2 + $0x28] sm:$0xff] %vm302_vm0, %v4201_v0  ;;  %316 = vst.msk [vmem:[#allocation2 + $0x68] sm:$0xff] %vm302_vm0, %v4201_v0  ;;  %v390_v2 = vmul.f32 0.0, %v4286_v1  ;;  %v4302_v7 = vstv %s3973_s29  ;;  %v264_v11 = vld [vmem:[%s4295_s7 + $0x20] sm:$0xff]  ;;  %v266_v12 = vld [vmem:[%s4295_s7 + $0x30] sm:$0xff]  ;;  %v269_v13 = vsel %vm268_vm1, %v260_v6, -inf }
  0x27   : > { %v4297_v4 = vld [vmem:[#allocation2] sm:$0xe0]  ;;  %v270_v14 = vsel %vm268_vm1, %v262_v10, -inf  ;;  %v271_v15 = vsel %vm268_vm1, %v264_v11, -inf  ;;  %v273_v16 = vsel %vm268_vm1, %v266_v12, -inf  ;;  %v283_v17 = vsel %vm268_vm1, %v260_v6, 0.0 }
  0x28   : > { %404 = vrot.lane.b32.xlu1 %v390_v2, %s4202_s8  ;;  %v388_v8 = vmul.f32 %v4286_v1, %v4297_v4  ;;  %v272_v19 = vmax.f32 %v269_v13, %v271_v15  ;;  %v274_v20 = vmax.f32 %v270_v14, %v273_v16  ;;  %v284_v21 = vsel %vm268_vm1, %v262_v10, 0.0  ;;  %v4322_v23 = vld [vmem:[#allocation2 + $0x20] sm:$0x1f]  ;;  %v261_v26 = vld [vmem:[%s4295_s7 + $0x8] sm:$0xff]  ;;  %v263_v27 = vld [vmem:[%s4295_s7 + $0x18] sm:$0xff]  ;;  %s3993_s18 = sld [smem:[#allocation3 + $0xc]] }
  0x29   : > { %v286_v22 = vsel %vm268_vm1, %v264_v11, 0.0  ;;  %v285_v24 = vadd.f32 %v284_v21, %v283_v17  ;;  %v265_v28 = vld [vmem:[%s4295_s7 + $0x28] sm:$0xff]  ;;  %v288_v30 = vsel %vm268_vm1, %v266_v12, 0.0  ;;  %v267_v32 = vld [vmem:[%s4295_s7 + $0x38] sm:$0xff]  ;;  %v276_v33 = vsel %vm268_vm1, %v261_v26, -inf  ;;  %s3977_s20 = sld [smem:[#allocation3 + $0x4]] }
  0x2a   : > { %400 = vrot.lane.b32.xlu0 %v388_v8, %s4202_s8  ;;  %v275_v29 = vmax.f32 %v272_v19, %v274_v20  ;;  %v277_v35 = vsel %vm268_vm1, %v263_v27, -inf  ;;  %v278_v36 = vsel %vm268_vm1, %v265_v28, -inf  ;;  %v280_v37 = vsel %vm268_vm1, %v267_v32, -inf  ;;  %v351_v42 = vld [vmem:[#allocation2 + $0x40] sm:$0xe0]  ;;  %s3994_s21 = sld [smem:[#allocation3 + $0x3d]] }
  0x2b   : > { %v4299_v5 = vld [vmem:[#allocation2 + $0x48] sm:$0xe0]  ;;  %v287_v34 = vadd.f32 %v286_v22, %v285_v24  ;;  %v392_v38 = vmul.f32 %v4286_v1, %v4322_v23  ;;  %v279_v39 = vmax.f32 %v276_v33, %v278_v36  ;;  %v281_v40 = vmax.f32 %v277_v35, %v280_v37  ;;  %v355_v55 = vld [vmem:[#allocation2 + $0x60] sm:$0x1f]  ;;  %s3995_s22 = sld [smem:[#allocation3 + $0xd]]  ;;  %s3996_s23 = sld [smem:[#allocation3 + $0x3e]] }
  0x2c   : > { %v430_v9 = vmul.f32 %v4290_v3, %v4299_v5  ;;  %v4317_v18 = vld [vmem:[#allocation2 + $0x8] sm:$0xe0]  ;;  %319 = vst.msk [vmem:[#allocation2 + $0x18] sm:$0xff] %vm268_vm1, %v275_v29  ;;  %v290_v43 = vsel %vm268_vm1, %v261_v26, 0.0  ;;  %v291_v44 = vsel %vm268_vm1, %v263_v27, 0.0  ;;  %v293_v45 = vsel %vm268_vm1, %v265_v28, 0.0 }
  0x2d   : > { %v389_v25 = vmul.f32 %v4286_v1, %v4317_v18  ;;  %v472_v31 = vmul.f32 %v4302_v7, %v4317_v18  ;;  %v289_v41 = vadd.f32 %v288_v30, %v287_v34  ;;  %v282_v46 = vmax.f32 %v279_v39, %v281_v40  ;;  %s4204_s24 = smov 125   ;;  %v4438_v39 = vld [vmem:[#allocation2 + $0x48] sm:$0xc0]  ;;  %s4445_s25 = sld [smem:[#allocation3 + $0x35]] }
  0x2e   : > { %443 = vrot.lane.b32.xlu1 %v430_v9, %s4202_s8  ;;  %v292_v47 = vadd.f32 %v291_v44, %v290_v43  ;;  %v295_v48 = vsel %vm268_vm1, %v267_v32, 0.0  ;;  %v429_v49 = vmul.f32 %v4290_v3, %v351_v42  ;;  %v431_v54 = vmul.f32 0.0, %v4290_v3  ;;  %v4430_v32 = vld [vmem:[#allocation2 + $0x8] sm:$0xc0]  ;;  %s3979_s26 = sld [smem:[#allocation3 + $0x5]]  ;;  %s4205_s27 = smov 124  }
  0x2f   : > { %402 = vrot.lane.b32.xlu0 %v389_v25, %s4202_s8  ;;  %322 = vst.msk [vmem:[#allocation2 + $0x58] sm:$0xff] %vm268_vm1, %v289_v41  ;;  %320 = vst.msk [vmem:[#allocation2 + $0x28] sm:$0xff] %vm268_vm1, %v282_v46  ;;  %v433_v59 = vmul.f32 %v4290_v3, %v355_v55  ;;  %v471_v62 = vmul.f32 %v4302_v7, %v4297_v4  ;;  %v4375_v63 = vstv %s357_s10  ;;  %v4389_v9 = vstv %s3970_s11  ;;  %s3980_s28 = sld [smem:[#allocation3 + $0x36]]  ;;  %s3983_s30 = sld [smem:[#allocation3 + $0x7]] }
  0x30   : > { %v294_v50 = vadd.f32 %v293_v45, %v292_v47  ;;  %v360_v2 = vmul.f32 %v4375_v63, %v4297_v4  ;;  %v361_v8 = vmul.f32 %v4375_v63, %v4317_v18  ;;  %v373_v10 = vmul.f32 %v4389_v9, %v351_v42  ;;  %s3981_s29 = sld [smem:[#allocation3 + $0x6]]  ;;  %s3984_s5 = sld [smem:[#allocation3 + $0x38]] }
  0x31   : > { %v374_v4 = vmul.f32 %v4389_v9, %v4299_v5  ;;  %v511_v11 = vstv %s3974_s12  ;;  %v364_v16 = vmul.f32 %v4375_v63, %v4322_v23  ;;  %v377_v20 = vmul.f32 %v4389_v9, %v355_v55  ;;  %s4206_s6 = smov 123   ;;  %s4525_s7 = sld [smem:[#allocation3 + $0x8]] }
  0x32   : > { %485 = vrot.lane.b32.xlu1 %v472_v31, %s4203_s9  ;;  %v296_v51 = vadd.f32 %v295_v48, %v294_v50  ;;  %v4397_v12 = vadd.f32 %v373_v10, %v360_v2  ;;  %v512_v15 = vmul.f32 %v511_v11, %v351_v42  ;;  %v513_v17 = vmul.f32 %v511_v11, %v4299_v5  ;;  %s4531_s10 = sld [smem:[#allocation3 + $0x37]]  ;;  %s4207_s11 = smov 122  }
  0x33   : > { %408 = vrot.lane.b32.xlu0 %v392_v38, %s4202_s8  ;;  %v4351_v52 = vld [vmem:[#allocation2 + $0x18] sm:$0xff]  ;;  %v4402_v14 = vadd.f32 %v374_v4, %v361_v8  ;;  %v514_v21 = vmul.f32 0.0, %v511_v11  ;;  %v4415_v22 = vadd.f32 %v377_v20, %v364_v16  ;;  %v516_v25 = vmul.f32 %v511_v11, %v355_v55  ;;  %s3986_s12 = sld [smem:[#allocation3 + $0x39]] }
  0x34   : > { %v391_v53 = vmul.f32 %v4286_v1, %v4351_v52  ;;  %323 = vst.msk [vmem:[#allocation2 + $0x68] sm:$0xff] %vm268_vm1, %v296_v51  ;;  %v474_v6 = vmul.f32 %v4302_v7, %v4351_v52  ;;  %v553_v26 = vstv %s3975_s13  ;;  %v575_v30 = vstv %s3976_s14  ;;  %s3987_s13 = sld [smem:[#allocation3 + $0x9]]  ;;  %s3988_s14 = sld [smem:[#allocation3 + $0x3a]] }
  0x35   : > { %v554_v28 = vmul.f32 %v553_v26, %v4317_v18  ;;  %v555_v29 = vmul.f32 %v553_v26, %v4351_v52  ;;  %v1134_v33 = vstv %s3993_s18  ;;  %v576_v37 = vmul.f32 %v575_v30, %v4299_v5  ;;  %s3989_s18 = sld [smem:[#allocation3 + $0xa]] }
  0x36   : > { %406 = vrot.lane.b32.xlu1 %v391_v53, %s4202_s8  ;;  %v4359_v56 = vld [vmem:[#allocation2 + $0x58] sm:$0xff]  ;;  %v4361_v57 = vld [vmem:[#allocation2 + $0x28] sm:$0x1f]  ;;  %v1135_v35 = vmul.f32 %v1134_v33, %v4430_v32  ;;  %v1136_v36 = vmul.f32 %v1134_v33, %v4351_v52  ;;  %v599_v38 = vstv %s3977_s20  ;;  %v4443_v41 = vstv %s3994_s21  ;;  %s3990_s20 = sld [smem:[#allocation3 + $0x3b]] }
  0x37   : > { %441 = vrot.lane.b32.xlu0 %v429_v49, %s4202_s8  ;;  %v393_v58 = vmul.f32 %v4286_v1, %v4361_v57  ;;  %v432_v60 = vmul.f32 %v4290_v3, %v4359_v56  ;;  %v473_v1 = vmul.f32 0.0, %v4302_v7  ;;  %v476_v13 = vmul.f32 %v4302_v7, %v4361_v57  ;;  %v4432_v34 = vld [vmem:[#allocation2 + $0x28] sm:$0x3f]  ;;  %s3991_s21 = sld [smem:[#allocation3 + $0xb]] }
  0x38   : > { %v365_v19 = vmul.f32 %v4375_v63, %v4361_v57  ;;  %v556_v31 = vmul.f32 %v553_v26, %v4361_v57  ;;  %v4441_v40 = vmul.f32 %v1134_v33, %v4432_v34  ;;  %v1141_v42 = vrot.slane %v1135_v35, 1 }
  0x39   : > { %v1142_v43 = vrot.slane %v1136_v36, 1  ;;  %v1162_v44 = vmul.f32 %v4443_v41, %v4438_v39  ;;  %v4451_v45 = vmul.f32 %v4443_v41, %v4359_v56  ;;  %v577_v46 = vmul.f32 %v575_v30, %v4359_v56  ;;  %v4522_v36 = vld [vmem:[#allocation2] sm:$0xc0] }
  0x3a   : > { %410 = vrot.lane.b32.xlu1 %v393_v58, %s4202_s8  ;;  %v7258_v47 = vrot.slane %v4441_v40, 1  ;;  %v1190_v48 = vstv %s3995_s22  ;;  %v1217_v49 = vstv %s3996_s23  ;;  %s3992_s22 = sld [smem:[#allocation3 + $0x3c]]  ;;  %s3999_s23 = sld [smem:[#allocation3 + $0xf]]  ;;  %vm3734_vm12 = vcmask 130053  }
  0x3b   : > { %445 = vrot.lane.b32.xlu0 %v431_v54, %s4202_s8  ;;  %v4370_v61 = vld [vmem:[#allocation2 + $0x68] sm:$0x1f]  ;;  %v4457_v50 = vsel %vm758_vm2, %v1141_v42, %v1142_v43  ;;  %v1168_v51 = vrot.slane %v1162_v44, 1  ;;  %v7257_v53 = vrot.slane %v4451_v45, 1  ;;  %v1191_v54 = vmul.f32 %v1190_v48, %v4430_v32 }
  0x3c   : > { %v434_v0 = vmul.f32 %v4290_v3, %v4370_v61  ;;  %v475_v3 = vmul.f32 %v4302_v7, %v4322_v23  ;;  %v378_v7 = vmul.f32 %v4389_v9, %v4370_v61  ;;  %v515_v23 = vmul.f32 %v511_v11, %v4359_v56 }
  0x3d   : > { %v517_v27 = vmul.f32 %v511_v11, %v4370_v61  ;;  %v578_v55 = vmul.f32 %v575_v30, %v4370_v61  ;;  %v4466_v58 = vsel %vm758_vm2, %v1142_v43, %v7258_v47  ;;  %v1219_v2 = vmul.f32 %v1217_v49, %v4359_v56 }
  0x3e   : > { %447 = vrot.lane.b32.xlu1 %v432_v60, %s4202_s8  ;;  %v4417_v24 = vadd.f32 %v378_v7, %v365_v19  ;;  %v4470_v60 = vmul.f32 %v1190_v48, %v4432_v34  ;;  %v621_v19 = vstv %s4445_s25  ;;  %v602_v7 = vmul.f32 %v599_v38, %v4361_v57  ;;  %s4856_s25 = sld [smem:[#allocation3 + $0x40]] }
  0x3f   : > { %449 = vrot.lane.b32.xlu0 %v433_v59, %s4202_s8  ;;  %v1192_v59 = vmul.f32 %v1190_v48, %v4351_v52  ;;  %v1225_v11 = vrot.slane %v1219_v2, 1  ;;  %v623_v26 = vmul.f32 %v621_v19, %v4359_v56  ;;  %v691_v48 = vstv %s3981_s29  ;;  %s4003_s29 = sld [smem:[#allocation3 + $0x11]] }
  0x40   : > { %v7256_v10 = vrot.slane %v4470_v60, 1  ;;  %vm3737_vm13 = vcmask 126976   ;;  %vm3774_vm14 = vcmask 0  }
  0x41   : > { %v1198_v8 = vrot.slane %v1192_v59, 1 }
  0x42   : > { %451 = vrot.lane.b32.xlu1 %v434_v0, %s4202_s8  ;;  %v1197_v0 = vrot.slane %v1191_v54, 1 }
  0x43   : > { %483 = vrot.lane.b32.xlu0 %v471_v62, %s4203_s9  ;;  %v4475_v62 = vsel %vm758_vm2, %v1168_v51, %v7257_v53  ;;  %v4492_v16 = vsel %vm758_vm2, %v1198_v8, %v7256_v10  ;;  %v4534_v51 = vld [vmem:[#allocation2 + $0x40] sm:$0xc0] }
  0x46   : > { %489 = vrot.lane.b32.xlu1 %v474_v6, %s4203_s9  ;;  %v600_v6 = vmul.f32 %v599_v38, %v4317_v18 }
  0x47   : > { %487 = vrot.lane.b32.xlu0 %v473_v1, %s4203_s9  ;;  %v1218_v1 = vmul.f32 %v1217_v49, %v4438_v39 }
  0x49   : > { %v1224_v4 = vrot.slane %v1218_v1, 1 }
  0x4a   : > { %493 = vrot.lane.b32.xlu1 %v476_v13, %s4203_s9  ;;  %v601_v13 = vmul.f32 %v599_v38, %v4351_v52 }
  0x4b   : > { %491 = vrot.lane.b32.xlu0 %v475_v3, %s4203_s9  ;;  %v4482_v3 = vld [vmem:[#allocation2 + $0x68] sm:$0x3f]  ;;  %v4499_v20 = vsel %vm758_vm2, %v1224_v4, %v1225_v11 }
  0x4e   : > { %526 = vrot.lane.b32.xlu1 %v513_v17, %s4203_s9  ;;  %v4495_v17 = vmul.f32 %v1217_v49, %v4482_v3  ;;  %v781_v49 = vstv %s3984_s5  ;;  %s4005_s5 = sld [smem:[#allocation3 + $0x12]] }
  0x4f   : > { %524 = vrot.lane.b32.xlu0 %v512_v15, %s4203_s9  ;;  %v4487_v15 = vsel %vm758_vm2, %v1197_v0, %v1198_v8  ;;  %v782_v1 = vmul.f32 %v781_v49, %v4534_v51  ;;  %v783_v2 = vmul.f32 %v781_v49, %v4438_v39  ;;  %v785_v8 = vmul.f32 %v781_v49, %v4359_v56 }
  0x52   : > { %530 = vrot.lane.b32.xlu1 %v515_v23, %s4203_s9  ;;  %v622_v23 = vmul.f32 %v621_v19, %v4299_v5 }
  0x53   : > { %528 = vrot.lane.b32.xlu0 %v514_v21, %s4203_s9  ;;  %v7255_v21 = vrot.slane %v4495_v17, 1 }
  0x56   : > { %534 = vrot.lane.b32.xlu1 %v517_v27, %s4203_s9  ;;  %v645_v27 = vstv %s3979_s26  ;;  %s4936_s26 = sld [smem:[#allocation3 + $0x10]] }
  0x57   : > { %532 = vrot.lane.b32.xlu0 %v516_v25, %s4203_s9  ;;  %v4509_v25 = vsel %vm758_vm2, %v1225_v11, %v7255_v21  ;;  %v647_v30 = vmul.f32 %v645_v27, %v4351_v52  ;;  %v648_v33 = vmul.f32 %v645_v27, %v4361_v57 }
  0x5a   : > { %562 = vrot.lane.b32.xlu1 %v555_v29, %s4204_s24  ;;  %v646_v29 = vmul.f32 %v645_v27, %v4317_v18  ;;  %v798_v27 = vrot.slane %v785_v8, 1 }
  0x5b   : > { %560 = vrot.lane.b32.xlu0 %v554_v28, %s4204_s24  ;;  %v624_v28 = vmul.f32 %v621_v19, %v4370_v61  ;;  %v4547_v19 = vld [vmem:[#allocation2 + $0x20] sm:$0x3f] }
  0x5e   : > { %582 = vrot.lane.b32.xlu1 %v576_v37, %s4204_s24  ;;  %v745_v37 = vstv %s3983_s30  ;;  %s4004_s30 = sld [smem:[#allocation3 + $0x42]] }
  0x5f   : > { %564 = vrot.lane.b32.xlu0 %v556_v31, %s4204_s24  ;;  %v667_v31 = vstv %s3980_s28  ;;  %v746_v38 = vmul.f32 %v745_v37, %v4522_v36  ;;  %v747_v42 = vmul.f32 %v745_v37, %v4430_v32  ;;  %v748_v43 = vmul.f32 0.0, %v745_v37  ;;  %s4982_s28 = sld [smem:[#allocation3 + $0x41]] }
  0x60   : > { %v668_v35 = vmul.f32 %v667_v31, %v4299_v5  ;;  %v749_v44 = vmul.f32 %v745_v37, %v4351_v52  ;;  %v670_v4 = vmul.f32 %v667_v31, %v4370_v61 }
  0x61   : > { %v759_v54 = vrot.slane %v746_v38, 1  ;;  %v762_v59 = vrot.slane %v747_v42, 1  ;;  %v4569_v42 = vmul.f32 %v781_v49, %v4482_v3 }
  0x62   : > { %586 = vrot.lane.b32.xlu1 %v578_v55, %s4204_s24  ;;  %v760_v55 = vrot.slane %v748_v43, 1  ;;  %v763_v0 = vrot.slane %v749_v44, 1  ;;  %v818_v43 = vstv %s4525_s7  ;;  %s4006_s7 = sld [smem:[#allocation3 + $0x43]] }
  0x63   : > { %584 = vrot.lane.b32.xlu0 %v577_v46, %s4204_s24  ;;  %v669_v46 = vmul.f32 %v667_v31, %v4359_v56  ;;  %v4557_v31 = vmul.f32 %v745_v37, %v4432_v34  ;;  %7403 = vst [vmem:[#allocation9_spill] sm:$0xff] %v4569_v42  ;;  %v821_v8 = vmul.f32 0.0, %v818_v43 }
  0x64   : > { %v4542_v11 = vsel %vm758_vm2, %v759_v54, %v760_v55 }
  0x65   : > { %7401 = vst [vmem:[#allocation7_spill] sm:$0xff] %v4557_v31  ;;  %v7253_v44 = vrot.slane %v4557_v31, 1 }
  0x66   : > { %608 = vrot.lane.b32.xlu1 %v601_v13, %s4205_s27  ;;  %v4545_v13 = vsel %vm758_vm2, %v762_v59, %v763_v0  ;;  %v7251_v59 = vrot.slane %v4569_v42, 1 }
  0x67   : > { %606 = vrot.lane.b32.xlu0 %v600_v6, %s4205_s27  ;;  %v784_v6 = vmul.f32 0.0, %v781_v49 }
  0x6a   : > { %628 = vrot.lane.b32.xlu1 %v622_v23, %s4205_s27  ;;  %v795_v23 = vrot.slane %v784_v6, 1  ;;  %v819_v6 = vmul.f32 %v818_v43, %v4522_v36 }
  0x6b   : > { %610 = vrot.lane.b32.xlu0 %v602_v7, %s4205_s27  ;;  %v794_v7 = vrot.slane %v782_v1, 1 }
  0x6e   : > { %632 = vrot.lane.b32.xlu1 %v624_v28, %s4205_s27  ;;  %v692_v28 = vmul.f32 %v691_v48, %v4317_v18  ;;  %v693_v18 = vmul.f32 %v691_v48, %v4351_v52 }
  0x6f   : > { %630 = vrot.lane.b32.xlu0 %v623_v26, %s4205_s27  ;;  %v797_v26 = vrot.slane %v783_v2, 1  ;;  %v4589_v2 = vsel %vm758_vm2, %v763_v0, %v7253_v44  ;;  %v822_v0 = vmul.f32 %v818_v43, %v4351_v52 }
  0x72   : > { %654 = vrot.lane.b32.xlu1 %v647_v30, %s4206_s6  ;;  %v4554_v30 = vmul.f32 %v745_v37, %v4547_v19 }
  0x73   : > { %652 = vrot.lane.b32.xlu0 %v646_v29, %s4206_s6  ;;  %v4551_v29 = vld [vmem:[#allocation2 + $0x60] sm:$0x3f] }
  0x74   : > { %7400 = vst [vmem:[#allocation6_spill] sm:$0xff] %v4554_v30  ;;  %v4566_v38 = vmul.f32 %v781_v49, %v4551_v29  ;;  %v7254_v37 = vrot.slane %v4554_v30, 1  ;;  %v694_v49 = vmul.f32 %v691_v48, %v4361_v57  ;;  %v4600_v57 = vsel %vm758_vm2, %v798_v27, %v7251_v59 }
  0x75   : > { %7405 = vst [vmem:[#allocation11_spill] sm:$0xff] %v4600_v57  ;;  %v835_v59 = vrot.slane %v822_v0, 1 }
  0x76   : > { %674 = vrot.lane.b32.xlu1 %v668_v35, %s4206_s6  ;;  %v4563_v35 = vsel %vm758_vm2, %v797_v26, %v798_v27  ;;  %7402 = vst [vmem:[#allocation8_spill] sm:$0xff] %v4566_v38  ;;  %v7252_v54 = vrot.slane %v4566_v38, 1  ;;  %v4584_v1 = vsel %vm758_vm2, %v760_v55, %v7254_v37  ;;  %v820_v55 = vmul.f32 %v818_v43, %v4430_v32 }
  0x77   : > { %656 = vrot.lane.b32.xlu0 %v648_v33, %s4206_s6  ;;  %v4560_v33 = vsel %vm758_vm2, %v794_v7, %v795_v23  ;;  %v832_v26 = vrot.slane %v821_v8, 1 }
  0x7a   : > { %678 = vrot.lane.b32.xlu1 %v670_v4, %s4206_s6  ;;  %v4595_v4 = vsel %vm758_vm2, %v795_v23, %v7252_v54  ;;  %v831_v23 = vrot.slane %v819_v6, 1 }
  0x7b   : > { %676 = vrot.lane.b32.xlu0 %v669_v46, %s4206_s6  ;;  %v713_v46 = vstv %s4531_s10  ;;  %7404 = vst [vmem:[#allocation10_spill] sm:$0xff] %v4595_v4  ;;  %s4007_s10 = sld [smem:[#allocation3 + $0x13]] }
  0x7c   : > { %v714_v48 = vmul.f32 %v713_v46, %v4299_v5  ;;  %v715_v7 = vmul.f32 %v713_v46, %v4359_v56  ;;  %v716_v27 = vmul.f32 %v713_v46, %v4370_v61  ;;  %v824_v5 = vmul.f32 %v818_v43, %v4432_v34 }
  0x7d   : > { %v833_v54 = vsel %vm758_vm2, %v831_v23, %v832_v26 }
  0x7e   : > { %700 = vrot.lane.b32.xlu1 %v693_v18, %s4207_s11  ;;  %v834_v18 = vrot.slane %v820_v55, 1  ;;  %v839_v8 = vrot.slane %v824_v5, 1  ;;  %v920_v5 = vstv %s3987_s13  ;;  %s4009_s13 = sld [smem:[#allocation3 + $0x14]] }
  0x7f   : > { %698 = vrot.lane.b32.xlu0 %v692_v28, %s4207_s11  ;;  %v823_v28 = vmul.f32 %v818_v43, %v4547_v19 }
  0x80   : > { %v836_v6 = vsel %vm758_vm2, %v834_v18, %v835_v59  ;;  %v840_v43 = vsel %vm758_vm2, %v835_v59, %v839_v8 }
  0x81   : > { %v837_v44 = vrot.slane %v823_v28, 1 }
  0x82   : > { %720 = vrot.lane.b32.xlu1 %v714_v48, %s4207_s11 }
  0x83   : > { %702 = vrot.lane.b32.xlu0 %v694_v49, %s4207_s11  ;;  %v868_v49 = vstv %s3986_s12  ;;  %v838_v48 = vsel %vm758_vm2, %v832_v26, %v837_v44  ;;  %s4008_s12 = sld [smem:[#allocation3 + $0x44]] }
  0x84   : > { %v869_v61 = vmul.f32 %v868_v49, %v4534_v51  ;;  %v871_v46 = vmul.f32 0.0, %v868_v49  ;;  %v870_v55 = vmul.f32 %v868_v49, %v4438_v39  ;;  %v872_v0 = vmul.f32 %v868_v49, %v4359_v56 }
  0x86   : > { %724 = vrot.lane.b32.xlu1 %v716_v27, %s4207_s11  ;;  %v882_v23 = vrot.slane %v871_v46, 1  ;;  %v884_v26 = vrot.slane %v870_v55, 1  ;;  %v885_v28 = vrot.slane %v872_v0, 1  ;;  %v874_v27 = vmul.f32 %v868_v49, %v4482_v3 }
  0x87   : > { %722 = vrot.lane.b32.xlu0 %v715_v7, %s4207_s11  ;;  %v881_v7 = vrot.slane %v869_v61, 1  ;;  %v921_v46 = vmul.f32 %v920_v5, %v4522_v36 }
  0x89   : > { %v883_v59 = vsel %vm758_vm2, %v881_v7, %v882_v23  ;;  %v933_v0 = vrot.slane %v921_v46, 1 }
  0x8a   : > { %843 = vrot.lane.b32.xlu1 %v836_v6, %s4202_s8  ;;  %v886_v6 = vsel %vm758_vm2, %v884_v26, %v885_v28 }
  0x8b   : > { %841 = vrot.lane.b32.xlu0 %v833_v54, %s4202_s8  ;;  %v873_v54 = vmul.f32 %v868_v49, %v4551_v29  ;;  %v922_v49 = vmul.f32 %v920_v5, %v4430_v32 }
  0x8d   : > { %v887_v18 = vrot.slane %v873_v54, 1  ;;  %v936_v54 = vrot.slane %v922_v49, 1 }
  0x8e   : > { %847 = vrot.lane.b32.xlu1 %v840_v43, %s4202_s8  ;;  %v923_v43 = vmul.f32 0.0, %v920_v5 }
  0x8f   : > { %845 = vrot.lane.b32.xlu0 %v838_v48, %s4202_s8  ;;  %v889_v48 = vrot.slane %v874_v27, 1  ;;  %v888_v61 = vsel %vm758_vm2, %v882_v23, %v887_v18  ;;  %v925_v23 = vmul.f32 %v920_v5, %v4547_v19  ;;  %v970_v19 = vstv %s3988_s14  ;;  %s4010_s14 = sld [smem:[#allocation3 + $0x45]] }
  0x90   : > { %v934_v7 = vrot.slane %v923_v43, 1  ;;  %v976_v37 = vmul.f32 %v970_v19, %v4482_v3 }
  0x92   : > { %851 = vrot.lane.b32.xlu1 %v839_v8, %s4202_s8  ;;  %v924_v8 = vmul.f32 %v920_v5, %v4351_v52 }
  0x93   : > { %849 = vrot.lane.b32.xlu0 %v837_v44, %s4202_s8  ;;  %v890_v44 = vsel %vm758_vm2, %v885_v28, %v889_v48  ;;  %v926_v28 = vmul.f32 %v920_v5, %v4432_v34  ;;  %v971_v5 = vmul.f32 %v970_v19, %v4534_v51  ;;  %v975_v51 = vmul.f32 %v970_v19, %v4551_v29 }
  0x94   : > { %v937_v26 = vrot.slane %v924_v8, 1  ;;  %v1022_v29 = vstv %s3989_s18  ;;  %s4013_s18 = sld [smem:[#allocation3 + $0x16]] }
  0x95   : > { %v941_v43 = vrot.slane %v926_v28, 1 }
  0x96   : > { %893 = vrot.lane.b32.xlu1 %v886_v6, %s4202_s8  ;;  %v939_v6 = vrot.slane %v925_v23, 1  ;;  %v938_v46 = vsel %vm758_vm2, %v936_v54, %v937_v26  ;;  %v974_v23 = vmul.f32 %v970_v19, %v4359_v56  ;;  %v983_v54 = vrot.slane %v971_v5, 1 }
  0x97   : > { %891 = vrot.lane.b32.xlu0 %v883_v59, %s4202_s8  ;;  %v935_v59 = vsel %vm758_vm2, %v933_v0, %v934_v7  ;;  %v972_v0 = vmul.f32 %v970_v19, %v4438_v39 }
  0x9a   : > { %v4639_v55 = vpop.permute.xlu1 %404  ;;  %897 = vrot.lane.b32.xlu1 %v890_v44, %s4202_s8  ;;  %v940_v44 = vsel %vm758_vm2, %v934_v7, %v939_v6 }
  0x9b   : > { %895 = vrot.lane.b32.xlu0 %v888_v61, %s4202_s8 }
  0x9c   : > { %v4643_v36 = vpop.permute.xlu0 %400 }
  0x9e   : > { %901 = vrot.lane.b32.xlu1 %v889_v48, %s4202_s8  ;;  %v942_v48 = vsel %vm758_vm2, %v937_v26, %v941_v43 }
  0x9f   : > { %899 = vrot.lane.b32.xlu0 %v887_v18, %s4202_s8  ;;  %v973_v18 = vmul.f32 0.0, %v970_v19 }
  0xa0   : > { %v4647_v27 = vpop.permute.xlu1 %443 }
  0xa1   : > { %v4651_v61 = vpop.permute.xlu0 %402  ;;  %v984_v7 = vrot.slane %v973_v18, 1 }
  0xa2   : > { %945 = vrot.lane.b32.xlu1 %v938_v46, %s4203_s9  ;;  %v987_v46 = vrot.slane %v974_v23, 1  ;;  %v1024_v23 = vmul.f32 %v1022_v29, %v4351_v52 }
  0xa3   : > { %943 = vrot.lane.b32.xlu0 %v935_v59, %s4203_s9  ;;  %v986_v59 = vrot.slane %v972_v0, 1  ;;  %v985_v26 = vsel %vm758_vm2, %v983_v54, %v984_v7 }
  0xa4   : > { %v4658_v49 = vpop.permute.xlu1 %485 }
  0xa5   : > { %v4660_v8 = vpop.permute.xlu0 %408  ;;  %v988_v18 = vsel %vm758_vm2, %v986_v59, %v987_v46  ;;  %v1049_v59 = vstv %s3990_s20  ;;  %s4014_s20 = sld [smem:[#allocation3 + $0x47]] }
  0xa6   : > { %949 = vrot.lane.b32.xlu1 %v942_v48, %s4203_s9  ;;  %v991_v48 = vrot.slane %v976_v37, 1  ;;  %v1051_v47 = vmul.f32 %v1049_v59, %v4359_v56 }
  0xa7   : > { %947 = vrot.lane.b32.xlu0 %v940_v44, %s4203_s9  ;;  %v989_v44 = vrot.slane %v975_v51, 1  ;;  %v1025_v51 = vmul.f32 %v1022_v29, %v4432_v34 }
  0xa8   : > { %v4671_v21 = vpop.permute.xlu1 %406 }
  0xa9   : > { %v4668_v28 = vpop.permute.xlu0 %441  ;;  %v990_v19 = vsel %vm758_vm2, %v984_v7, %v989_v44  ;;  %v1030_v7 = vrot.slane %v1024_v23, 1  ;;  %v1032_v53 = vrot.slane %v1025_v51, 1  ;;  %v1057_v51 = vrot.slane %v1051_v47, 1 }
  0xaa   : > { %953 = vrot.lane.b32.xlu1 %v941_v43, %s4203_s9  ;;  %v992_v43 = vsel %vm758_vm2, %v987_v46, %v991_v48  ;;  %v1105_v47 = vstv %s3992_s22  ;;  %s4016_s22 = sld [smem:[#allocation3 + $0x48]] }
  0xab   : > { %951 = vrot.lane.b32.xlu0 %v939_v6, %s4203_s9  ;;  %v1023_v6 = vmul.f32 %v1022_v29, %v4430_v32  ;;  %v1052_v29 = vmul.f32 %v1049_v59, %v4482_v3  ;;  %v1033_v23 = vsel %vm758_vm2, %v1030_v7, %v1032_v53  ;;  %v1106_v57 = vmul.f32 %v1105_v47, %v4438_v39 }
  0xac   : > { %v4679_v0 = vpop.permute.xlu1 %410 }
  0xad   : > { %v4676_v5 = vpop.permute.xlu0 %445  ;;  %v1059_v31 = vrot.slane %v1052_v29, 1 }
  0xae   : > { %995 = vrot.lane.b32.xlu1 %v988_v18, %s4203_s9  ;;  %v1050_v18 = vmul.f32 %v1049_v59, %v4438_v39 }
  0xaf   : > { %993 = vrot.lane.b32.xlu0 %v985_v26, %s4203_s9  ;;  %v1029_v26 = vrot.slane %v1023_v6, 1  ;;  %v1078_v6 = vstv %s3991_s21  ;;  %s4015_s21 = sld [smem:[#allocation3 + $0x17]] }
  0xb0   : > { %v4690_v37 = vpop.permute.xlu1 %447  ;;  %v1081_v30 = vmul.f32 %v1078_v6, %v4432_v34 }
  0xb1   : > { %v4686_v54 = vpop.permute.xlu0 %449  ;;  %v1031_v46 = vsel %vm758_vm2, %v1029_v26, %v1030_v7  ;;  %v1080_v26 = vmul.f32 %v1078_v6, %v4351_v52 }
  0xb2   : > { %999 = vrot.lane.b32.xlu1 %v992_v43, %s4203_s9  ;;  %v1056_v43 = vrot.slane %v1050_v18, 1  ;;  %v1060_v18 = vsel %vm758_vm2, %v1057_v51, %v1059_v31 }
  0xb3   : > { %997 = vrot.lane.b32.xlu0 %v990_v19, %s4203_s9  ;;  %v1086_v29 = vrot.slane %v1080_v26, 1 }
  0xb4   : > { %v4698_v42 = vpop.permute.xlu1 %451 }
  0xb5   : > { %v4694_v10 = vpop.permute.xlu0 %483 }
  0xb6   : > { %1003 = vrot.lane.b32.xlu1 %v991_v48, %s4203_s9  ;;  %v1058_v48 = vsel %vm758_vm2, %v1056_v43, %v1057_v51  ;;  %v1107_v43 = vmul.f32 %v1105_v47, %v4359_v56 }
  0xb7   : > { %1001 = vrot.lane.b32.xlu0 %v989_v44, %s4203_s9  ;;  %v1079_v44 = vmul.f32 %v1078_v6, %v4430_v32 }
  0xb8   : > { %v4707_v38 = vpop.permute.xlu1 %489 }
  0xb9   : > { %v4704_v19 = vpop.permute.xlu0 %487 }
  0xba   : > { %1036 = vrot.lane.b32.xlu1 %v1033_v23, %s4204_s24  ;;  %v1088_v23 = vrot.slane %v1081_v30, 1  ;;  %v1113_v30 = vrot.slane %v1107_v43, 1 }
  0xbb   : > { %1034 = vrot.lane.b32.xlu0 %v1031_v46, %s4204_s24  ;;  %v1085_v46 = vrot.slane %v1079_v44, 1  ;;  %v1112_v44 = vrot.slane %v1106_v57, 1 }
  0xbc   : > { %v4717_v7 = vpop.permute.xlu1 %493  ;;  %v1089_v51 = vsel %vm758_vm2, %v1086_v29, %v1088_v23 }
  0xbd   : > { %v4713_v59 = vpop.permute.xlu0 %491  ;;  %v1087_v34 = vsel %vm758_vm2, %v1085_v46, %v1086_v29  ;;  %v1164_v29 = vmul.f32 %v4443_v41, %v4482_v3 }
  0xbe   : > { %1061 = vrot.lane.b32.xlu1 %v1058_v48, %s4204_s24 }
  0xbf   : > { %1038 = vrot.lane.b32.xlu0 %v1032_v53, %s4204_s24  ;;  %v1108_v53 = vmul.f32 %v1105_v47, %v4482_v3  ;;  %v423_v3 = vadd.f32 %v4651_v61, %v4402_v14  ;;  %v453_v14 = vsel %vm412_vm3, %v4668_v28, %v4647_v27  ;;  %v414_v28 = vsel %vm412_vm3, %v4639_v55, %v4671_v21 }
  0xc0   : > { %v4726_v4 = vpop.permute.xlu1 %526 }
  0xc1   : > { %v4722_v32 = vpop.permute.xlu0 %524  ;;  %v1115_v39 = vrot.slane %v1108_v53, 1 }
  0xc2   : > { %1065 = vrot.lane.b32.xlu1 %v1059_v31, %s4204_s24 }
  0xc3   : > { %1063 = vrot.lane.b32.xlu0 %v1060_v18, %s4204_s24  ;;  %v1114_v18 = vsel %vm758_vm2, %v1112_v44, %v1113_v30  ;;  %v1116_v31 = vsel %vm758_vm2, %v1113_v30, %v1115_v39  ;;  %v362_v44 = vmul.f32 0.0, %v4375_v63  ;;  %v375_v30 = vmul.f32 0.0, %v4389_v9 }
  0xc4   : > { %v4735_v26 = vpop.permute.xlu1 %530 }
  0xc5   : > { %v4732_v6 = vpop.permute.xlu0 %528 }
  0xc6   : > { %1092 = vrot.lane.b32.xlu1 %v1089_v51, %s4205_s27  ;;  %v1171_v51 = vrot.slane %v1164_v29, 1 }
  0xc7   : > { %1090 = vrot.lane.b32.xlu0 %v1087_v34, %s4205_s27  ;;  %v363_v34 = vmul.f32 %v4375_v63, %v4351_v52  ;;  %v7407_v63 = vrot.slane %v4451_v45, 1  ;;  %v463_v45 = vadd.f32 %v4647_v27, %v423_v3  ;;  %v415_v3 = vsel %vm412_vm3, %v4660_v8, %v4679_v0 }
  0xc8   : > { %v4742_v47 = vpop.permute.xlu1 %534 }
  0xc9   : > { %v4739_v48 = vpop.permute.xlu0 %532 }
  0xca   : > { %1117 = vrot.lane.b32.xlu1 %v1114_v18, %s4205_s27  ;;  %v4775_v18 = vld [vmem:[#allocation2 + $0x8] sm:$0x80] }
  0xcb   : > { %1094 = vrot.lane.b32.xlu0 %v1088_v23, %s4205_s27  ;;  %v376_v23 = vmul.f32 %v4389_v9, %v4359_v56  ;;  %v1172_v9 = vsel %vm758_vm2, %v7407_v63, %v1171_v51 }
  0xcc   : > { %v4749_v46 = vpop.permute.xlu1 %562 }
  0xcd   : > { %v4747_v57 = vpop.permute.xlu0 %560 }
  0xce   : > { %1121 = vrot.lane.b32.xlu1 %v1115_v39, %s4205_s27  ;;  %v4773_v39 = vstv %s3999_s23  ;;  %s4017_s23 = sld [smem:[#allocation3 + $0x18]] }
  0xcf   : > { %1119 = vrot.lane.b32.xlu0 %v1116_v31, %s4205_s27  ;;  %v382_v31 = vadd.f32 %v376_v23, %v363_v34  ;;  %v381_v34 = vadd.f32 %v375_v30, %v362_v44  ;;  %v4823_v55 = vmul.f32 0.0, %v4773_v39  ;;  %v427_v44 = vadd.f32 %v4679_v0, %v4417_v24 }
  0xd0   : > { %v4761_v53 = vpop.permute.xlu1 %582  ;;  %v536_v30 = vsel %vm495_vm4, %v4722_v32, %v4726_v4  ;;  %v455_v24 = vsel %vm412_vm3, %v4686_v54, %v4698_v42  ;;  %v497_v32 = vsel %vm495_vm4, %v4704_v19, %v4707_v38 }
  0xd1   : > { %v4755_v43 = vpop.permute.xlu0 %564 }
  0xd2   : > { %1148 = vrot.lane.b32.xlu1 %v4466_v58, %s4206_s6  ;;  %v7406_v58 = vrot.slane %v4441_v40, 1  ;;  %v4799_v40 = vmul.f32 %v4773_v39, %v4775_v18 }
  0xd3   : > { %1146 = vrot.lane.b32.xlu0 %v4457_v50, %s4206_s6  ;;  %v413_v50 = vsel %vm412_vm3, %v4643_v36, %v4651_v61  ;;  %v4795_v61 = vld [vmem:[#allocation2] sm:$0x80] }
  0xd4   : > { %v4780_v29 = vpop.permute.xlu1 %586  ;;  %v422_v23 = vadd.f32 %v413_v50, %v4397_v12  ;;  %v4815_v12 = vmul.f32 %v4773_v39, %v4351_v52  ;;  %v454_v52 = vsel %vm412_vm3, %v4676_v5, %v4690_v37  ;;  %v1343_v50 = vrot.slane %v4799_v40, 2 }
  0xd5   : > { %v4767_v41 = vpop.permute.xlu0 %584  ;;  %v426_v5 = vadd.f32 %v415_v3, %v4415_v22  ;;  %v498_v22 = vsel %vm495_vm4, %v4713_v59, %v4717_v7  ;;  %v538_v59 = vsel %vm495_vm4, %v4739_v48, %v4742_v47 }
  0xd6   : > { %1173 = vrot.lane.b32.xlu1 %v4475_v62, %s4206_s6  ;;  %v496_v62 = vsel %vm495_vm4, %v4694_v10, %v4658_v49  ;;  %v462_v27 = vadd.f32 %v453_v14, %v422_v23  ;;  %v4825_v10 = vld [vmem:[#allocation2 + $0x20] sm:$0x7f] }
  0xd7   : > { %1150 = vrot.lane.b32.xlu0 %v7406_v58, %s4206_s6  ;;  %v425_v58 = vadd.f32 %v4671_v21, %v382_v31  ;;  %v1328_v21 = vmul.f32 %v4773_v39, %v4795_v61  ;;  %v506_v31 = vadd.f32 %v4658_v49, %v463_v45  ;;  %v4854_v49 = vmul.f32 %v4773_v39, %v4825_v10 }
  0xd8   : > { %v4810_v63 = vpop.permute.xlu1 %608  ;;  %v505_v14 = vadd.f32 %v496_v62, %v462_v27  ;;  %v466_v19 = vadd.f32 %v455_v24, %v426_v5  ;;  %v467_v45 = vadd.f32 %v4698_v42, %v427_v44  ;;  %v4876_v62 = vld [vmem:[#allocation2 + $0x28] sm:$0x7f]  ;;  %v1341_v44 = vrot.slane %v4823_v55, 2  ;;  %v4905_v5 = vld [vmem:[#allocation2 + $0x48] sm:$0x80] }
  0xd9   : > { %v4793_v36 = vpop.permute.xlu0 %606  ;;  %v465_v0 = vadd.f32 %v4690_v37, %v425_v58  ;;  %v546_v23 = vadd.f32 %v4726_v4, %v506_v31  ;;  %v1340_v3 = vrot.slane %v1328_v21, 2  ;;  %v4893_v21 = vmul.f32 %v4773_v39, %v4876_v62 }
  0xda   : > { %1177 = vrot.lane.b32.xlu1 %v1171_v51, %s4206_s6  ;;  %v545_v37 = vadd.f32 %v536_v30, %v505_v14  ;;  %v510_v27 = vadd.f32 %v4717_v7, %v467_v45  ;;  %v1377_v39 = vstv %s4856_s25  ;;  %s4018_s25 = sld [smem:[#allocation3 + $0x49]] }
  0xdb   : > { %1175 = vrot.lane.b32.xlu0 %v1172_v9, %s4206_s6  ;;  %v424_v9 = vadd.f32 %v414_v28, %v381_v34  ;;  %v508_v34 = vadd.f32 %v4707_v38, %v465_v0  ;;  %v570_v42 = vadd.f32 %v4747_v57, %v546_v23  ;;  %v509_v38 = vadd.f32 %v498_v22, %v466_v19  ;;  %v4927_v19 = vld [vmem:[#allocation2 + $0x60] sm:$0x7f] }
  0xdc   : > { %v4848_v51 = vpop.permute.xlu1 %628  ;;  %v569_v4 = vadd.f32 %v4747_v57, %v545_v37  ;;  %v1344_v57 = vrot.slane %v4815_v12, 2  ;;  %v550_v31 = vadd.f32 %v4742_v47, %v510_v27  ;;  %v1342_v24 = vsel %vm1267_vm5, %v1340_v3, %v1341_v44 }
  0xdd   : > { %v4836_v8 = vpop.permute.xlu0 %610  ;;  %v464_v54 = vadd.f32 %v454_v52, %v424_v9  ;;  %v548_v48 = vadd.f32 %v4735_v26, %v508_v34  ;;  %v549_v30 = vadd.f32 %v538_v59, %v509_v38  ;;  %v592_v9 = vadd.f32 %v4761_v53, %v570_v42 }
  0xde   : > { %1204 = vrot.lane.b32.xlu1 %v4492_v16, %s4207_s11  ;;  %v7408_v16 = vrot.slane %v4470_v60, 1  ;;  %v1346_v60 = vrot.slane %v4854_v49, 2  ;;  %v591_v12 = vadd.f32 %v4761_v53, %v569_v4  ;;  %v574_v14 = vadd.f32 %v4755_v43, %v550_v31 }
  0xdf   : > { %1202 = vrot.lane.b32.xlu0 %v4487_v15, %s4207_s11  ;;  %v537_v15 = vsel %vm495_vm4, %v4732_v6, %v4735_v26  ;;  %v507_v58 = vadd.f32 %v497_v32, %v464_v54  ;;  %v572_v26 = vadd.f32 %v4749_v46, %v548_v48  ;;  %v573_v47 = vadd.f32 %v4755_v43, %v549_v30  ;;  %v4911_v54 = vld [vmem:[#allocation2 + $0x40] sm:$0x80]  ;;  %v4951_v48 = vld [vmem:[#allocation2 + $0x68] sm:$0x7f] }
  0xe0   : > { %v4879_v6 = vpop.permute.xlu1 %632  ;;  %v615_v32 = vadd.f32 %v4793_v36, %v591_v12  ;;  %v616_v53 = vadd.f32 %v4793_v36, %v592_v9  ;;  %v7409_v43 = vrot.slane %v4495_v17, 1  ;;  %v1348_v22 = vrot.slane %v4893_v21, 2 }
  0xe1   : > { %v4869_v28 = vpop.permute.xlu0 %630  ;;  %v547_v52 = vadd.f32 %v537_v15, %v507_v58  ;;  %v1345_v37 = vsel %vm1267_vm5, %v1343_v50, %v1344_v57  ;;  %v1379_v23 = vmul.f32 %v1377_v39, %v4905_v5  ;;  %v4925_v36 = vmul.f32 %v1377_v39, %v4359_v56  ;;  %v4933_v50 = vld [vmem:[#allocation2 + $0x10] sm:$0xff] }
  0xe2   : > { %1229 = vrot.lane.b32.xlu1 %v4499_v20, %s4207_s11  ;;  %v595_v17 = vadd.f32 %v4780_v29, %v573_v47  ;;  %v596_v45 = vadd.f32 %v4780_v29, %v574_v14  ;;  %v1378_v40 = vmul.f32 %v1377_v39, %v4911_v54  ;;  %v1380_v15 = vmul.f32 %v4933_v50, %v1377_v39 }
  0xe3   : > { %1206 = vrot.lane.b32.xlu0 %v7408_v16, %s4207_s11  ;;  %v571_v55 = vadd.f32 %v4749_v46, %v547_v52  ;;  %v594_v46 = vadd.f32 %v4767_v41, %v572_v26  ;;  %v637_v59 = vadd.f32 %v4848_v51, %v615_v32  ;;  %v638_v4 = vadd.f32 %v4848_v51, %v616_v53 }
  0xe4   : > { %v655_v20 = vpop.permute.xlu1 %654  ;;  %v619_v29 = vadd.f32 %v4836_v8, %v595_v17  ;;  %v620_v42 = vadd.f32 %v4836_v8, %v596_v45  ;;  %v1349_v27 = vsel %vm1267_vm5, %v1344_v57, %v1348_v22  ;;  %v4947_v16 = vmul.f32 %v1377_v39, %v4927_v19  ;;  %310 = vst.msk [vmem:[#allocation2 + $0x38] sm:$0x7] %vm309_vm6, %v4933_v50 }
  0xe5   : > { %v653_v7 = vpop.permute.xlu0 %652  ;;  %v593_v0 = vadd.f32 %v4767_v41, %v571_v55  ;;  %v1347_v41 = vsel %vm1267_vm5, %v1341_v44, %v1346_v60  ;;  %v618_v58 = vadd.f32 %v4810_v63, %v594_v46  ;;  %v1390_v8 = vrot.slane %v1378_v40, 2  ;;  %318 = vst.msk [vmem:[#allocation2 + $0x78] sm:$0x7] %vm309_vm6, %v4933_v50 }
  0xe6   : > { %1233 = vrot.lane.b32.xlu1 %v7409_v43, %s4207_s11  ;;  %v661_v44 = vadd.f32 %v653_v7, %v637_v59  ;;  %v662_v52 = vadd.f32 %v653_v7, %v638_v4  ;;  %v1391_v30 = vrot.slane %v1380_v15, 2  ;;  %v1393_v31 = vrot.slane %v1379_v23, 2 }
  0xe7   : > { %1231 = vrot.lane.b32.xlu0 %v4509_v25, %s4207_s11  ;;  %v617_v56 = vadd.f32 %v4810_v63, %v593_v0  ;;  %v640_v63 = vadd.f32 %v4869_v28, %v618_v58  ;;  %v1394_v21 = vrot.slane %v4925_v36, 2  ;;  %v641_v57 = vadd.f32 %v4879_v6, %v619_v29 }
  0xe8   : > { %v675_v34 = vpop.permute.xlu1 %674  ;;  %v642_v55 = vadd.f32 %v4879_v6, %v620_v42  ;;  %v1396_v7 = vrot.slane %v4947_v16, 2  ;;  %v4960_v26 = vmul.f32 %v1377_v39, %v4951_v48  ;;  %v1392_v6 = vsel %vm1267_vm5, %v1390_v8, %v1391_v30  ;;  %v4979_v42 = vld [vmem:[#allocation2 + $0x18] sm:$0xff] }
  0xe9   : > { %v657_v25 = vpop.permute.xlu0 %656  ;;  %v639_v3 = vadd.f32 %v4869_v28, %v617_v56  ;;  %v664_v9 = vadd.f32 %v655_v20, %v640_v63  ;;  %v683_v47 = vadd.f32 %v675_v34, %v661_v44  ;;  %v684_v14 = vadd.f32 %v675_v34, %v662_v52 }
  0xea   : > { %1352 = vrot.lane.b32.xlu1 %v1345_v37, %s4202_s8  ;;  %v666_v0 = vadd.f32 %v657_v25, %v642_v55  ;;  %v1429_v32 = vstv %s4936_s26  ;;  %v1395_v23 = vsel %vm1267_vm5, %v1393_v31, %v1394_v21  ;;  %s4019_s26 = sld [smem:[#allocation3 + $0x19]] }
  0xeb   : > { %1350 = vrot.lane.b32.xlu0 %v1342_v24, %s4202_s8  ;;  %v663_v12 = vadd.f32 %v655_v20, %v639_v3  ;;  %v665_v24 = vadd.f32 %v657_v25, %v641_v57  ;;  %v1398_v20 = vrot.slane %v4960_v26, 2  ;;  %v1397_v25 = vsel %vm1267_vm5, %v1391_v30, %v1396_v7  ;;  %v7410_v26 = vld [vmem:[#allocation10_spill] sm:$0xff] }
  0xec   : > { %v679_v51 = vpop.permute.xlu1 %678  ;;  %v1431_v49 = vmul.f32 %v1429_v32, %v4775_v18  ;;  %v1430_v45 = vmul.f32 %v1429_v32, %v4795_v61  ;;  %v1434_v8 = vmul.f32 %v1429_v32, %v4825_v10 }
  0xed   : > { %v677_v38 = vpop.permute.xlu0 %676  ;;  %v688_v36 = vadd.f32 %v679_v51, %v666_v0  ;;  %v1399_v29 = vsel %vm1267_vm5, %v1394_v21, %v1398_v20 }
  0xee   : > { %1356 = vrot.lane.b32.xlu1 %v1349_v27, %s4202_s8  ;;  %v685_v53 = vadd.f32 %v677_v38, %v663_v12  ;;  %v686_v43 = vadd.f32 %v677_v38, %v664_v9  ;;  %v1433_v38 = vmul.f32 %v4979_v42, %v1429_v32  ;;  %v1442_v52 = vrot.slane %v1430_v45, 2 }
  0xef   : > { %1354 = vrot.lane.b32.xlu0 %v1347_v41, %s4202_s8  ;;  %v1435_v9 = vmul.f32 %v1429_v32, %v4876_v62 }
  0xf0   : > { %v701_v46 = vpop.permute.xlu1 %700 }
  0xf1   : > { %v699_v28 = vpop.permute.xlu0 %698  ;;  %v709_v34 = vadd.f32 %v701_v46, %v685_v53  ;;  %v710_v40 = vadd.f32 %v701_v46, %v686_v43  ;;  %v1448_v53 = vrot.slane %v1434_v8, 2  ;;  %v7416_v43 = vld [vmem:[#allocation8_spill] sm:$0xff]  ;;  %v1450_v16 = vrot.slane %v1435_v9, 2 }
  0xf2   : > { %v707_v37 = vadd.f32 %v699_v28, %v683_v47  ;;  %v708_v41 = vadd.f32 %v699_v28, %v684_v14  ;;  %1360 = vrot.lane.b32.xlu1 %v1348_v22, %s4202_s8  ;;  %v1432_v22 = vmul.f32 %v4933_v50, %v1429_v32  ;;  %v1445_v28 = vrot.slane %v1431_v49, 2  ;;  %v7414_v14 = vld [vmem:[#allocation7_spill] sm:$0xff]  ;;  %v7418_v32 = vld [vmem:[#allocation9_spill] sm:$0xff] }
  0xf3   : > { %1358 = vrot.lane.b32.xlu0 %v1346_v60, %s4202_s8  ;;  %v687_v60 = vadd.f32 %v679_v51, %v665_v24  ;;  %v7415_v24 = vrot.slane %v7414_v14, 1  ;;  %v1479_v49 = vstv %s4982_s28  ;;  %s4020_s28 = sld [smem:[#allocation3 + $0x4a]] }
  0xf4   : > { %v721_v17 = vpop.permute.xlu1 %720  ;;  %v1443_v51 = vrot.slane %v1432_v22, 2  ;;  %v1482_v45 = vmul.f32 %v4933_v50, %v1479_v49 }
  0xf5   : > { %v703_v39 = vpop.permute.xlu0 %702  ;;  %v729_v15 = vadd.f32 %v721_v17, %v707_v37  ;;  %v730_v56 = vadd.f32 %v721_v17, %v708_v41  ;;  %v7417_v37 = vrot.slane %v7416_v43, 1  ;;  %v1480_v17 = vmul.f32 %v1479_v49, %v4911_v54 }
  0xf6   : > { %v711_v58 = vadd.f32 %v703_v39, %v687_v60  ;;  %v712_v59 = vadd.f32 %v703_v39, %v688_v36  ;;  %1402 = vrot.lane.b32.xlu1 %v1395_v23, %s4202_s8  ;;  %v7419_v39 = vrot.slane %v7418_v32, 1  ;;  %v1449_v36 = vsel %vm1267_vm5, %v1443_v51, %v1448_v53 }
  0xf7   : > { %1400 = vrot.lane.b32.xlu0 %v1392_v6, %s4202_s8  ;;  %v775_v61 = vadd.f32 %v4542_v11, %v729_v15  ;;  %v776_v27 = vadd.f32 %v4545_v13, %v730_v56  ;;  %v1444_v6 = vsel %vm1267_vm5, %v1442_v52, %v1443_v51  ;;  %v1492_v54 = vrot.slane %v1480_v17, 2 }
  0xf8   : > { %v725_v44 = vpop.permute.xlu1 %724 }
  0xf9   : > { %v723_v4 = vpop.permute.xlu0 %722  ;;  %v4989_v30 = vadd.f32 %v4560_v33, %v775_v61  ;;  %v4992_v31 = vadd.f32 %v4563_v35, %v776_v27  ;;  %v733_v13 = vadd.f32 %v725_v44, %v711_v58  ;;  %v734_v57 = vadd.f32 %v725_v44, %v712_v59  ;;  %v7411_v33 = vld [vmem:[#allocation11_spill] sm:$0xff] }
  0xfa   : > { %v731_v3 = vadd.f32 %v723_v4, %v709_v34  ;;  %v732_v63 = vadd.f32 %v723_v4, %v710_v40  ;;  %1406 = vrot.lane.b32.xlu1 %v1399_v29, %s4202_s8  ;;  %v1446_v35 = vrot.slane %v1433_v38, 2  ;;  %v1481_v34 = vmul.f32 %v1479_v49, %v4905_v5  ;;  %v5040_v40 = vld [vmem:[#allocation2 + $0x58] sm:$0xff] }
  0xfb   : > { %1404 = vrot.lane.b32.xlu0 %v1397_v25, %s4202_s8  ;;  %v780_v0 = vadd.f32 %v7415_v24, %v734_v57  ;;  %v1483_v15 = vmul.f32 %v5040_v40, %v1479_v49  ;;  %v1493_v58 = vrot.slane %v1482_v45, 2  ;;  %v1484_v59 = vmul.f32 %v1479_v49, %v4927_v19 }
  0xfc   : > { %v777_v21 = vadd.f32 %v4584_v1, %v731_v3  ;;  %v778_v11 = vadd.f32 %v4589_v2, %v732_v63  ;;  %v7412_v1 = vld [vmem:[#allocation6_spill] sm:$0xff]  ;;  %v5010_v46 = vpop.permute.xlu1 %843  ;;  %v1447_v60 = vsel %vm1267_vm5, %v1445_v28, %v1446_v35  ;;  %v1495_v29 = vrot.slane %v1481_v34, 2 }
  0xfd   : > { %v4997_v55 = vpop.permute.xlu0 %841  ;;  %v7413_v47 = vrot.slane %v7412_v1, 1  ;;  %v5022_v23 = vadd.f32 %v7419_v39, %v780_v0  ;;  %v1496_v38 = vrot.slane %v1483_v15, 2  ;;  %v1485_v61 = vmul.f32 %v1479_v49, %v4951_v48 }
  0xfe   : > { %v5000_v10 = vadd.f32 %v7410_v26, %v777_v21  ;;  %v5003_v12 = vadd.f32 %v7411_v33, %v778_v11  ;;  %1410 = vrot.lane.b32.xlu1 %v1398_v20, %s4202_s8  ;;  %v1451_v20 = vsel %vm1267_vm5, %v1446_v35, %v1450_v16  ;;  %v1494_v3 = vsel %vm1267_vm5, %v1492_v54, %v1493_v58 }
  0xff   : > { %v779_v2 = vadd.f32 %v7413_v47, %v733_v13  ;;  %1408 = vrot.lane.b32.xlu0 %v1396_v7, %s4202_s8  ;;  %v1498_v63 = vrot.slane %v1484_v59, 2  ;;  %v1531_v19 = vstv %s4003_s29  ;;  %v1497_v52 = vsel %vm1267_vm5, %v1495_v29, %v1496_v38  ;;  %s4021_s29 = sld [smem:[#allocation3 + $0x1a]] }
 0x100   : > { %v5029_v7 = vpop.permute.xlu1 %847  ;;  %v1500_v51 = vrot.slane %v1485_v61, 2  ;;  %v1532_v11 = vmul.f32 %v1531_v19, %v4775_v18  ;;  %v1533_v13 = vmul.f32 %v4979_v42, %v1531_v19  ;;  %v1534_v26 = vmul.f32 %v1531_v19, %v4876_v62 }
 0x101   : > { %v5018_v41 = vadd.f32 %v7417_v37, %v779_v2  ;;  %v5025_v25 = vpop.permute.xlu0 %845  ;;  %v1499_v21 = vsel %vm1267_vm5, %v1493_v58, %v1498_v63  ;;  %v1558_v35 = vstv %s4004_s30  ;;  %v1587_v37 = vstv %s4005_s5  ;;  %s4022_s30 = sld [smem:[#allocation3 + $0x4b]] }
 0x102   : > { %1454 = vrot.lane.b32.xlu1 %v1447_v60, %s4203_s9  ;;  %v1501_v28 = vsel %vm1267_vm5, %v1496_v38, %v1500_v51  ;;  %v1538_v9 = vrot.slane %v1532_v11, 2  ;;  %v1539_v1 = vrot.slane %v1533_v13, 2  ;;  %v1541_v2 = vrot.slane %v1534_v26, 2  ;;  %s4023_s5 = sld [smem:[#allocation3 + $0x1b]] }
 0x103   : > { %1452 = vrot.lane.b32.xlu0 %v1444_v6, %s4203_s9  ;;  %v1559_v14 = vmul.f32 %v1558_v35, %v4905_v5  ;;  %v1560_v24 = vmul.f32 %v5040_v40, %v1558_v35  ;;  %v1589_v17 = vmul.f32 %v4979_v42, %v1587_v37  ;;  %v1590_v34 = vmul.f32 %v1587_v37, %v4876_v62 }
 0x104   : > { %v5043_v56 = vpop.permute.xlu1 %851  ;;  %v1540_v6 = vsel %vm1267_vm5, %v1538_v9, %v1539_v1  ;;  %v1542_v32 = vsel %vm1267_vm5, %v1539_v1, %v1541_v2  ;;  %v1614_v54 = vstv %s4006_s7  ;;  %v1643_v11 = vstv %s4007_s10  ;;  %s4024_s7 = sld [smem:[#allocation3 + $0x4c]]  ;;  %s4027_s10 = sld [smem:[#allocation3 + $0x1d]] }
 0x105   : > { %v5036_v22 = vpop.permute.xlu0 %849  ;;  %v1565_v39 = vrot.slane %v1559_v14, 2  ;;  %v1566_v49 = vrot.slane %v1560_v24, 2  ;;  %v1595_v29 = vrot.slane %v1589_v17, 2  ;;  %v1597_v61 = vrot.slane %v1590_v34, 2 }
 0x106   : > { %1458 = vrot.lane.b32.xlu1 %v1451_v20, %s4203_s9  ;;  %v1644_v1 = vmul.f32 %v1643_v11, %v4775_v18 }
 0x107   : > { %1456 = vrot.lane.b32.xlu0 %v1449_v36, %s4203_s9  ;;  %v1588_v36 = vmul.f32 %v1587_v37, %v4775_v18  ;;  %v1567_v20 = vsel %vm1267_vm5, %v1565_v39, %v1566_v49  ;;  %v1598_v13 = vsel %vm1267_vm5, %v1595_v29, %v1597_v61  ;;  %v1670_v37 = vstv %s4008_s12  ;;  %s4028_s12 = sld [smem:[#allocation3 + $0x4e]] }
 0x108   : > { %v5051_v27 = vpop.permute.xlu1 %893  ;;  %v1650_v39 = vrot.slane %v1644_v1, 2  ;;  %v1671_v17 = vmul.f32 %v1670_v37, %v4905_v5 }
 0x109   : > { %v5048_v4 = vpop.permute.xlu0 %891  ;;  %v1594_v59 = vrot.slane %v1588_v36, 2 }
 0x10a   : > { %1462 = vrot.lane.b32.xlu1 %v1450_v16, %s4203_s9 }
 0x10b   : > { %1460 = vrot.lane.b32.xlu0 %v1448_v53, %s4203_s9  ;;  %v1561_v53 = vmul.f32 %v1558_v35, %v4951_v48 }
 0x10c   : > { %v5059_v8 = vpop.permute.xlu1 %897 }
 0x10d   : > { %v5056_v44 = vpop.permute.xlu0 %895  ;;  %v1568_v16 = vrot.slane %v1561_v53, 2 }
 0x10e   : > { %1504 = vrot.lane.b32.xlu1 %v1497_v52, %s4203_s9  ;;  %v1596_v52 = vsel %vm1267_vm5, %v1594_v59, %v1595_v29  ;;  %v1699_v29 = vstv %s4009_s13  ;;  %s4029_s13 = sld [smem:[#allocation3 + $0x1e]] }
 0x10f   : > { %1502 = vrot.lane.b32.xlu0 %v1494_v3, %s4203_s9  ;;  %v1569_v58 = vsel %vm1267_vm5, %v1566_v49, %v1568_v16  ;;  %v1615_v3 = vmul.f32 %v1614_v54, %v4905_v5 }
 0x110   : > { %v5070_v33 = vpop.permute.xlu1 %901 }
 0x111   : > { %v5066_v57 = vpop.permute.xlu0 %899 }
 0x112   : > { %1508 = vrot.lane.b32.xlu1 %v1501_v28, %s4203_s9  ;;  %v1621_v28 = vrot.slane %v1615_v3, 2  ;;  %v1677_v3 = vrot.slane %v1671_v17, 2 }
 0x113   : > { %1506 = vrot.lane.b32.xlu0 %v1499_v21, %s4203_s9 }
 0x114   : > { %v5078_v0 = vpop.permute.xlu1 %945 }
 0x115   : > { %v5074_v47 = vpop.permute.xlu0 %943 }
 0x116   : > { %1512 = vrot.lane.b32.xlu1 %v1500_v51, %s4203_s9  ;;  %v1617_v51 = vmul.f32 %v1614_v54, %v4951_v48 }
 0x117   : > { %1510 = vrot.lane.b32.xlu0 %v1498_v63, %s4203_s9  ;;  %v1616_v63 = vmul.f32 %v5040_v40, %v1614_v54 }
 0x118   : > { %v5087_v60 = vpop.permute.xlu1 %949  ;;  %v1624_v9 = vrot.slane %v1617_v51, 2 }
 0x119   : > { %v5084_v43 = vpop.permute.xlu0 %947  ;;  %v1622_v26 = vrot.slane %v1616_v63, 2 }
 0x11a   : > { %1545 = vrot.lane.b32.xlu1 %v1542_v32, %s4204_s24 }
 0x11b   : > { %1543 = vrot.lane.b32.xlu0 %v1540_v6, %s4204_s24  ;;  %v1623_v24 = vsel %vm1267_vm5, %v1621_v28, %v1622_v26  ;;  %v1646_v6 = vmul.f32 %v1643_v11, %v4876_v62  ;;  %v1625_v32 = vsel %vm1267_vm5, %v1622_v26, %v1624_v9 }
 0x11c   : > { %v5097_v15 = vpop.permute.xlu1 %953 }
 0x11d   : > { %v5093_v45 = vpop.permute.xlu0 %951  ;;  %v1653_v36 = vrot.slane %v1646_v6, 2 }
 0x11e   : > { %1570 = vrot.lane.b32.xlu1 %v1567_v20, %s4204_s24  ;;  %v1672_v20 = vmul.f32 %v5040_v40, %v1670_v37 }
 0x11f   : > { %1547 = vrot.lane.b32.xlu0 %v1541_v2, %s4204_s24  ;;  %v1645_v2 = vmul.f32 %v4979_v42, %v1643_v11  ;;  %v1700_v11 = vmul.f32 %v1699_v29, %v4775_v18 }
 0x120   : > { %v5106_v19 = vpop.permute.xlu1 %995  ;;  %v1678_v63 = vrot.slane %v1672_v20, 2 }
 0x121   : > { %v5102_v38 = vpop.permute.xlu0 %993  ;;  %v1651_v49 = vrot.slane %v1645_v2, 2  ;;  %v1726_v2 = vstv %s4010_s14  ;;  %v1706_v6 = vrot.slane %v1700_v11, 2  ;;  %s4030_s14 = sld [smem:[#allocation3 + $0x4f]] }
 0x122   : > { %1574 = vrot.lane.b32.xlu1 %v1568_v16, %s4204_s24  ;;  %v1679_v26 = vsel %vm1267_vm5, %v1677_v3, %v1678_v63  ;;  %v1729_v17 = vmul.f32 %v1726_v2, %v4951_v48  ;;  %v1816_v3 = vstv %s4013_s18  ;;  %s3997_s18 = sld [smem:[#allocation3 + $0xe]] }
 0x123   : > { %1572 = vrot.lane.b32.xlu0 %v1569_v58, %s4204_s24  ;;  %v1652_v54 = vsel %vm1267_vm5, %v1650_v39, %v1651_v49  ;;  %v1673_v58 = vmul.f32 %v1670_v37, %v4951_v48  ;;  %v1727_v39 = vmul.f32 %v1726_v2, %v4905_v5 }
 0x124   : > { %v5115_v35 = vpop.permute.xlu1 %999  ;;  %v1736_v5 = vrot.slane %v1729_v17, 2  ;;  %v1858_v17 = vstv %s4014_s20  ;;  %s3998_s20 = sld [smem:[#allocation3 + $0x3f]] }
 0x125   : > { %v5112_v21 = vpop.permute.xlu0 %997  ;;  %v1680_v51 = vrot.slane %v1673_v58, 2  ;;  %v1733_v58 = vrot.slane %v1727_v39, 2 }
 0x126   : > { %1601 = vrot.lane.b32.xlu1 %v1598_v13, %s4205_s27  ;;  %v1701_v13 = vmul.f32 %v4979_v42, %v1699_v29 }
 0x127   : > { %1599 = vrot.lane.b32.xlu0 %v1596_v52, %s4205_s27 }
 0x128   : > { %v5127_v53 = vpop.permute.xlu1 %1003  ;;  %v1707_v37 = vrot.slane %v1701_v13, 2  ;;  %v5184_v13 = vld [vmem:[#allocation2 + $0x28] sm:$0xff] }
 0x129   : > { %v5121_v14 = vpop.permute.xlu0 %1001  ;;  %7421 = vst [vmem:[#allocation11_spill] sm:$0xff] %v5127_v53 }
 0x12a   : > { %7420 = vst [vmem:[#allocation10_spill] sm:$0xff] %v5121_v14  ;;  %1626 = vrot.lane.b32.xlu1 %v1623_v24, %s4205_s27  ;;  %v1681_v24 = vsel %vm1267_vm5, %v1678_v63, %v1680_v51 }
 0x12b   : > { %1603 = vrot.lane.b32.xlu0 %v1597_v61, %s4205_s27  ;;  %v1654_v61 = vsel %vm1267_vm5, %v1651_v49, %v1653_v36  ;;  %v1728_v49 = vmul.f32 %v5040_v40, %v1726_v2  ;;  %v1818_v2 = vmul.f32 %v4979_v42, %v1816_v3 }
 0x12c   : > { %v5136_v34 = vpop.permute.xlu1 %1036 }
 0x12d   : > { %v5132_v16 = vpop.permute.xlu0 %1034  ;;  %7423 = vst [vmem:[#allocation7_spill] sm:$0xff] %v5136_v34  ;;  %v1826_v39 = vrot.slane %v1818_v2, 3 }
 0x12e   : > { %7422 = vst [vmem:[#allocation6_spill] sm:$0xff] %v5132_v16  ;;  %1630 = vrot.lane.b32.xlu1 %v1624_v9, %s4205_s27  ;;  %v1702_v9 = vmul.f32 %v1699_v29, %v4876_v62  ;;  %v1734_v29 = vrot.slane %v1728_v49, 2 }
 0x12f   : > { %1628 = vrot.lane.b32.xlu0 %v1625_v32, %s4205_s27 }
 0x130   : > { %v5145_v52 = vpop.permute.xlu1 %1061  ;;  %v1709_v32 = vrot.slane %v1702_v9, 2  ;;  %v1735_v48 = vsel %vm1267_vm5, %v1733_v58, %v1734_v29 }
 0x131   : > { %v5142_v59 = vpop.permute.xlu0 %1038  ;;  %7425 = vst [vmem:[#allocation9_spill] sm:$0xff] %v5145_v52 }
 0x132   : > { %7424 = vst [vmem:[#allocation8_spill] sm:$0xff] %v5142_v59  ;;  %1657 = vrot.lane.b32.xlu1 %v1654_v61, %s4206_s6 }
 0x133   : > { %1655 = vrot.lane.b32.xlu0 %v1652_v54, %s4206_s6  ;;  %v1710_v54 = vsel %vm1267_vm5, %v1707_v37, %v1709_v32 }
 0x134   : > { %v5155_v1 = vpop.permute.xlu1 %1065 }
 0x135   : > { %v5151_v28 = vpop.permute.xlu0 %1063  ;;  %7427 = vst [vmem:[#allocation13_spill] sm:$0xff] %v5155_v1 }
 0x136   : > { %7426 = vst [vmem:[#allocation12_spill] sm:$0xff] %v5151_v28  ;;  %1682 = vrot.lane.b32.xlu1 %v1679_v26, %s4206_s6  ;;  %v1737_v26 = vsel %vm1267_vm5, %v1734_v29, %v1736_v5 }
 0x137   : > { %1659 = vrot.lane.b32.xlu0 %v1653_v36, %s4206_s6  ;;  %v1708_v36 = vsel %vm1267_vm5, %v1706_v6, %v1707_v37 }
 0x138   : > { %v5164_v62 = vpop.permute.xlu1 %1092 }
 0x139   : > { %v5160_v18 = vpop.permute.xlu0 %1090  ;;  %7429 = vst [vmem:[#allocation15_spill] sm:$0xff] %v5164_v62 }
 0x13a   : > { %7428 = vst [vmem:[#allocation14_spill] sm:$0xff] %v5160_v18  ;;  %1686 = vrot.lane.b32.xlu1 %v1680_v51, %s4206_s6  ;;  %v1817_v51 = vmul.f32 %v4933_v50, %v1816_v3 }
 0x13b   : > { %1684 = vrot.lane.b32.xlu0 %v1681_v24, %s4206_s6  ;;  %v1820_v24 = vmul.f32 %v1816_v3, %v5184_v13  ;;  %v5209_v3 = vld [vmem:[#allocation2 + $0x68] sm:$0xff] }
 0x13c   : > { %v5173_v61 = vpop.permute.xlu1 %1117  ;;  %v1825_v37 = vrot.slane %v1817_v51, 3  ;;  %v1860_v51 = vmul.f32 %v5040_v40, %v1858_v17 }
 0x13d   : > { %v5170_v20 = vpop.permute.xlu0 %1094  ;;  %7431 = vst [vmem:[#allocation17_spill] sm:$0xff] %v5173_v61  ;;  %v1829_v49 = vrot.slane %v1820_v24, 3 }
 0x13e   : > { %7430 = vst [vmem:[#allocation16_spill] sm:$0xff] %v5170_v20  ;;  %1713 = vrot.lane.b32.xlu1 %v1710_v54, %s4207_s11 }
 0x13f   : > { %1711 = vrot.lane.b32.xlu0 %v1708_v36, %s4207_s11  ;;  %v1830_v58 = vsel %vm1768_vm7, %v1826_v39, %v1829_v49 }
 0x140   : > { %v5180_v11 = vpop.permute.xlu1 %1121 }
 0x141   : > { %v5177_v63 = vpop.permute.xlu0 %1119  ;;  %7433 = vst [vmem:[#allocation19_spill] sm:$0xff] %v5180_v11 }
 0x142   : > { %7432 = vst [vmem:[#allocation18_spill] sm:$0xff] %v5177_v63  ;;  %1738 = vrot.lane.b32.xlu1 %v1735_v48, %s4207_s11 }
 0x143   : > { %1715 = vrot.lane.b32.xlu0 %v1709_v32, %s4207_s11 }
 0x144   : > { %v5192_v6 = vpop.permute.xlu1 %1148 }
 0x145   : > { %v5188_v9 = vpop.permute.xlu0 %1146  ;;  %7435 = vst [vmem:[#allocation21_spill] sm:$0xff] %v5192_v6 }
 0x146   : > { %7434 = vst [vmem:[#allocation20_spill] sm:$0xff] %v5188_v9  ;;  %1742 = vrot.lane.b32.xlu1 %v1736_v5, %s4207_s11  ;;  %v1859_v5 = vmul.f32 %v4933_v50, %v1858_v17 }
 0x147   : > { %1740 = vrot.lane.b32.xlu0 %v1737_v26, %s4207_s11  ;;  %v1862_v26 = vmul.f32 %v1858_v17, %v5209_v3 }
 0x148   : > { %v5198_v36 = vpop.permute.xlu1 %1173  ;;  %v1867_v24 = vrot.slane %v1859_v5, 3 }
 0x149   : > { %v5196_v32 = vpop.permute.xlu0 %1150  ;;  %7437 = vst [vmem:[#allocation23_spill] sm:$0xff] %v5198_v36 }
 0x14a   : > { %7436 = vst [vmem:[#allocation22_spill] sm:$0xff] %v5196_v32  ;;  %1833 = vrot.lane.b32.xlu1 %v1826_v39, %s4202_s8 }
 0x14b   : > { %1831 = vrot.lane.b32.xlu0 %v1825_v37, %s4202_s8 }
 0x14c   : > { %v5205_v29 = vpop.permute.xlu1 %1177 }
 0x14d   : > { %v5202_v54 = vpop.permute.xlu0 %1175  ;;  %7439 = vst [vmem:[#allocation25_spill] sm:$0xff] %v5205_v29  ;;  %v1868_v29 = vrot.slane %v1860_v51, 3 }
 0x14e   : > { %7438 = vst [vmem:[#allocation24_spill] sm:$0xff] %v5202_v54  ;;  %1837 = vrot.lane.b32.xlu1 %v1830_v58, %s4202_s8  ;;  %v1871_v54 = vrot.slane %v1862_v26, 3  ;;  %v1902_v58 = vstv %s4015_s21  ;;  %s4031_s21 = sld [smem:[#allocation3 + $0x1f]] }
 0x14f   : > { %1835 = vrot.lane.b32.xlu0 %v1825_v37, %s4202_s8  ;;  %v1904_v5 = vmul.f32 %v4979_v42, %v1902_v58  ;;  %v1906_v51 = vmul.f32 %v1902_v58, %v5184_v13 }
 0x150   : > { %v5216_v2 = vpop.permute.xlu1 %1204  ;;  %v1872_v17 = vsel %vm1768_vm7, %v1868_v29, %v1871_v54 }
 0x151   : > { %v5212_v48 = vpop.permute.xlu0 %1202  ;;  %7441 = vst [vmem:[#allocation27_spill] sm:$0xff] %v5216_v2 }
 0x152   : > { %7440 = vst [vmem:[#allocation26_spill] sm:$0xff] %v5212_v48  ;;  %1841 = vrot.lane.b32.xlu1 %v1829_v49, %s4202_s8 }
 0x153   : > { %1839 = vrot.lane.b32.xlu0 %v1825_v37, %s4202_s8  ;;  %v1903_v37 = vmul.f32 %v4933_v50, %v1902_v58 }
 0x154   : > { %v5222_v36 = vpop.permute.xlu1 %1229 }
 0x155   : > { %v5220_v39 = vpop.permute.xlu0 %1206  ;;  %7443 = vst [vmem:[#allocation29_spill] sm:$0xff] %v5222_v36  ;;  %v1915_v36 = vrot.slane %v1906_v51, 3 }
 0x156   : > { %7442 = vst [vmem:[#allocation28_spill] sm:$0xff] %v5220_v39  ;;  %1875 = vrot.lane.b32.xlu1 %v1868_v29, %s4202_s8  ;;  %v1911_v29 = vrot.slane %v1903_v37, 3 }
 0x157   : > { %1873 = vrot.lane.b32.xlu0 %v1867_v24, %s4202_s8 }
 0x158   : > { %v5229_v2 = vpop.permute.xlu1 %1233 }
 0x159   : > { %v5226_v48 = vpop.permute.xlu0 %1231  ;;  %7445 = vst [vmem:[#allocation31_spill] sm:$0xff] %v5229_v2 }
 0x15a   : > { %7444 = vst [vmem:[#allocation30_spill] sm:$0xff] %v5226_v48  ;;  %1879 = vrot.lane.b32.xlu1 %v1872_v17, %s4202_s8  ;;  %v1912_v48 = vrot.slane %v1904_v5, 3  ;;  %v1944_v17 = vstv %s4016_s22  ;;  %s5495_s22 = sld [smem:[#allocation3 + $0x50]] }
 0x15b   : > { %1877 = vrot.lane.b32.xlu0 %v1867_v24, %s4202_s8  ;;  %v1946_v37 = vmul.f32 %v5040_v40, %v1944_v17  ;;  %v1948_v5 = vmul.f32 %v1944_v17, %v5209_v3 }
 0x15c   : > { %v5238_v26 = vpop.permute.xlu1 %1352  ;;  %v1916_v58 = vsel %vm1768_vm7, %v1912_v48, %v1915_v36 }
 0x15d   : > { %v5234_v49 = vpop.permute.xlu0 %1350  ;;  %7447 = vst [vmem:[#allocation33_spill] sm:$0xff] %v5238_v26 }
 0x15e   : > { %7446 = vst [vmem:[#allocation32_spill] sm:$0xff] %v5234_v49  ;;  %1883 = vrot.lane.b32.xlu1 %v1871_v54, %s4202_s8  ;;  %v1945_v54 = vmul.f32 %v4933_v50, %v1944_v17 }
 0x15f   : > { %1881 = vrot.lane.b32.xlu0 %v1867_v24, %s4202_s8 }
 0x160   : > { %v5244_v39 = vpop.permute.xlu1 %1356  ;;  %v2496_v53 = vstv %s5495_s22  ;;  %s6187_s22 = sld [smem:[#allocation3 + $0x57]] }
 0x161   : > { %v5242_v2 = vpop.permute.xlu0 %1354  ;;  %7449 = vst [vmem:[#allocation35_spill] sm:$0xff] %v5244_v39 }
 0x162   : > { %7448 = vst [vmem:[#allocation34_spill] sm:$0xff] %v5242_v2  ;;  %1919 = vrot.lane.b32.xlu1 %v1912_v48, %s4203_s9  ;;  %v1953_v48 = vrot.slane %v1945_v54, 3  ;;  %v1957_v2 = vrot.slane %v1948_v5, 3 }
 0x163   : > { %1917 = vrot.lane.b32.xlu0 %v1911_v29, %s4203_s9 }
 0x164   : > { %v5251_v26 = vpop.permute.xlu1 %1360 }
 0x165   : > { %v5248_v49 = vpop.permute.xlu0 %1358  ;;  %7451 = vst [vmem:[#allocation37_spill] sm:$0xff] %v5251_v26  ;;  %v1954_v26 = vrot.slane %v1946_v37, 3 }
 0x166   : > { %7450 = vst [vmem:[#allocation36_spill] sm:$0xff] %v5248_v49  ;;  %1923 = vrot.lane.b32.xlu1 %v1916_v58, %s4203_s9  ;;  %v1988_v58 = vstv %s4017_s23  ;;  %s5529_s23 = sld [smem:[#allocation3 + $0x20]] }
 0x167   : > { %1921 = vrot.lane.b32.xlu0 %v1911_v29, %s4203_s9 }
 0x168   : > { %v5260_v51 = vpop.permute.xlu1 %1402 }
 0x169   : > { %v5256_v24 = vpop.permute.xlu0 %1400  ;;  %7453 = vst [vmem:[#allocation39_spill] sm:$0xff] %v5260_v51 }
 0x16a   : > { %7452 = vst [vmem:[#allocation38_spill] sm:$0xff] %v5256_v24  ;;  %1927 = vrot.lane.b32.xlu1 %v1915_v36, %s4203_s9  ;;  %v1958_v24 = vsel %vm1768_vm7, %v1954_v26, %v1957_v2  ;;  %v1990_v36 = vmul.f32 %v1988_v58, %v5184_v13 }
 0x16b   : > { %1925 = vrot.lane.b32.xlu0 %v1911_v29, %s4203_s9  ;;  %v1989_v29 = vmul.f32 %v4979_v42, %v1988_v58 }
 0x16c   : > { %v5266_v39 = vpop.permute.xlu1 %1406 }
 0x16d   : > { %v5264_v49 = vpop.permute.xlu0 %1404  ;;  %7455 = vst [vmem:[#allocation41_spill] sm:$0xff] %v5266_v39  ;;  %v1993_v5 = vrot.slane %v1989_v29, 3  ;;  %v2011_v39 = vstv %s4018_s25  ;;  %v2036_v29 = vstv %s4019_s26  ;;  %s5577_s25 = sld [smem:[#allocation3 + $0x51]] }
 0x16e   : > { %7454 = vst [vmem:[#allocation40_spill] sm:$0xff] %v5264_v49  ;;  %1961 = vrot.lane.b32.xlu1 %v1954_v26, %s4203_s9  ;;  %v1994_v49 = vrot.slane %v1990_v36, 3  ;;  %v2013_v26 = vmul.f32 %v2011_v39, %v5209_v3  ;;  %s5622_s26 = sld [smem:[#allocation3 + $0x21]] }
 0x16f   : > { %1959 = vrot.lane.b32.xlu0 %v1953_v48, %s4203_s9 }
 0x170   : > { %v5275_v54 = vpop.permute.xlu1 %1410  ;;  %v2017_v36 = vrot.slane %v2013_v26, 3 }
 0x171   : > { %v5270_v17 = vpop.permute.xlu0 %1408  ;;  %7457 = vst [vmem:[#allocation43_spill] sm:$0xff] %v5275_v54  ;;  %v1995_v54 = vsel %vm1768_vm7, %v1993_v5, %v1994_v49 }
 0x172   : > { %7456 = vst [vmem:[#allocation42_spill] sm:$0xff] %v5270_v17  ;;  %1965 = vrot.lane.b32.xlu1 %v1958_v24, %s4203_s9  ;;  %v2012_v17 = vmul.f32 %v5040_v40, %v2011_v39 }
 0x173   : > { %1963 = vrot.lane.b32.xlu0 %v1953_v48, %s4203_s9 }
 0x174   : > { %v5281_v51 = vpop.permute.xlu1 %1454 }
 0x175   : > { %v5279_v37 = vpop.permute.xlu0 %1452  ;;  %7459 = vst [vmem:[#allocation45_spill] sm:$0xff] %v5281_v51 }
 0x176   : > { %7458 = vst [vmem:[#allocation44_spill] sm:$0xff] %v5279_v37  ;;  %1969 = vrot.lane.b32.xlu1 %v1957_v2, %s4203_s9  ;;  %v2016_v37 = vrot.slane %v2012_v17, 3  ;;  %v2037_v2 = vmul.f32 %v4979_v42, %v2036_v29 }
 0x177   : > { %1967 = vrot.lane.b32.xlu0 %v1953_v48, %s4203_s9 }
 0x178   : > { %v5290_v24 = vpop.permute.xlu1 %1458  ;;  %v2018_v39 = vsel %vm1768_vm7, %v2016_v37, %v2017_v36  ;;  %v2041_v26 = vrot.slane %v2037_v2, 3 }
 0x179   : > { %v5286_v58 = vpop.permute.xlu0 %1456  ;;  %7461 = vst [vmem:[#allocation47_spill] sm:$0xff] %v5290_v24  ;;  %v2059_v24 = vstv %s4020_s28  ;;  %s5667_s28 = sld [smem:[#allocation3 + $0x52]] }
 0x17a   : > { %7460 = vst [vmem:[#allocation46_spill] sm:$0xff] %v5286_v58  ;;  %1998 = vrot.lane.b32.xlu1 %v1995_v54, %s4204_s24  ;;  %v2038_v58 = vmul.f32 %v2036_v29, %v5184_v13  ;;  %v2061_v17 = vmul.f32 %v2059_v24, %v5209_v3 }
 0x17b   : > { %1996 = vrot.lane.b32.xlu0 %v1993_v5, %s4204_s24 }
 0x17c   : > { %v5298_v51 = vpop.permute.xlu1 %1462  ;;  %v2042_v54 = vrot.slane %v2038_v58, 3  ;;  %v2084_v58 = vstv %s4021_s29  ;;  %v2065_v2 = vrot.slane %v2061_v17, 3  ;;  %s5678_s29 = sld [smem:[#allocation3 + $0x15]] }
 0x17d   : > { %v5294_v48 = vpop.permute.xlu0 %1460  ;;  %7463 = vst [vmem:[#allocation49_spill] sm:$0xff] %v5298_v51 }
 0x17e   : > { %7462 = vst [vmem:[#allocation48_spill] sm:$0xff] %v5294_v48  ;;  %2019 = vrot.lane.b32.xlu1 %v2016_v37, %s4204_s24  ;;  %v2043_v51 = vsel %vm1768_vm7, %v2041_v26, %v2042_v54 }
 0x17f   : > { %2000 = vrot.lane.b32.xlu0 %v1994_v49, %s4204_s24  ;;  %v2060_v49 = vmul.f32 %v5040_v40, %v2059_v24 }
 0x180   : > { %v5305_v48 = vpop.permute.xlu1 %1504 }
 0x181   : > { %v5303_v5 = vpop.permute.xlu0 %1502  ;;  %7465 = vst [vmem:[#allocation51_spill] sm:$0xff] %v5305_v48 }
 0x182   : > { %7464 = vst [vmem:[#allocation50_spill] sm:$0xff] %v5303_v5  ;;  %2023 = vrot.lane.b32.xlu1 %v2017_v36, %s4204_s24  ;;  %v2064_v5 = vrot.slane %v2060_v49, 3  ;;  %v2085_v36 = vmul.f32 %v4979_v42, %v2084_v58 }
 0x183   : > { %2021 = vrot.lane.b32.xlu0 %v2018_v39, %s4204_s24 }
 0x184   : > { %v5314_v37 = vpop.permute.xlu1 %1508  ;;  %v2066_v24 = vsel %vm1768_vm7, %v2064_v5, %v2065_v2  ;;  %v2089_v17 = vrot.slane %v2085_v36, 3 }
 0x185   : > { %v5310_v29 = vpop.permute.xlu0 %1506  ;;  %7467 = vst [vmem:[#allocation53_spill] sm:$0xff] %v5314_v37  ;;  %v2107_v37 = vstv %s4022_s30  ;;  %s5695_s30 = sld [smem:[#allocation3 + $0x22]] }
 0x186   : > { %7466 = vst [vmem:[#allocation52_spill] sm:$0xff] %v5310_v29  ;;  %2046 = vrot.lane.b32.xlu1 %v2043_v51, %s4205_s27  ;;  %v2086_v29 = vmul.f32 %v2084_v58, %v5184_v13  ;;  %v2109_v49 = vmul.f32 %v2107_v37, %v5209_v3 }
 0x187   : > { %2044 = vrot.lane.b32.xlu0 %v2041_v26, %s4205_s27 }
 0x188   : > { %v5322_v48 = vpop.permute.xlu1 %1512  ;;  %v2090_v51 = vrot.slane %v2086_v29, 3  ;;  %v2132_v29 = vstv %s4023_s5  ;;  %v2113_v36 = vrot.slane %v2109_v49, 3  ;;  %s5730_s5 = sld [smem:[#allocation3 + $0x46]] }
 0x189   : > { %v5318_v39 = vpop.permute.xlu0 %1510  ;;  %7469 = vst [vmem:[#allocation55_spill] sm:$0xff] %v5322_v48 }
 0x18a   : > { %7468 = vst [vmem:[#allocation54_spill] sm:$0xff] %v5318_v39  ;;  %2067 = vrot.lane.b32.xlu1 %v2064_v5, %s4205_s27  ;;  %v2091_v48 = vsel %vm1768_vm7, %v2089_v17, %v2090_v51 }
 0x18b   : > { %2048 = vrot.lane.b32.xlu0 %v2042_v54, %s4205_s27  ;;  %v2108_v54 = vmul.f32 %v5040_v40, %v2107_v37 }
 0x18c   : > { %v5329_v39 = vpop.permute.xlu1 %1545 }
 0x18d   : > { %v5327_v26 = vpop.permute.xlu0 %1543  ;;  %7471 = vst [vmem:[#allocation57_spill] sm:$0xff] %v5329_v39  ;;  %v2112_v39 = vrot.slane %v2108_v54, 3 }
 0x18e   : > { %7470 = vst [vmem:[#allocation56_spill] sm:$0xff] %v5327_v26  ;;  %2071 = vrot.lane.b32.xlu1 %v2065_v2, %s4205_s27  ;;  %v2133_v2 = vmul.f32 %v4979_v42, %v2132_v29 }
 0x18f   : > { %2069 = vrot.lane.b32.xlu0 %v2066_v24, %s4205_s27  ;;  %v2114_v37 = vsel %vm1768_vm7, %v2112_v39, %v2113_v36 }
 0x190   : > { %v5338_v5 = vpop.permute.xlu1 %1570  ;;  %v2137_v49 = vrot.slane %v2133_v2, 3  ;;  %v2265_v2 = vstv %s4027_s10  ;;  %s5789_s10 = sld [smem:[#allocation3 + $0x24]] }
 0x191   : > { %v5334_v58 = vpop.permute.xlu0 %1547  ;;  %7473 = vst [vmem:[#allocation59_spill] sm:$0xff] %v5338_v5  ;;  %v2155_v5 = vstv %s4024_s7  ;;  %s5747_s7 = sld [smem:[#allocation3 + $0x53]] }
 0x192   : > { %7472 = vst [vmem:[#allocation58_spill] sm:$0xff] %v5334_v58  ;;  %2094 = vrot.lane.b32.xlu1 %v2091_v48, %s4206_s6  ;;  %v2134_v58 = vmul.f32 %v2132_v29, %v5184_v13  ;;  %v2157_v42 = vmul.f32 %v2155_v5, %v5209_v3  ;;  %v5365_v29 = vld [vmem:[#allocation2 + $0x10] sm:$0xfe] }
 0x193   : > { %2092 = vrot.lane.b32.xlu0 %v2089_v17, %s4206_s6 }
 0x194   : > { %v5346_v26 = vpop.permute.xlu1 %1574  ;;  %v2138_v48 = vrot.slane %v2134_v58, 3  ;;  %v2161_v58 = vrot.slane %v2157_v42, 3  ;;  %v2268_v42 = vmul.f32 %v4933_v50, %v2265_v2 }
 0x195   : > { %v5342_v24 = vpop.permute.xlu0 %1572  ;;  %7475 = vst [vmem:[#allocation61_spill] sm:$0xff] %v5346_v26 }
 0x196   : > { %7474 = vst [vmem:[#allocation60_spill] sm:$0xff] %v5342_v24  ;;  %2115 = vrot.lane.b32.xlu1 %v2112_v39, %s4206_s6  ;;  %v2139_v54 = vsel %vm1768_vm7, %v2137_v49, %v2138_v48  ;;  %v2280_v26 = vrot.slane %v2268_v42, 4  ;;  %v2315_v42 = vstv %s4028_s12  ;;  %s5863_s12 = sld [smem:[#allocation3 + $0x55]] }
 0x197   : > { %2096 = vrot.lane.b32.xlu0 %v2090_v51, %s4206_s6  ;;  %v2156_v51 = vmul.f32 %v5040_v40, %v2155_v5  ;;  %v2318_v63 = vmul.f32 %v4933_v50, %v2315_v42 }
 0x198   : > { %v5353_v24 = vpop.permute.xlu1 %1601 }
 0x199   : > { %v5351_v17 = vpop.permute.xlu0 %1599  ;;  %7477 = vst [vmem:[#allocation63_spill] sm:$0xff] %v5353_v24  ;;  %v2160_v3 = vrot.slane %v2156_v51, 3  ;;  %v2330_v50 = vrot.slane %v2318_v63, 4 }
 0x19a   : > { %7476 = vst [vmem:[#allocation62_spill] sm:$0xff] %v5351_v17  ;;  %2119 = vrot.lane.b32.xlu1 %v2113_v36, %s4206_s6  ;;  %v5370_v36 = vld [vmem:[#allocation2 + $0x18] sm:$0xfe]  ;;  %v5390_v17 = vld [vmem:[#allocation2 + $0x38] sm:$0x1] }
 0x19b   : > { %2117 = vrot.lane.b32.xlu0 %v2114_v37, %s4206_s6  ;;  %v2267_v51 = vmul.f32 %v2265_v2, %v5370_v36  ;;  %v2271_v11 = vmul.f32 %v2265_v2, %v5390_v17 }
 0x19c   : > { %v5362_v39 = vpop.permute.xlu1 %1626 }
 0x19d   : > { %v5358_v13 = vpop.permute.xlu0 %1603  ;;  %7479 = vst [vmem:[#allocation65_spill] sm:$0xff] %v5362_v39  ;;  %v2266_v39 = vmul.f32 %v2265_v2, %v5365_v29 }
 0x19e   : > { %7478 = vst [vmem:[#allocation64_spill] sm:$0xff] %v5358_v13  ;;  %2142 = vrot.lane.b32.xlu1 %v2139_v54, %s4207_s11  ;;  %v5372_v13 = vld [vmem:[#allocation2 + $0x28] sm:$0xff] }
 0x19f   : > { %2140 = vrot.lane.b32.xlu0 %v2137_v49, %s4207_s11  ;;  %v2162_v49 = vsel %vm1768_vm7, %v2160_v3, %v2161_v58  ;;  %v2269_v24 = vmul.f32 %v2265_v2, %v5372_v13 }
 0x1a0   : > { %v5374_v5 = vpop.permute.xlu1 %1630 }
 0x1a1   : > { %v5368_v37 = vpop.permute.xlu0 %1628  ;;  %7481 = vst [vmem:[#allocation67_spill] sm:$0xff] %v5374_v5  ;;  %v2282_v6 = vrot.slane %v2269_v24, 4  ;;  %v5407_v24 = vld [vmem:[#allocation2 + $0x58] sm:$0xfe] }
 0x1a2   : > { %7480 = vst [vmem:[#allocation66_spill] sm:$0xff] %v5368_v37  ;;  %2163 = vrot.lane.b32.xlu1 %v2160_v3, %s4207_s11  ;;  %v5384_v37 = vld [vmem:[#allocation2 + $0x30] sm:$0x1] }
 0x1a3   : > { %2144 = vrot.lane.b32.xlu0 %v2138_v48, %s4207_s11  ;;  %v2278_v48 = vrot.slane %v2266_v39, 4  ;;  %v2270_v32 = vmul.f32 %v2265_v2, %v5384_v37  ;;  %v5409_v2 = vld [vmem:[#allocation2 + $0x68] sm:$0xff] }
 0x1a4   : > { %v5387_v5 = vpop.permute.xlu1 %1657 }
 0x1a5   : > { %v5381_v54 = vpop.permute.xlu0 %1655  ;;  %7483 = vst [vmem:[#allocation69_spill] sm:$0xff] %v5387_v5  ;;  %v2281_v39 = vsel %vm2205_vm8, %v2278_v48, %v2280_v26  ;;  %v5401_v5 = vld [vmem:[#allocation2 + $0x50] sm:$0xfe] }
 0x1a6   : > { %7482 = vst [vmem:[#allocation68_spill] sm:$0xff] %v5381_v54  ;;  %2167 = vrot.lane.b32.xlu1 %v2161_v58, %s4207_s11  ;;  %v2279_v54 = vrot.slane %v2267_v51, 4 }
 0x1a7   : > { %2165 = vrot.lane.b32.xlu0 %v2162_v49, %s4207_s11  ;;  %v2284_v49 = vrot.slane %v2270_v32, 4  ;;  %v2316_v32 = vmul.f32 %v2315_v42, %v5401_v5 }
 0x1a8   : > { %v5397_v9 = vpop.permute.xlu1 %1682  ;;  %v2283_v51 = vsel %vm2205_vm8, %v2279_v54, %v2282_v6 }
 0x1a9   : > { %v5394_v3 = vpop.permute.xlu0 %1659  ;;  %7485 = vst [vmem:[#allocation71_spill] sm:$0xff] %v5397_v9 }
 0x1aa   : > { %7484 = vst [vmem:[#allocation70_spill] sm:$0xff] %v5394_v3  ;;  %2290 = vrot.lane.b32.xlu1 %v2279_v54, %s4202_s8  ;;  %v2286_v3 = vrot.slane %v2271_v11, 4  ;;  %v2317_v11 = vmul.f32 %v2315_v42, %v5407_v24  ;;  %v5421_v54 = vld [vmem:[#allocation2 + $0x70] sm:$0x1] }
 0x1ab   : > { %2288 = vrot.lane.b32.xlu0 %v2278_v48, %s4202_s8  ;;  %v2285_v48 = vsel %vm2205_vm8, %v2280_v26, %v2284_v49  ;;  %v2328_v26 = vrot.slane %v2316_v32, 4  ;;  %v5428_v49 = vld [vmem:[#allocation2 + $0x78] sm:$0x1] }
 0x1ac   : > { %v5411_v9 = vpop.permute.xlu1 %1686  ;;  %v2287_v61 = vsel %vm2205_vm8, %v2282_v6, %v2286_v3  ;;  %v2329_v20 = vrot.slane %v2317_v11, 4  ;;  %v2321_v6 = vmul.f32 %v2315_v42, %v5428_v49  ;;  %v5448_v11 = vld [vmem:[#allocation2 + $0x10] sm:$0xff] }
 0x1ad   : > { %v5404_v58 = vpop.permute.xlu0 %1684  ;;  %7487 = vst [vmem:[#allocation73_spill] sm:$0xff] %v5411_v9  ;;  %v2319_v9 = vmul.f32 %v2315_v42, %v5409_v2  ;;  %7494 = vst [vmem:[#allocation80_spill] sm:$0xff] %v5448_v11 }
 0x1ae   : > { %7486 = vst [vmem:[#allocation72_spill] sm:$0xff] %v5404_v58  ;;  %2294 = vrot.lane.b32.xlu1 %v2283_v51, %s4202_s8  ;;  %v2320_v51 = vmul.f32 %v2315_v42, %v5421_v54  ;;  %v2336_v1 = vrot.slane %v2321_v6, 4 }
 0x1af   : > { %2292 = vrot.lane.b32.xlu0 %v2281_v39, %s4202_s8  ;;  %v2332_v62 = vrot.slane %v2319_v9, 4 }
 0x1b0   : > { %v5425_v39 = vpop.permute.xlu1 %1713  ;;  %v2334_v32 = vrot.slane %v2320_v51, 4 }
 0x1b1   : > { %v5418_v58 = vpop.permute.xlu0 %1711  ;;  %7489 = vst [vmem:[#allocation75_spill] sm:$0xff] %v5425_v39  ;;  %v2367_v39 = vstv %s4029_s13  ;;  %v2337_v6 = vsel %vm2205_vm8, %v2332_v62, %v2336_v1  ;;  %s5956_s13 = sld [smem:[#allocation3 + $0x25]] }
 0x1b2   : > { %7488 = vst [vmem:[#allocation74_spill] sm:$0xff] %v5418_v58  ;;  %2298 = vrot.lane.b32.xlu1 %v2287_v61, %s4202_s8  ;;  %v2333_v61 = vsel %vm2205_vm8, %v2329_v20, %v2332_v62  ;;  %v2368_v9 = vmul.f32 %v2367_v39, %v5365_v29  ;;  %v2335_v42 = vsel %vm2205_vm8, %v2330_v50, %v2334_v32 }
 0x1b3   : > { %2296 = vrot.lane.b32.xlu0 %v2285_v48, %s4202_s8  ;;  %v2331_v48 = vsel %vm2205_vm8, %v2328_v26, %v2330_v50  ;;  %v2372_v32 = vmul.f32 %v2367_v39, %v5384_v37 }
 0x1b4   : > { %v5435_v3 = vpop.permute.xlu1 %1738  ;;  %v2380_v29 = vrot.slane %v2368_v9, 4  ;;  %v2417_v9 = vstv %s4030_s14  ;;  %s5963_s14 = sld [smem:[#allocation3 + $0x1c]] }
 0x1b5   : > { %v5432_v58 = vpop.permute.xlu0 %1715  ;;  %7491 = vst [vmem:[#allocation77_spill] sm:$0xff] %v5435_v3  ;;  %v2373_v3 = vmul.f32 %v2367_v39, %v5390_v17  ;;  %v2386_v62 = vrot.slane %v2372_v32, 4  ;;  %v2419_v32 = vmul.f32 %v2417_v9, %v5407_v24 }
 0x1b6   : > { %7490 = vst [vmem:[#allocation76_spill] sm:$0xff] %v5432_v58  ;;  %2340 = vrot.lane.b32.xlu1 %v2329_v20, %s4202_s8  ;;  %v2369_v20 = vmul.f32 %v2367_v39, %v5370_v36 }
 0x1b7   : > { %2338 = vrot.lane.b32.xlu0 %v2328_v26, %s4202_s8  ;;  %v2370_v26 = vmul.f32 %v5448_v11, %v2367_v39 }
 0x1b8   : > { %v5443_v58 = vpop.permute.xlu1 %1742 }
 0x1b9   : > { %v5440_v63 = vpop.permute.xlu0 %1740  ;;  %7493 = vst [vmem:[#allocation79_spill] sm:$0xff] %v5443_v58  ;;  %v2371_v58 = vmul.f32 %v2367_v39, %v5372_v13  ;;  %v2382_v50 = vrot.slane %v2370_v26, 4  ;;  %v2388_v26 = vrot.slane %v2373_v3, 4  ;;  %v2418_v39 = vmul.f32 %v2417_v9, %v5401_v5 }
 0x1ba   : > { %7492 = vst [vmem:[#allocation78_spill] sm:$0xff] %v5440_v63  ;;  %2344 = vrot.lane.b32.xlu1 %v2333_v61, %s4202_s8  ;;  %v2381_v61 = vrot.slane %v2369_v20, 4  ;;  %v2421_v3 = vmul.f32 %v2417_v9, %v5409_v2 }
 0x1bb   : > { %2342 = vrot.lane.b32.xlu0 %v2331_v48, %s4202_s8  ;;  %v2383_v1 = vsel %vm2205_vm8, %v2380_v29, %v2382_v50  ;;  %v2387_v20 = vsel %vm2205_vm8, %v2382_v50, %v2386_v62  ;;  %v2430_v5 = vrot.slane %v2418_v39, 4  ;;  %v2422_v50 = vmul.f32 %v2417_v9, %v5421_v54 }
 0x1bc   : > { %v5457_v48 = vpop.permute.xlu1 %1833  ;;  %v5489_v62 = vstv %s3998_s20  ;;  %s6046_s20 = sld [smem:[#allocation3 + $0x56]] }
 0x1bd   : > { %v5452_v51 = vpop.permute.xlu0 %1831  ;;  %7496 = vst [vmem:[#allocation82_spill] sm:$0xff] %v5457_v48  ;;  %v5517_v28 = vmul.f32 %v5040_v40, %v5489_v62 }
 0x1be   : > { %7495 = vst [vmem:[#allocation81_spill] sm:$0xff] %v5452_v51  ;;  %2348 = vrot.lane.b32.xlu1 %v2337_v6, %s4202_s8  ;;  %v2384_v51 = vrot.slane %v2371_v58, 4  ;;  %v2420_v6 = vmul.f32 %v5448_v11, %v2417_v9 }
 0x1bf   : > { %2346 = vrot.lane.b32.xlu0 %v2335_v42, %s4202_s8 }
 0x1c0   : > { %v5465_v18 = vpop.permute.xlu1 %1837  ;;  %v2385_v42 = vsel %vm2205_vm8, %v2381_v61, %v2384_v51 }
 0x1c1   : > { %v5462_v63 = vpop.permute.xlu0 %1835  ;;  %7498 = vst [vmem:[#allocation84_spill] sm:$0xff] %v5465_v18  ;;  %v5503_v18 = vld [vmem:[#allocation2 + $0x18] sm:$0xff] }
 0x1c2   : > { %7497 = vst [vmem:[#allocation83_spill] sm:$0xff] %v5462_v63  ;;  %2392 = vrot.lane.b32.xlu1 %v2381_v61, %s4203_s9  ;;  %v2389_v61 = vsel %vm2205_vm8, %v2384_v51, %v2388_v26  ;;  %v2434_v63 = vrot.slane %v2421_v3, 4  ;;  %v2423_v51 = vmul.f32 %v2417_v9, %v5428_v49  ;;  %v4122_v26 = vld [vmem:[#allocation2] sm:$0x80]  ;;  %7505 = vst [vmem:[#allocation91_spill] sm:$0xff] %v5503_v18 }
 0x1c3   : > { %2390 = vrot.lane.b32.xlu0 %v2380_v29, %s4203_s9  ;;  %v4125_v9 = vld [vmem:[#allocation2 + $0x40] sm:$0x80] }
 0x1c4   : > { %v5473_v58 = vpop.permute.xlu1 %1841  ;;  %v1291_v3 = vmul.f32 %v4125_v9, %v5489_v62  ;;  %v2438_v52 = vrot.slane %v2423_v51, 4 }
 0x1c5   : > { %v5470_v37 = vpop.permute.xlu0 %1839  ;;  %7500 = vst [vmem:[#allocation86_spill] sm:$0xff] %v5473_v58  ;;  %v2432_v58 = vrot.slane %v2420_v6, 4 }
 0x1c6   : > { %7499 = vst [vmem:[#allocation85_spill] sm:$0xff] %v5470_v37  ;;  %2396 = vrot.lane.b32.xlu1 %v2385_v42, %s4203_s9 }
 0x1c7   : > { %2394 = vrot.lane.b32.xlu0 %v2383_v1, %s4203_s9  ;;  %v1254_v1 = vstv %s3997_s18  ;;  %s5990_s18 = sld [smem:[#allocation3 + $0x4d]] }
 0x1c8   : > { %v5485_v37 = vpop.permute.xlu1 %1875  ;;  %v5498_v6 = vmul.f32 %v5448_v11, %v1254_v1 }
 0x1c9   : > { %v5480_v29 = vpop.permute.xlu0 %1873  ;;  %7502 = vst [vmem:[#allocation88_spill] sm:$0xff] %v5485_v37  ;;  %v1255_v37 = vmul.f32 %v4122_v26, %v1254_v1  ;;  %v2433_v26 = vsel %vm2205_vm8, %v2430_v5, %v2432_v58 }
 0x1ca   : > { %7501 = vst [vmem:[#allocation87_spill] sm:$0xff] %v5480_v29  ;;  %2400 = vrot.lane.b32.xlu1 %v2389_v61, %s4203_s9  ;;  %v2431_v29 = vrot.slane %v2419_v32, 4  ;;  %v2469_v61 = vstv %s4031_s21  ;;  %v5506_v32 = vmul.f32 %v5503_v18, %v1254_v1  ;;  %v1269_v59 = vrot.slane %v5498_v6, 2  ;;  %s6141_s21 = sld [smem:[#allocation3 + $0x26]] }
 0x1cb   : > { %2398 = vrot.lane.b32.xlu0 %v2387_v20, %s4203_s9  ;;  %v4123_v20 = vld [vmem:[#allocation2 + $0x8] sm:$0x80]  ;;  %v2472_v51 = vmul.f32 %v2469_v61, %v5390_v17 }
 0x1cc   : > { %v1256_v39 = vmul.f32 %v4123_v20, %v1254_v1  ;;  %v5500_v54 = vpop.permute.xlu1 %1879  ;;  %v4126_v20 = vld [vmem:[#allocation2 + $0x48] sm:$0x80]  ;;  %v2435_v9 = vsel %vm2205_vm8, %v2431_v29, %v2434_v63  ;;  %v7508_v6 = vrot.slane %v5506_v32, 2 }
 0x1cd   : > { %v5492_v42 = vpop.permute.xlu0 %1877  ;;  %7504 = vst [vmem:[#allocation90_spill] sm:$0xff] %v5500_v54  ;;  %v1292_v48 = vmul.f32 %v4126_v20, %v5489_v62  ;;  %v5513_v54 = vmul.f32 %v5448_v11, %v5489_v62  ;;  %v1268_v20 = vrot.slane %v1255_v37, 2 }
 0x1ce   : > { %7503 = vst [vmem:[#allocation89_spill] sm:$0xff] %v5492_v42  ;;  %v2436_v42 = vrot.slane %v2422_v50, 4  ;;  %2442 = vrot.lane.b32.xlu1 %v2431_v29, %s4203_s9  ;;  %v2471_v50 = vmul.f32 %v2469_v61, %v5372_v13  ;;  %v1271_v11 = vrot.slane %v1256_v39, 2  ;;  %v4127_v39 = vld [vmem:[#allocation2 + $0x20] sm:$0x7f] }
 0x1cf   : > { %2440 = vrot.lane.b32.xlu0 %v2430_v5, %s4203_s9  ;;  %v2470_v5 = vmul.f32 %v2469_v61, %v5370_v36  ;;  %v7333_v16 = vrot.slane %v5513_v54, 2  ;;  %v1306_v37 = vrot.slane %v1292_v48, 2  ;;  %v5536_v14 = vmul.f32 %v4127_v39, %v1254_v1 }
 0x1d0   : > { %v5526_v34 = vpop.permute.xlu1 %1883  ;;  %v2437_v29 = vsel %vm2205_vm8, %v2432_v58, %v2436_v42  ;;  %v4128_v58 = vld [vmem:[#allocation2 + $0x28] sm:$0x7f]  ;;  %v5549_v48 = vsel %vm1267_vm5, %v1268_v20, %v1269_v59  ;;  %v2479_v39 = vrot.slane %v2472_v51, 4  ;;  %v853_v20 = vsel %vm412_vm3, %v4997_v55, %v5010_v46 }
 0x1d1   : > { %v5520_v18 = vpop.permute.xlu0 %1881  ;;  %7507 = vst [vmem:[#allocation93_spill] sm:$0xff] %v5526_v34  ;;  %v2439_v34 = vsel %vm2205_vm8, %v2434_v63, %v2438_v52  ;;  %v2476_v40 = vrot.slane %v2470_v5, 4  ;;  %v5543_v42 = vmul.f32 %v4128_v58, %v1254_v1  ;;  %v5555_v52 = vsel %vm1267_vm5, %v1271_v11, %v7508_v6  ;;  %v4129_v6 = vld [vmem:[#allocation2 + $0x60] sm:$0x7f] }
 0x1d2   : > { %7506 = vst [vmem:[#allocation92_spill] sm:$0xff] %v5520_v18  ;;  %v1303_v18 = vrot.slane %v1291_v3, 2  ;;  %2446 = vrot.lane.b32.xlu1 %v2435_v9, %s4203_s9  ;;  %v2477_v3 = vrot.slane %v2471_v50, 4  ;;  %v2498_v9 = vmul.f32 %v2496_v53, %v5409_v2  ;;  %v2497_v50 = vmul.f32 %v2496_v53, %v5407_v24 }
 0x1d3   : > { %2444 = vrot.lane.b32.xlu0 %v2433_v26, %s4203_s9  ;;  %v7510_v11 = vrot.slane %v5517_v28, 2  ;;  %v2499_v51 = vmul.f32 %v2496_v53, %v5428_v49  ;;  %v5581_v58 = vmul.f32 %v4129_v6, %v5489_v62  ;;  %v854_v53 = vsel %vm412_vm3, %v5025_v25, %v5029_v7 }
 0x1d4   : > { %v5545_v61 = vpop.permute.xlu1 %1919  ;;  %v5560_v63 = vsel %vm1267_vm5, %v1303_v18, %v7333_v16  ;;  %v2478_v18 = vsel %vm2205_vm8, %v2476_v40, %v2477_v3  ;;  %v4130_v16 = vld [vmem:[#allocation2 + $0x68] sm:$0x7f]  ;;  %v2480_v6 = vsel %vm2205_vm8, %v2477_v3, %v2479_v39 }
 0x1d5   : > { %v5539_v26 = vpop.permute.xlu0 %1917  ;;  %v5584_v55 = vmul.f32 %v4130_v16, %v5489_v62  ;;  %v863_v16 = vadd.f32 %v5010_v46, %v4992_v31  ;;  %v7512_v62 = vrot.slane %v5536_v14, 2  ;;  %v2506_v3 = vrot.slane %v2499_v51, 4 }
 0x1d6   : > { %2450 = vrot.lane.b32.xlu1 %v2439_v34, %s4203_s9  ;;  %v2504_v34 = vrot.slane %v2498_v9, 4  ;;  %v864_v31 = vadd.f32 %v854_v53, %v5000_v10  ;;  %v865_v46 = vadd.f32 %v5029_v7, %v5003_v12  ;;  %v867_v9 = vadd.f32 %v5043_v56, %v5022_v23 }
 0x1d7   : > { %2448 = vrot.lane.b32.xlu0 %v2437_v29, %s4203_s9  ;;  %v5573_v29 = vsel %vm1267_vm5, %v1306_v37, %v7510_v11  ;;  %v2525_v37 = vstv %s5529_s23  ;;  %v855_v11 = vsel %vm412_vm3, %v5036_v22, %v5043_v56  ;;  %v903_v22 = vsel %vm412_vm3, %v5048_v4, %v5051_v27  ;;  %s6211_s23 = sld [smem:[#allocation3 + $0x27]] }
 0x1d8   : > { %v5586_v1 = vpop.permute.xlu1 %1923  ;;  %v2527_v39 = vmul.f32 %v2525_v37, %v5372_v13  ;;  %v904_v4 = vsel %vm412_vm3, %v5056_v44, %v5059_v8  ;;  %v905_v10 = vsel %vm412_vm3, %v5066_v57, %v5070_v33  ;;  %v913_v7 = vadd.f32 %v5051_v27, %v863_v16 }
 0x1d9   : > { %v5564_v5 = vpop.permute.xlu0 %1921  ;;  %7511 = vst [vmem:[#allocation95_spill] sm:$0xff] %v5586_v1  ;;  %v2503_v1 = vrot.slane %v2497_v50, 4  ;;  %v915_v56 = vadd.f32 %v5059_v8, %v865_v46  ;;  %v2552_v53 = vstv %s5577_s25  ;;  %v956_v27 = vsel %vm495_vm4, %v5084_v43, %v5087_v60  ;;  %s6250_s25 = sld [smem:[#allocation3 + $0x58]] }
 0x1da   : > { %7509 = vst [vmem:[#allocation94_spill] sm:$0xff] %v5564_v5  ;;  %v862_v5 = vadd.f32 %v853_v20, %v4989_v30  ;;  %2483 = vrot.lane.b32.xlu1 %v2478_v18, %s4204_s24  ;;  %v2526_v30 = vmul.f32 %v2525_v37, %v5370_v36  ;;  %v955_v20 = vsel %vm495_vm4, %v5074_v47, %v5078_v0  ;;  %v2533_v51 = vrot.slane %v2527_v39, 4  ;;  %v7513_v39 = vld [vmem:[#allocation11_spill] sm:$0xff] }
 0x1db   : > { %2481 = vrot.lane.b32.xlu0 %v2476_v40, %s4204_s24  ;;  %v5603_v40 = vsel %vm1267_vm5, %v1269_v59, %v7512_v62  ;;  %v866_v59 = vadd.f32 %v855_v11, %v5018_v41  ;;  %v2505_v12 = vsel %vm2205_vm8, %v2503_v1, %v2504_v34  ;;  %v2528_v41 = vmul.f32 %v2525_v37, %v5390_v17 }
 0x1dc   : > { %v5619_v50 = vpop.permute.xlu1 %1927  ;;  %v912_v23 = vadd.f32 %v903_v22, %v862_v5  ;;  %v2507_v18 = vsel %vm2205_vm8, %v2504_v34, %v2506_v3  ;;  %v2532_v57 = vrot.slane %v2526_v30, 4  ;;  %v914_v11 = vadd.f32 %v904_v4, %v864_v31  ;;  %v7514_v31 = vld [vmem:[#allocation10_spill] sm:$0xff] }
 0x1dd   : > { %v5606_v25 = vpop.permute.xlu0 %1925  ;;  %v916_v37 = vadd.f32 %v905_v10, %v866_v59  ;;  %v917_v5 = vadd.f32 %v5070_v33, %v867_v9  ;;  %v965_v47 = vadd.f32 %v5078_v0, %v913_v7  ;;  %v2535_v34 = vrot.slane %v2528_v41, 4 }
 0x1de   : > { %2508 = vrot.lane.b32.xlu1 %v2503_v1, %s4204_s24  ;;  %v1005_v1 = vsel %vm495_vm4, %v5102_v38, %v5106_v19  ;;  %v964_v16 = vadd.f32 %v955_v20, %v912_v23  ;;  %v967_v33 = vadd.f32 %v5087_v60, %v915_v56  ;;  %v957_v43 = vsel %vm495_vm4, %v5093_v45, %v5097_v15  ;;  %v7515_v23 = vld [vmem:[#allocation6_spill] sm:$0xff] }
 0x1df   : > { %2485 = vrot.lane.b32.xlu0 %v2480_v6, %s4204_s24  ;;  %v2554_v6 = vmul.f32 %v2552_v53, %v5409_v2  ;;  %v2553_v0 = vmul.f32 %v2552_v53, %v5407_v24  ;;  %v966_v22 = vadd.f32 %v956_v27, %v914_v11  ;;  %v1006_v38 = vsel %vm495_vm4, %v5112_v21, %v5115_v35 }
 0x1e0   : > { %v5646_v8 = vpop.permute.xlu1 %1961  ;;  %v2534_v3 = vsel %vm2205_vm8, %v2532_v57, %v2533_v51  ;;  %v2555_v30 = vmul.f32 %v2552_v53, %v5428_v49  ;;  %v969_v60 = vadd.f32 %v5097_v15, %v917_v5  ;;  %v1014_v45 = vadd.f32 %v1005_v1, %v964_v16 }
 0x1e1   : > { %v5638_v44 = vpop.permute.xlu0 %1959  ;;  %v1007_v46 = vsel %vm495_vm4, %v7514_v31, %v7513_v39  ;;  %v2581_v9 = vstv %s5622_s26  ;;  %v968_v4 = vadd.f32 %v957_v43, %v916_v37  ;;  %v1015_v21 = vadd.f32 %v5106_v19, %v965_v47  ;;  %v7516_v37 = vld [vmem:[#allocation7_spill] sm:$0xff]  ;;  %v7517_v47 = vld [vmem:[#allocation8_spill] sm:$0xff]  ;;  %v7518_v43 = vld [vmem:[#allocation9_spill] sm:$0xff]  ;;  %s6265_s26 = sld [smem:[#allocation3 + $0x28]] }
 0x1e2   : > { %2512 = vrot.lane.b32.xlu1 %v2507_v18, %s4204_s24  ;;  %v2536_v10 = vsel %vm2205_vm8, %v2533_v51, %v2535_v34  ;;  %v1016_v41 = vadd.f32 %v1006_v38, %v966_v22  ;;  %v1017_v15 = vadd.f32 %v5115_v35, %v967_v33  ;;  %v1043_v7 = vadd.f32 %v7515_v23, %v1014_v45  ;;  %v7519_v22 = vld [vmem:[#allocation12_spill] sm:$0xff] }
 0x1e3   : > { %2510 = vrot.lane.b32.xlu0 %v2505_v12, %s4204_s24  ;;  %v2560_v12 = vrot.slane %v2554_v6, 4  ;;  %v2559_v20 = vrot.slane %v2553_v0, 4  ;;  %v1018_v18 = vadd.f32 %v1007_v46, %v968_v4  ;;  %v2582_v53 = vmul.f32 %v2581_v9, %v5370_v36 }
 0x1e4   : > { %v5673_v59 = vpop.permute.xlu1 %1965  ;;  %v2583_v19 = vmul.f32 %v2581_v9, %v5372_v13  ;;  %v1019_v11 = vadd.f32 %v7513_v39, %v969_v60  ;;  %v1044_v51 = vadd.f32 %v7515_v23, %v1015_v21  ;;  %v1045_v5 = vadd.f32 %v7516_v37, %v1016_v41 }
 0x1e5   : > { %v5659_v62 = vpop.permute.xlu0 %1963  ;;  %v1046_v35 = vadd.f32 %v7516_v37, %v1017_v15  ;;  %v1047_v1 = vadd.f32 %v7517_v47, %v1018_v18  ;;  %v7336_v34 = vrot.slane %v5581_v58, 2  ;;  %v2561_v6 = vsel %vm2205_vm8, %v2559_v20, %v2560_v12  ;;  %v7527_v37 = vld [vmem:[#allocation15_spill] sm:$0xff] }
 0x1e6   : > { %2539 = vrot.lane.b32.xlu1 %v2534_v3, %s4205_s27  ;;  %v2584_v16 = vmul.f32 %v2581_v9, %v5390_v17  ;;  %v1048_v33 = vadd.f32 %v7517_v47, %v1019_v11  ;;  %v1070_v0 = vadd.f32 %v7518_v43, %v1043_v7  ;;  %v1072_v38 = vadd.f32 %v7519_v22, %v1045_v5  ;;  %v7521_v9 = vld [vmem:[#allocation14_spill] sm:$0xff] }
 0x1e7   : > { %2537 = vrot.lane.b32.xlu0 %v2532_v57, %s4205_s27  ;;  %v2562_v57 = vrot.slane %v2555_v30, 4  ;;  %v1073_v3 = vadd.f32 %v7519_v22, %v1046_v35  ;;  %v2588_v45 = vrot.slane %v2582_v53, 4  ;;  %v2589_v39 = vrot.slane %v2583_v19, 4 }
 0x1e8   : > { %v5692_v27 = vpop.permute.xlu1 %1969  ;;  %v2608_v31 = vstv %s5667_s28  ;;  %v1071_v46 = vadd.f32 %v7518_v43, %v1044_v51  ;;  %v1099_v4 = vadd.f32 %v7521_v9, %v1070_v0  ;;  %v7522_v21 = vrot.slane %v5543_v42, 2  ;;  %v7529_v43 = vld [vmem:[#allocation17_spill] sm:$0xff]  ;;  %s6303_s28 = sld [smem:[#allocation3 + $0x59]] }
 0x1e9   : > { %v5684_v56 = vpop.permute.xlu0 %1967  ;;  %v2563_v60 = vsel %vm2205_vm8, %v2560_v12, %v2562_v57  ;;  %v7335_v15 = vrot.slane %v5584_v55, 2  ;;  %v7524_v12 = vrot.slane %v5513_v54, 2  ;;  %v2610_v18 = vmul.f32 %v2608_v31, %v5409_v2  ;;  %v7525_v57 = vld [vmem:[#allocation13_spill] sm:$0xff] }
 0x1ea   : > { %2564 = vrot.lane.b32.xlu1 %v2559_v20, %s4205_s27  ;;  %v5733_v20 = vstv %s5678_s29  ;;  %v1074_v53 = vadd.f32 %v7525_v57, %v1047_v1  ;;  %v1075_v19 = vadd.f32 %v7525_v57, %v1048_v33  ;;  %v1100_v11 = vadd.f32 %v7521_v9, %v1071_v46  ;;  %v7528_v1 = vld [vmem:[#allocation16_spill] sm:$0xff]  ;;  %s6322_s29 = sld [smem:[#allocation3 + $0x29]] }
 0x1eb   : > { %2541 = vrot.lane.b32.xlu0 %v2536_v10, %s4205_s27  ;;  %v7523_v10 = vrot.slane %v5506_v32, 2  ;;  %v5728_v7 = vsel %vm1267_vm5, %v7524_v12, %v7336_v34  ;;  %v2591_v32 = vrot.slane %v2584_v16, 4  ;;  %v2609_v51 = vmul.f32 %v2608_v31, %v5407_v24  ;;  %v7533_v12 = vld [vmem:[#allocation20_spill] sm:$0xff] }
 0x1ec   : > { %v5720_v23 = vpop.permute.xlu1 %1998  ;;  %v1101_v5 = vadd.f32 %v7527_v37, %v1072_v38  ;;  %v1102_v35 = vadd.f32 %v7527_v37, %v1073_v3  ;;  %v2590_v47 = vsel %vm2205_vm8, %v2588_v45, %v2589_v39  ;;  %v1103_v16 = vadd.f32 %v7528_v1, %v1074_v53  ;;  %v7531_v38 = vld [vmem:[#allocation18_spill] sm:$0xff] }
 0x1ed   : > { %v5706_v30 = vpop.permute.xlu0 %1996  ;;  %v5717_v41 = vsel %vm1267_vm5, %v7523_v10, %v7522_v21  ;;  %v1104_v33 = vadd.f32 %v7528_v1, %v1075_v19  ;;  %v1126_v0 = vadd.f32 %v7529_v43, %v1099_v4  ;;  %v7532_v3 = vrot.slane %v5517_v28, 2  ;;  %v7535_v28 = vld [vmem:[#allocation80_spill] sm:$0xff]  ;;  %v7537_v1 = vld [vmem:[#allocation91_spill] sm:$0xff] }
 0x1ee   : > { %7520 = vst [vmem:[#allocation11_spill] sm:$0xff] %v5706_v30  ;;  %2568 = vrot.lane.b32.xlu1 %v2563_v60, %s4205_s27  ;;  %v2637_v60 = vstv %s5695_s30  ;;  %v1128_v46 = vadd.f32 %v7531_v38, %v1101_v5  ;;  %v2592_v9 = vsel %vm2205_vm8, %v2589_v39, %v2591_v32  ;;  %v2616_v21 = vrot.slane %v2610_v18, 4  ;;  %v7536_v32 = vld [vmem:[#allocation19_spill] sm:$0xff]  ;;  %s6357_s30 = sld [smem:[#allocation3 + $0x5a]] }
 0x1ef   : > { %2566 = vrot.lane.b32.xlu0 %v2561_v6, %s4205_s27  ;;  %v2611_v6 = vmul.f32 %v2608_v31, %v5428_v49  ;;  %v5762_v31 = vsel %vm1267_vm5, %v7532_v3, %v7335_v15  ;;  %v1127_v10 = vadd.f32 %v7529_v43, %v1100_v11  ;;  %v1129_v4 = vadd.f32 %v7531_v38, %v1102_v35  ;;  %v7540_v38 = vld [vmem:[#allocation22_spill] sm:$0xff] }
 0x1f0   : > { %v5752_v22 = vpop.permute.xlu1 %2019  ;;  %v2615_v53 = vrot.slane %v2609_v51, 4  ;;  %v1760_v19 = vmul.f32 %v7535_v28, %v5733_v20  ;;  %v2638_v5 = vmul.f32 %v2637_v60, %v5370_v36  ;;  %v2639_v39 = vmul.f32 %v2637_v60, %v5372_v13  ;;  %v7539_v51 = vld [vmem:[#allocation21_spill] sm:$0xff] }
 0x1f1   : > { %v5740_v54 = vpop.permute.xlu0 %2000  ;;  %7530 = vst [vmem:[#allocation6_spill] sm:$0xff] %v5752_v22  ;;  %v2618_v37 = vrot.slane %v2611_v6, 4  ;;  %v1130_v18 = vadd.f32 %v7536_v32, %v1103_v16  ;;  %v1131_v11 = vadd.f32 %v7536_v32, %v1104_v33  ;;  %v1156_v35 = vadd.f32 %v7533_v12, %v1127_v10 }
 0x1f2   : > { %7526 = vst [vmem:[#allocation10_spill] sm:$0xff] %v5740_v54  ;;  %2595 = vrot.lane.b32.xlu1 %v2590_v47, %s4206_s6  ;;  %v5780_v47 = vmul.f32 %v7537_v1, %v5733_v20  ;;  %v1157_v6 = vadd.f32 %v7539_v51, %v1128_v46  ;;  %v1787_v36 = vstv %s5730_s5  ;;  %v2640_v16 = vmul.f32 %v2637_v60, %v5390_v17  ;;  %v7543_v60 = vld [vmem:[#allocation24_spill] sm:$0xff]  ;;  %s6400_s5 = sld [smem:[#allocation3 + $0x2b]] }
 0x1f3   : > { %2593 = vrot.lane.b32.xlu0 %v2588_v45, %s4206_s6  ;;  %v1155_v45 = vadd.f32 %v7533_v12, %v1126_v0  ;;  %v2617_v0 = vsel %vm2205_vm8, %v2615_v53, %v2616_v21  ;;  %v1158_v33 = vadd.f32 %v7539_v51, %v1129_v4  ;;  %v1159_v3 = vadd.f32 %v7540_v38, %v1130_v18  ;;  %v7541_v12 = vld [vmem:[#allocation23_spill] sm:$0xff] }
 0x1f4   : > { %v5782_v43 = vpop.permute.xlu1 %2023  ;;  %v1160_v10 = vadd.f32 %v7540_v38, %v1131_v11  ;;  %v2619_v46 = vsel %vm2205_vm8, %v2616_v21, %v2618_v37  ;;  %v2644_v1 = vrot.slane %v2638_v5, 4  ;;  %v2645_v15 = vrot.slane %v2639_v39, 4  ;;  %v7546_v5 = vld [vmem:[#allocation25_spill] sm:$0xff] }
 0x1f5   : > { %v5769_v57 = vpop.permute.xlu0 %2021  ;;  %7538 = vst [vmem:[#allocation8_spill] sm:$0xff] %v5782_v43  ;;  %v1182_v32 = vadd.f32 %v7541_v12, %v1155_v45  ;;  %v2664_v34 = vstv %s5747_s7  ;;  %v1183_v17 = vadd.f32 %v7541_v12, %v1156_v35  ;;  %v1185_v43 = vadd.f32 %v7543_v60, %v1158_v33  ;;  %s6472_s7 = sld [smem:[#allocation3 + $0x5c]] }
 0x1f6   : > { %7534 = vst [vmem:[#allocation7_spill] sm:$0xff] %v5769_v57  ;;  %2620 = vrot.lane.b32.xlu1 %v2615_v53, %s4206_s6  ;;  %v5802_v4 = vrot.slane %v1760_v19, 3  ;;  %v1184_v45 = vadd.f32 %v7543_v60, %v1157_v6  ;;  %v7545_v53 = vld [vmem:[#allocation26_spill] sm:$0xff]  ;;  %v2647_v21 = vrot.slane %v2640_v16, 4  ;;  %v2666_v37 = vmul.f32 %v2664_v34, %v5409_v2  ;;  %v4131_v6 = vld [vmem:[#allocation2 + $0x58] sm:$0xff]  ;;  %v7549_v60 = vld [vmem:[#allocation28_spill] sm:$0xff] }
 0x1f7   : > { %2597 = vrot.lane.b32.xlu0 %v2592_v9, %s4206_s6  ;;  %v1211_v51 = vadd.f32 %v7545_v53, %v1182_v32  ;;  %v1186_v39 = vadd.f32 %v7546_v5, %v1159_v3  ;;  %v1187_v35 = vadd.f32 %v7546_v5, %v1160_v10  ;;  %v1212_v19 = vadd.f32 %v7545_v53, %v1183_v17  ;;  %v7548_v32 = vld [vmem:[#allocation27_spill] sm:$0xff] }
 0x1f8   : > { %v5805_v11 = vpop.permute.xlu1 %2046  ;;  %v2665_v38 = vmul.f32 %v2664_v34, %v5407_v24  ;;  %v5819_v12 = vmul.f32 %v4131_v6, %v1787_v36  ;;  %v2646_v16 = vsel %vm2205_vm8, %v2644_v1, %v2645_v15  ;;  %v2667_v3 = vmul.f32 %v2664_v34, %v5428_v49  ;;  %v4132_v53 = vld [vmem:[#allocation2 + $0x28] sm:$0xff]  ;;  %v7551_v6 = vld [vmem:[#allocation29_spill] sm:$0xff]  ;;  %v5834_v49 = vld [vmem:[#allocation2 + $0x10] sm:$0xfc] }
 0x1f9   : > { %v5796_v9 = vpop.permute.xlu0 %2044  ;;  %7544 = vst [vmem:[#allocation12_spill] sm:$0xff] %v5805_v11  ;;  %v1214_v10 = vadd.f32 %v7548_v32, %v1185_v43  ;;  %v1215_v17 = vadd.f32 %v7549_v60, %v1186_v39  ;;  %v5827_v5 = vmul.f32 %v4132_v53, %v5733_v20  ;;  %v2672_v22 = vrot.slane %v2666_v37, 4  ;;  %v7619_v11 = vld [vmem:[#allocation65_spill] sm:$0xff] }
 0x1fa   : > { %7542 = vst [vmem:[#allocation9_spill] sm:$0xff] %v5796_v9  ;;  %2624 = vrot.lane.b32.xlu1 %v2619_v46, %s4206_s6  ;;  %v1216_v46 = vadd.f32 %v7549_v60, %v1187_v35  ;;  %v2648_v9 = vsel %vm2205_vm8, %v2645_v15, %v2647_v21  ;;  %v2774_v34 = vstv %s5789_s10  ;;  %v1213_v43 = vadd.f32 %v7548_v32, %v1184_v45  ;;  %v7552_v35 = vld [vmem:[#allocation30_spill] sm:$0xff]  ;;  %v4133_v15 = vld [vmem:[#allocation2 + $0x68] sm:$0xff]  ;;  %s6485_s10 = sld [smem:[#allocation3 + $0x23]] }
 0x1fb   : > { %2622 = vrot.lane.b32.xlu0 %v2617_v0, %s4206_s6  ;;  %v1788_v0 = vmul.f32 %v7535_v28, %v1787_v36  ;;  %v1239_v39 = vadd.f32 %v7551_v6, %v1212_v19  ;;  %v1241_v60 = vadd.f32 %v7552_v35, %v1214_v10  ;;  %v2671_v53 = vrot.slane %v2665_v38, 4  ;;  %v7554_v19 = vld [vmem:[#allocation31_spill] sm:$0xff] }
 0x1fc   : > { %v5829_v18 = vpop.permute.xlu1 %2067  ;;  %v5846_v21 = vmul.f32 %v4133_v15, %v1787_v36  ;;  %v2674_v37 = vrot.slane %v2667_v3, 4  ;;  %v1240_v45 = vadd.f32 %v7552_v35, %v1213_v43  ;;  %v1242_v32 = vadd.f32 %v7554_v19, %v1215_v17  ;;  %v5886_v36 = vld [vmem:[#allocation2 + $0x38] sm:$0x3] }
 0x1fd   : > { %v5815_v33 = vpop.permute.xlu0 %2048  ;;  %7550 = vst [vmem:[#allocation13_spill] sm:$0xff] %v5829_v18  ;;  %v5848_v18 = vld [vmem:[#allocation2 + $0x18] sm:$0xfc]  ;;  %v1243_v10 = vadd.f32 %v7554_v19, %v1216_v46  ;;  %v2775_v38 = vmul.f32 %v2774_v34, %v5834_v49  ;;  %v2673_v3 = vsel %vm2205_vm8, %v2671_v53, %v2672_v22  ;;  %v1285_v17 = vadd.f32 %v5555_v52, %v1239_v39 }
 0x1fe   : > { %7547 = vst [vmem:[#allocation14_spill] sm:$0xff] %v5815_v33  ;;  %v1238_v33 = vadd.f32 %v7551_v6, %v1211_v51  ;;  %2651 = vrot.lane.b32.xlu1 %v2646_v16, %s4207_s11  ;;  %v5861_v6 = vmul.f32 %v7535_v28, %v2774_v34  ;;  %v1287_v46 = vadd.f32 %v5717_v41, %v1241_v60  ;;  %v7558_v52 = vrot.slane %v5536_v14, 2 }
 0x1ff   : > { %2649 = vrot.lane.b32.xlu0 %v2644_v1, %s4207_s11  ;;  %v5843_v1 = vrot.slane %v1788_v0, 3  ;;  %v2776_v43 = vmul.f32 %v2774_v34, %v5848_v18  ;;  %v2675_v35 = vsel %vm2205_vm8, %v2672_v22, %v2674_v37  ;;  %v5876_v15 = vmul.f32 %v2774_v34, %v5372_v13 }
 0x200   : > { %v5853_v16 = vpop.permute.xlu1 %2071  ;;  %v1284_v0 = vadd.f32 %v5549_v48, %v1238_v33  ;;  %v5871_v48 = vld [vmem:[#allocation2 + $0x30] sm:$0x3]  ;;  %v1286_v19 = vadd.f32 %v5603_v40, %v1240_v45  ;;  %v1288_v41 = vadd.f32 %v7558_v52, %v1242_v32  ;;  %v7559_v39 = vrot.slane %v5543_v42, 2  ;;  %v7566_v52 = vld [vmem:[#allocation35_spill] sm:$0xff] }
 0x201   : > { %v5841_v20 = vpop.permute.xlu0 %2069  ;;  %7555 = vst [vmem:[#allocation16_spill] sm:$0xff] %v5853_v16  ;;  %7557 = vst [vmem:[#allocation18_spill] sm:$0xff] %v5871_v48  ;;  %v2787_v51 = vrot.slane %v2775_v38, 5  ;;  %v7561_v13 = vrot.slane %v5827_v5, 3  ;;  %v7562_v37 = vrot.slane %v5780_v47, 3  ;;  %v2789_v14 = vrot.slane %v5861_v6, 5 }
 0x202   : > { %7553 = vst [vmem:[#allocation15_spill] sm:$0xff] %v5841_v20  ;;  %2676 = vrot.lane.b32.xlu1 %v2671_v53, %s4207_s11  ;;  %v1289_v60 = vadd.f32 %v7559_v39, %v1243_v10  ;;  %v1319_v22 = vadd.f32 %v5560_v63, %v1284_v0  ;;  %v2779_v42 = vmul.f32 %v2774_v34, %v5871_v48  ;;  %v2788_v63 = vrot.slane %v2776_v43, 5  ;;  %v7564_v38 = vld [vmem:[#allocation33_spill] sm:$0xff]  ;;  %v7565_v0 = vld [vmem:[#allocation32_spill] sm:$0xff]  ;;  %v7567_v39 = vld [vmem:[#allocation34_spill] sm:$0xff] }
 0x203   : > { %2653 = vrot.lane.b32.xlu0 %v2648_v9, %s4207_s11  ;;  %v5894_v40 = vsel %vm1768_vm7, %v7562_v37, %v7561_v13  ;;  %v1320_v45 = vadd.f32 %v5573_v29, %v1285_v17  ;;  %v1322_v32 = vadd.f32 %v5762_v31, %v1287_v46  ;;  %v1363_v6 = vsel %vm412_vm3, %v7567_v39, %v7566_v52  ;;  %v7572_v39 = vld [vmem:[#allocation36_spill] sm:$0xff]  ;;  %v7594_v16 = vld [vmem:[#allocation55_spill] sm:$0xff] }
 0x204   : > { %v5883_v53 = vpop.permute.xlu1 %2094  ;;  %v2791_v13 = vrot.slane %v5876_v15, 5  ;;  %v2780_v29 = vmul.f32 %v2774_v34, %v5886_v36  ;;  %v1321_v31 = vadd.f32 %v5728_v7, %v1286_v19  ;;  %v7568_v17 = vrot.slane %v5581_v58, 2  ;;  %v5924_v7 = vld [vmem:[#allocation2 + $0x50] sm:$0xfc]  ;;  %v4138_v20 = vld [vmem:[#allocation2 + $0x30] sm:$0x1] }
 0x205   : > { %v5868_v9 = vpop.permute.xlu0 %2092  ;;  %7560 = vst [vmem:[#allocation20_spill] sm:$0xff] %v5883_v53  ;;  %v7569_v43 = vrot.slane %v5584_v55, 2  ;;  %v1372_v37 = vadd.f32 %v7564_v38, %v1320_v45  ;;  %v2790_v34 = vsel %vm2714_vm9, %v2787_v51, %v2789_v14  ;;  %v2824_v58 = vstv %s5863_s12  ;;  %v7574_v45 = vld [vmem:[#allocation38_spill] sm:$0xff]  ;;  %s6532_s12 = sld [smem:[#allocation3 + $0x54]] }
 0x206   : > { %7556 = vst [vmem:[#allocation17_spill] sm:$0xff] %v5868_v9  ;;  %2680 = vrot.lane.b32.xlu1 %v2675_v35, %s4207_s11  ;;  %v1323_v46 = vadd.f32 %v7568_v17, %v1288_v41  ;;  %v1373_v41 = vadd.f32 %v1363_v6, %v1321_v31  ;;  %v1374_v55 = vadd.f32 %v7566_v52, %v1322_v32  ;;  %v7578_v6 = vld [vmem:[#allocation43_spill] sm:$0xff]  ;;  %v7579_v31 = vld [vmem:[#allocation42_spill] sm:$0xff] }
 0x207   : > { %2678 = vrot.lane.b32.xlu0 %v2673_v3, %s4207_s11  ;;  %v1362_v3 = vsel %vm412_vm3, %v7565_v0, %v7564_v38  ;;  %v1324_v35 = vadd.f32 %v7569_v43, %v1289_v60  ;;  %v7571_v0 = vld [vmem:[#allocation37_spill] sm:$0xff]  ;;  %v7573_v60 = vld [vmem:[#allocation39_spill] sm:$0xff] }
 0x208   : > { %v5917_v33 = vpop.permute.xlu1 %2115  ;;  %v1364_v15 = vsel %vm412_vm3, %v7572_v39, %v7571_v0  ;;  %v1371_v19 = vadd.f32 %v1362_v3, %v1319_v22  ;;  %v1412_v38 = vsel %vm412_vm3, %v7574_v45, %v7573_v60  ;;  %v7576_v39 = vld [vmem:[#allocation41_spill] sm:$0xff]  ;;  %v2795_v22 = vrot.slane %v2780_v29, 5 }
 0x209   : > { %v5901_v10 = vpop.permute.xlu0 %2096  ;;  %7570 = vst [vmem:[#allocation19_spill] sm:$0xff] %v5917_v33  ;;  %v1376_v43 = vadd.f32 %v7571_v0, %v1324_v35  ;;  %v2792_v33 = vsel %vm2714_vm9, %v2788_v63, %v2791_v13  ;;  %v5939_v3 = vld [vmem:[#allocation2 + $0x58] sm:$0xfc]  ;;  %v1375_v32 = vadd.f32 %v1364_v15, %v1323_v46  ;;  %v1422_v52 = vadd.f32 %v7573_v60, %v1372_v37 }
 0x20a   : > { %7563 = vst [vmem:[#allocation80_spill] sm:$0xff] %v5901_v10  ;;  %v2793_v10 = vrot.slane %v2779_v42, 5  ;;  %2799 = vrot.lane.b32.xlu1 %v2788_v63, %s4202_s8  ;;  %v1414_v45 = vsel %vm412_vm3, %v7579_v31, %v7578_v6  ;;  %v2825_v35 = vmul.f32 %v2824_v58, %v5924_v7  ;;  %v1421_v0 = vadd.f32 %v1412_v38, %v1371_v19  ;;  %v5966_v38 = vld [vmem:[#allocation2 + $0x70] sm:$0x3] }
 0x20b   : > { %2797 = vrot.lane.b32.xlu0 %v2787_v51, %s4202_s8  ;;  %v7577_v51 = vld [vmem:[#allocation40_spill] sm:$0xff]  ;;  %v5954_v46 = vmul.f32 %v7535_v28, %v2824_v58  ;;  %v1424_v15 = vadd.f32 %v7576_v39, %v1374_v55  ;;  %v1426_v60 = vadd.f32 %v7578_v6, %v1376_v43  ;;  %v2826_v19 = vmul.f32 %v2824_v58, %v5939_v3 }
 0x20c   : > { %v1413_v42 = vsel %vm412_vm3, %v7577_v51, %v7576_v39  ;;  %v5945_v9 = vpop.permute.xlu1 %2119  ;;  %v7581_v51 = vld [vmem:[#allocation45_spill] sm:$0xff]  ;;  %v2794_v29 = vsel %vm2714_vm9, %v2789_v14, %v2793_v10  ;;  %v1425_v14 = vadd.f32 %v1414_v45, %v1375_v32  ;;  %v7584_v10 = vld [vmem:[#allocation47_spill] sm:$0xff]  ;;  %v5973_v55 = vmul.f32 %v2824_v58, %v5409_v2 }
 0x20d   : > { %v5932_v17 = vpop.permute.xlu0 %2117  ;;  %7580 = vst [vmem:[#allocation21_spill] sm:$0xff] %v5945_v9  ;;  %v1423_v37 = vadd.f32 %v1413_v42, %v1373_v41  ;;  %v2796_v41 = vsel %vm2714_vm9, %v2791_v13, %v2795_v22  ;;  %v7586_v39 = vld [vmem:[#allocation49_spill] sm:$0xff]  ;;  %v7587_v42 = vld [vmem:[#allocation48_spill] sm:$0xff]  ;;  %v2837_v32 = vrot.slane %v2825_v35, 5  ;;  %v7590_v9 = vld [vmem:[#allocation50_spill] sm:$0xff] }
 0x20e   : > { %7575 = vst [vmem:[#allocation91_spill] sm:$0xff] %v5932_v17  ;;  %v7582_v17 = vld [vmem:[#allocation44_spill] sm:$0xff]  ;;  %2803 = vrot.lane.b32.xlu1 %v2792_v33, %s4202_s8  ;;  %v1474_v33 = vadd.f32 %v7581_v51, %v1422_v52  ;;  %v1466_v6 = vsel %vm495_vm4, %v7587_v42, %v7586_v39  ;;  %v5982_v45 = vld [vmem:[#allocation2 + $0x78] sm:$0x3]  ;;  %v2839_v52 = vrot.slane %v5954_v46, 5  ;;  %v1478_v35 = vadd.f32 %v7586_v39, %v1426_v60 }
 0x20f   : > { %2801 = vrot.lane.b32.xlu0 %v2790_v34, %s4202_s8  ;;  %v1464_v63 = vsel %vm495_vm4, %v7582_v17, %v7581_v51  ;;  %v7585_v17 = vld [vmem:[#allocation46_spill] sm:$0xff]  ;;  %v7591_v2 = vld [vmem:[#allocation53_spill] sm:$0xff]  ;;  %v7592_v22 = vld [vmem:[#allocation52_spill] sm:$0xff]  ;;  %v2829_v51 = vmul.f32 %v2824_v58, %v5966_v38  ;;  %v2841_v46 = vrot.slane %v5973_v55, 5 }
 0x210   : > { %v1465_v31 = vsel %vm495_vm4, %v7585_v17, %v7584_v10  ;;  %v1473_v43 = vadd.f32 %v1464_v63, %v1421_v0  ;;  %v7589_v17 = vld [vmem:[#allocation51_spill] sm:$0xff]  ;;  %v1515_v0 = vsel %vm495_vm4, %v7592_v22, %v7591_v2  ;;  %v7595_v22 = vld [vmem:[#allocation54_spill] sm:$0xff]  ;;  %v7597_v55 = vld [vmem:[#allocation56_spill] sm:$0xff] }
 0x211   : > { %v5961_v34 = vpop.permute.xlu0 %2140  ;;  %v1514_v13 = vsel %vm495_vm4, %v7590_v9, %v7589_v17  ;;  %v1475_v63 = vadd.f32 %v1465_v31, %v1423_v37  ;;  %v2838_v9 = vrot.slane %v2826_v19, 5  ;;  %v1516_v53 = vsel %vm495_vm4, %v7595_v22, %v7594_v16 }
 0x212   : > { %7583 = vst [vmem:[#allocation22_spill] sm:$0xff] %v5961_v34  ;;  %v5979_v34 = vpop.permute.xlu1 %2142  ;;  %2807 = vrot.lane.b32.xlu1 %v2796_v41, %s4202_s8  ;;  %v2830_v37 = vmul.f32 %v2824_v58, %v5982_v45  ;;  %v1523_v31 = vadd.f32 %v1514_v13, %v1473_v43  ;;  %v1528_v19 = vadd.f32 %v7594_v16, %v1478_v35  ;;  %v2843_v39 = vrot.slane %v2829_v51, 5  ;;  %v7602_v51 = vld [vmem:[#allocation58_spill] sm:$0xff] }
 0x213   : > { %7588 = vst [vmem:[#allocation23_spill] sm:$0xff] %v5979_v34  ;;  %2805 = vrot.lane.b32.xlu0 %v2794_v29, %s4202_s8  ;;  %v1476_v29 = vadd.f32 %v7584_v10, %v1424_v15  ;;  %v1477_v34 = vadd.f32 %v1466_v6, %v1425_v14  ;;  %v1524_v15 = vadd.f32 %v7589_v17, %v1474_v33  ;;  %v2876_v6 = vstv %s5956_s13  ;;  %v7599_v17 = vld [vmem:[#allocation57_spill] sm:$0xff]  ;;  %s6617_s13 = sld [smem:[#allocation3 + $0x2c]] }
 0x214   : > { %v1525_v60 = vadd.f32 %v1515_v0, %v1475_v63  ;;  %v2840_v14 = vsel %vm2714_vm9, %v2837_v32, %v2839_v52  ;;  %v6015_v43 = vstv %s5963_s14  ;;  %v7600_v16 = vrot.slane %v5846_v21, 3  ;;  %s6805_s14 = sld [smem:[#allocation3 + $0x5d]] }
 0x215   : > { %v5997_v42 = vpop.permute.xlu0 %2144  ;;  %v1526_v10 = vadd.f32 %v7591_v2, %v1476_v29  ;;  %v1527_v22 = vadd.f32 %v1516_v53, %v1477_v34  ;;  %v1553_v58 = vadd.f32 %v7597_v55, %v1524_v15  ;;  %v2842_v53 = vsel %vm2714_vm9, %v2838_v9, %v2841_v46  ;;  %v4134_v15 = vld [vmem:[#allocation2 + $0x10] sm:$0xfe] }
 0x216   : > { %7593 = vst [vmem:[#allocation24_spill] sm:$0xff] %v5997_v42  ;;  %v6006_v41 = vpop.permute.xlu1 %2163  ;;  %v1552_v42 = vadd.f32 %v7597_v55, %v1523_v31  ;;  %2849 = vrot.lane.b32.xlu1 %v2838_v9, %s4202_s8  ;;  %v1554_v13 = vadd.f32 %v7599_v17, %v1525_v60  ;;  %v2845_v34 = vrot.slane %v2830_v37, 5  ;;  %v1557_v29 = vadd.f32 %v7602_v51, %v1528_v19 }
 0x217   : > { %7596 = vst [vmem:[#allocation26_spill] sm:$0xff] %v6006_v41  ;;  %2847 = vrot.lane.b32.xlu0 %v2837_v32, %s4202_s8  ;;  %v7601_v32 = vrot.slane %v5819_v12, 3  ;;  %v1555_v0 = vadd.f32 %v7599_v17, %v1526_v10  ;;  %v1556_v63 = vadd.f32 %v7602_v51, %v1527_v22  ;;  %v2877_v31 = vmul.f32 %v2876_v6, %v5834_v49  ;;  %v7605_v10 = vld [vmem:[#allocation59_spill] sm:$0xff] }
 0x218   : > { %v6037_v60 = vmul.f32 %v4134_v15, %v6015_v43  ;;  %v6040_v55 = vstv %s5990_s18  ;;  %v2844_v9 = vsel %vm2714_vm9, %v2839_v52, %v2843_v39  ;;  %v6044_v37 = vmul.f32 %v7535_v28, %v2876_v6  ;;  %v7608_v52 = vld [vmem:[#allocation60_spill] sm:$0xff]  ;;  %v6060_v15 = vld [vmem:[#allocation2 + $0x28] sm:$0xff]  ;;  %s6926_s18 = sld [smem:[#allocation3 + $0x5e]] }
 0x219   : > { %v6018_v33 = vpop.permute.xlu0 %2165  ;;  %v6026_v2 = vsel %vm1768_vm7, %v7601_v32, %v7600_v16  ;;  %v1579_v19 = vadd.f32 %v7605_v10, %v1552_v42  ;;  %v1580_v22 = vadd.f32 %v7605_v10, %v1553_v58  ;;  %v2878_v16 = vmul.f32 %v2876_v6, %v5848_v18  ;;  %v7609_v58 = vld [vmem:[#allocation61_spill] sm:$0xff]  ;;  %v7614_v41 = vld [vmem:[#allocation63_spill] sm:$0xff] }
 0x21a   : > { %7598 = vst [vmem:[#allocation25_spill] sm:$0xff] %v6018_v33  ;;  %v6032_v35 = vpop.permute.xlu1 %2167  ;;  %7604 = vst [vmem:[#allocation28_spill] sm:$0xff] %v6037_v60  ;;  %2853 = vrot.lane.b32.xlu1 %v2842_v53, %s4202_s8  ;;  %v1581_v39 = vadd.f32 %v7608_v52, %v1554_v13  ;;  %v1582_v32 = vadd.f32 %v7608_v52, %v1555_v0  ;;  %v2846_v51 = vsel %vm2714_vm9, %v2841_v46, %v2845_v34 }
 0x21b   : > { %7603 = vst [vmem:[#allocation27_spill] sm:$0xff] %v6032_v35  ;;  %2851 = vrot.lane.b32.xlu0 %v2840_v14, %s4202_s8  ;;  %v4135_v14 = vld [vmem:[#allocation2 + $0x18] sm:$0xfe]  ;;  %v6063_v42 = vmul.f32 %v6060_v15, %v2876_v6  ;;  %v1583_v10 = vadd.f32 %v7609_v58, %v1556_v63  ;;  %v6068_v53 = vmul.f32 %v6040_v55, %v5407_v24  ;;  %v2889_v46 = vrot.slane %v2877_v31, 5  ;;  %v4137_v35 = vld [vmem:[#allocation2 + $0x50] sm:$0xfe] }
 0x21c   : > { %v6051_v49 = vmul.f32 %v4135_v14, %v6015_v43  ;;  %v6072_v14 = vmul.f32 %v7535_v28, %v6015_v43  ;;  %v1584_v34 = vadd.f32 %v7609_v58, %v1557_v29  ;;  %v2891_v52 = vrot.slane %v6044_v37, 5 }
 0x21d   : > { %v6054_v17 = vpop.permute.xlu0 %2288  ;;  %v2881_v63 = vmul.f32 %v2876_v6, %v5871_v48  ;;  %v2890_v29 = vrot.slane %v2878_v16, 5  ;;  %v2893_v24 = vrot.slane %v6063_v42, 5  ;;  %v2882_v0 = vmul.f32 %v2876_v6, %v5886_v36 }
 0x21e   : > { %7606 = vst [vmem:[#allocation29_spill] sm:$0xff] %v6051_v49  ;;  %7607 = vst [vmem:[#allocation30_spill] sm:$0xff] %v6054_v17  ;;  %v6074_v13 = vpop.permute.xlu1 %2290  ;;  %v6084_v17 = vmul.f32 %v6060_v15, %v6015_v43  ;;  %2857 = vrot.lane.b32.xlu1 %v2846_v51, %s4202_s8  ;;  %v1610_v48 = vadd.f32 %v7614_v41, %v1581_v39  ;;  %v6100_v51 = vmul.f32 %v4138_v20, %v6015_v43 }
 0x21f   : > { %7610 = vst [vmem:[#allocation31_spill] sm:$0xff] %v6074_v13  ;;  %2855 = vrot.lane.b32.xlu0 %v2844_v9, %s4202_s8  ;;  %v6087_v13 = vmul.f32 %v4137_v35, %v6040_v55  ;;  %v7613_v9 = vld [vmem:[#allocation62_spill] sm:$0xff]  ;;  %v2892_v6 = vsel %vm2714_vm9, %v2889_v46, %v2891_v52  ;;  %v2926_v16 = vstv %s6046_s20  ;;  %v1611_v39 = vadd.f32 %v7614_v41, %v1582_v32  ;;  %v7618_v35 = vld [vmem:[#allocation64_spill] sm:$0xff]  ;;  %s6978_s20 = sld [smem:[#allocation3 + $0x2e]] }
 0x220   : > { %v1608_v37 = vadd.f32 %v7613_v9, %v1579_v19  ;;  %v1609_v58 = vadd.f32 %v7613_v9, %v1580_v22  ;;  %v6107_v19 = vmul.f32 %v7535_v28, %v6040_v55  ;;  %v2895_v22 = vrot.slane %v2881_v63, 5  ;;  %v6113_v9 = vld [vmem:[#allocation2 + $0x68] sm:$0xff]  ;;  %v4140_v63 = vld [vmem:[#allocation2 + $0x38] sm:$0x1] }
 0x221   : > { %7611 = vst [vmem:[#allocation33_spill] sm:$0xff] %v6087_v13  ;;  %v6090_v31 = vpop.permute.xlu0 %2292  ;;  %7616 = vst [vmem:[#allocation34_spill] sm:$0xff] %v6113_v9  ;;  %v6117_v20 = vmul.f32 %v6113_v9, %v6040_v55  ;;  %v2894_v41 = vsel %vm2714_vm9, %v2890_v29, %v2893_v24  ;;  %v2897_v32 = vrot.slane %v2882_v0, 5  ;;  %v1613_v42 = vadd.f32 %v7618_v35, %v1584_v34  ;;  %v7629_v34 = vld [vmem:[#allocation67_spill] sm:$0xff] }
 0x222   : > { %7612 = vst [vmem:[#allocation32_spill] sm:$0xff] %v6090_v31  ;;  %v6102_v31 = vpop.permute.xlu1 %2294  ;;  %2901 = vrot.lane.b32.xlu1 %v2890_v29, %s4203_s9  ;;  %v1636_v54 = vadd.f32 %v7619_v11, %v1609_v58  ;;  %v7620_v30 = vrot.slane %v6072_v14, 4  ;;  %v7621_v33 = vrot.slane %v6037_v60, 4  ;;  %v2896_v29 = vsel %vm2714_vm9, %v2891_v52, %v2895_v22  ;;  %v6146_v58 = vld [vmem:[#allocation2 + $0x10] sm:$0xff] }
 0x223   : > { %7615 = vst [vmem:[#allocation35_spill] sm:$0xff] %v6102_v31  ;;  %2899 = vrot.lane.b32.xlu0 %v2889_v46, %s4203_s9  ;;  %v1612_v46 = vadd.f32 %v7618_v35, %v1583_v10  ;;  %v6125_v31 = vmul.f32 %v4140_v63, %v6015_v43  ;;  %v2927_v43 = vmul.f32 %v2926_v16, %v5924_v7  ;;  %v7624_v10 = vld [vmem:[#allocation66_spill] sm:$0xff]  ;;  %v7627_v7 = vrot.slane %v6051_v49, 4 }
 0x224   : > { %v6135_v57 = vsel %vm2205_vm8, %v7621_v33, %v7620_v30  ;;  %v1637_v0 = vadd.f32 %v7624_v10, %v1610_v48  ;;  %v6149_v35 = vmul.f32 %v6146_v58, %v2926_v16  ;;  %v1635_v30 = vadd.f32 %v7619_v11, %v1608_v37  ;;  %v7625_v33 = vld [vmem:[#allocation68_spill] sm:$0xff] }
 0x225   : > { %v6121_v28 = vpop.permute.xlu0 %2296  ;;  %7622 = vst [vmem:[#allocation36_spill] sm:$0xff] %v6135_v57  ;;  %v1665_v63 = vadd.f32 %v7625_v33, %v1636_v54  ;;  %v2928_v52 = vmul.f32 %v2926_v16, %v5939_v3  ;;  %v1638_v22 = vadd.f32 %v7624_v10, %v1611_v39  ;;  %v1639_v60 = vadd.f32 %v7629_v34, %v1612_v46  ;;  %v7632_v39 = vld [vmem:[#allocation70_spill] sm:$0xff] }
 0x226   : > { %7617 = vst [vmem:[#allocation37_spill] sm:$0xff] %v6121_v28  ;;  %v6137_v28 = vpop.permute.xlu1 %2298  ;;  %2905 = vrot.lane.b32.xlu1 %v2894_v41, %s4203_s9  ;;  %v2898_v11 = vsel %vm2714_vm9, %v2893_v24, %v2897_v32  ;;  %v2930_v54 = vmul.f32 %v6113_v9, %v2926_v16  ;;  %v1640_v37 = vadd.f32 %v7629_v34, %v1613_v42  ;;  %v2939_v41 = vrot.slane %v2927_v43, 5  ;;  %v7633_v42 = vld [vmem:[#allocation71_spill] sm:$0xff] }
 0x227   : > { %7623 = vst [vmem:[#allocation39_spill] sm:$0xff] %v6137_v28  ;;  %2903 = vrot.lane.b32.xlu0 %v2892_v6, %s4203_s9  ;;  %v7626_v6 = vrot.slane %v6084_v17, 4  ;;  %v1664_v57 = vadd.f32 %v7625_v33, %v1635_v30  ;;  %v1668_v10 = vadd.f32 %v7632_v39, %v1639_v60  ;;  %v2941_v46 = vrot.slane %v6149_v35, 5 }
 0x228   : > { %v2931_v24 = vmul.f32 %v2926_v16, %v5966_v38  ;;  %v1669_v32 = vadd.f32 %v7632_v39, %v1640_v37  ;;  %v1692_v34 = vadd.f32 %v7633_v42, %v1665_v63  ;;  %v2940_v33 = vrot.slane %v2928_v52, 5  ;;  %v7635_v37 = vld [vmem:[#allocation72_spill] sm:$0xff]  ;;  %v7636_v39 = vld [vmem:[#allocation74_spill] sm:$0xff] }
 0x229   : > { %v6158_v28 = vsel %vm2205_vm8, %v7627_v7, %v7626_v6  ;;  %v6161_v48 = vpop.permute.xlu0 %2338  ;;  %v2932_v43 = vmul.f32 %v2926_v16, %v5982_v45  ;;  %v2212_v60 = vrot.slane %v6100_v51, 4  ;;  %v2943_v35 = vrot.slane %v2930_v54, 5 }
 0x22a   : > { %7628 = vst [vmem:[#allocation38_spill] sm:$0xff] %v6161_v48  ;;  %v6171_v7 = vpop.permute.xlu1 %2340  ;;  %v7631_v48 = vld [vmem:[#allocation69_spill] sm:$0xff]  ;;  %2909 = vrot.lane.b32.xlu1 %v2898_v11, %s4203_s9  ;;  %v1691_v38 = vadd.f32 %v7633_v42, %v1664_v57  ;;  %v1721_v11 = vadd.f32 %v7636_v39, %v1692_v34  ;;  %v2978_v16 = vstv %s6141_s21  ;;  %v7638_v51 = vrot.slane %v6107_v19, 4  ;;  %s7026_s21 = sld [smem:[#allocation3 + $0x5f]] }
 0x22b   : > { %7630 = vst [vmem:[#allocation41_spill] sm:$0xff] %v6171_v7  ;;  %2907 = vrot.lane.b32.xlu0 %v2896_v29, %s4203_s9  ;;  %v1666_v49 = vadd.f32 %v7631_v48, %v1637_v0  ;;  %v1667_v0 = vadd.f32 %v7631_v48, %v1638_v22  ;;  %v7639_v52 = vrot.slane %v6087_v13, 4  ;;  %v2942_v57 = vsel %vm2714_vm9, %v2939_v41, %v2941_v46  ;;  %v7645_v13 = vld [vmem:[#allocation77_spill] sm:$0xff] }
 0x22c   : > { %v2945_v54 = vrot.slane %v2931_v24, 5  ;;  %v1720_v29 = vadd.f32 %v7636_v39, %v1691_v38  ;;  %v7643_v24 = vld [vmem:[#allocation75_spill] sm:$0xff] }
 0x22d   : > { %v6181_v30 = vpop.permute.xlu0 %2342  ;;  %v1693_v63 = vadd.f32 %v7635_v37, %v1666_v49  ;;  %v1694_v48 = vadd.f32 %v7635_v37, %v1667_v0  ;;  %v6202_v22 = vsel %vm2205_vm8, %v7639_v52, %v7638_v51  ;;  %v7641_v49 = vld [vmem:[#allocation73_spill] sm:$0xff]  ;;  %v2947_v0 = vrot.slane %v2932_v43, 5  ;;  %v4142_v37 = vld [vmem:[#allocation2 + $0x70] sm:$0x1] }
 0x22e   : > { %7634 = vst [vmem:[#allocation40_spill] sm:$0xff] %v6181_v30  ;;  %v6192_v6 = vpop.permute.xlu1 %2344  ;;  %7640 = vst [vmem:[#allocation42_spill] sm:$0xff] %v6202_v22  ;;  %v1695_v42 = vadd.f32 %v7641_v49, %v1668_v10  ;;  %v1696_v34 = vadd.f32 %v7641_v49, %v1669_v32  ;;  %2951 = vrot.lane.b32.xlu1 %v2940_v33, %s4203_s9  ;;  %v2233_v51 = vmul.f32 %v4142_v37, %v6040_v55  ;;  %v7644_v49 = vld [vmem:[#allocation76_spill] sm:$0xff]  ;;  %v7647_v22 = vld [vmem:[#allocation78_spill] sm:$0xff] }
 0x22f   : > { %7637 = vst [vmem:[#allocation43_spill] sm:$0xff] %v6192_v6  ;;  %2949 = vrot.lane.b32.xlu0 %v2939_v41, %s4203_s9  ;;  %v2944_v52 = vsel %vm2714_vm9, %v2940_v33, %v2943_v35  ;;  %v2979_v41 = vmul.f32 %v2978_v16, %v5848_v18  ;;  %v2980_v10 = vmul.f32 %v6060_v15, %v2978_v16  ;;  %v4143_v33 = vld [vmem:[#allocation2 + $0x78] sm:$0x1] }
 0x230   : > { %v1722_v32 = vadd.f32 %v7643_v24, %v1693_v63  ;;  %v1724_v38 = vadd.f32 %v7644_v49, %v1695_v42  ;;  %v1725_v39 = vadd.f32 %v7644_v49, %v1696_v34  ;;  %v1723_v37 = vadd.f32 %v7643_v24, %v1694_v48  ;;  %v7651_v24 = vld [vmem:[#allocation79_spill] sm:$0xff] }
 0x231   : > { %v6209_v7 = vpop.permute.xlu0 %2346  ;;  %v2234_v30 = vmul.f32 %v4143_v33, %v6040_v55  ;;  %v2946_v6 = vsel %vm2714_vm9, %v2941_v46, %v2945_v54  ;;  %v2981_v63 = vmul.f32 %v2978_v16, %v5886_v36  ;;  %v1747_v42 = vadd.f32 %v7645_v13, %v1720_v29 }
 0x232   : > { %7642 = vst [vmem:[#allocation45_spill] sm:$0xff] %v6209_v7  ;;  %v1748_v7 = vadd.f32 %v7645_v13, %v1721_v11  ;;  %v6221_v43 = vpop.permute.xlu1 %2348  ;;  %v1749_v34 = vadd.f32 %v7647_v22, %v1722_v32  ;;  %v7648_v11 = vrot.slane %v6117_v20, 4  ;;  %v7649_v49 = vrot.slane %v6068_v53, 4  ;;  %2955 = vrot.lane.b32.xlu1 %v2944_v52, %s4203_s9 }
 0x233   : > { %7646 = vst [vmem:[#allocation44_spill] sm:$0xff] %v6221_v43  ;;  %2953 = vrot.lane.b32.xlu0 %v2942_v57, %s4203_s9  ;;  %v2948_v55 = vsel %vm2714_vm9, %v2943_v35, %v2947_v0  ;;  %v1750_v46 = vadd.f32 %v7647_v22, %v1723_v37  ;;  %v2985_v16 = vrot.slane %v2979_v41, 5  ;;  %v2986_v57 = vrot.slane %v2980_v10, 5 }
 0x234   : > { %v6235_v43 = vsel %vm2205_vm8, %v7649_v49, %v7648_v11  ;;  %v3005_v13 = vstv %s6187_s22  ;;  %v7650_v29 = vrot.slane %v5780_v47, 3  ;;  %v1751_v32 = vadd.f32 %v7651_v24, %v1724_v38  ;;  %s4064_s22 = sld [smem:[#allocation3 + $0x60]] }
 0x235   : > { %v6238_v48 = vpop.permute.xlu0 %2390  ;;  %v1752_v33 = vadd.f32 %v7651_v24, %v1725_v39  ;;  %v2247_v11 = vrot.slane %v2233_v51, 4  ;;  %v7652_v35 = vrot.slane %v6072_v14, 4  ;;  %v2249_v0 = vrot.slane %v2234_v30, 4 }
 0x236   : > { %v1782_v54 = vadd.f32 %v7650_v29, %v1748_v7  ;;  %v6247_v49 = vpop.permute.xlu1 %2392  ;;  %v2988_v47 = vrot.slane %v2981_v63, 5  ;;  %v3007_v7 = vmul.f32 %v6113_v9, %v3005_v13  ;;  %v1781_v52 = vadd.f32 %v5802_v4, %v1747_v42  ;;  %2959 = vrot.lane.b32.xlu1 %v2948_v55, %s4203_s9 }
 0x237   : > { %2957 = vrot.lane.b32.xlu0 %v2946_v6, %s4203_s9  ;;  %v6255_v22 = vsel %vm2205_vm8, %v7652_v35, %v2212_v60  ;;  %v1783_v41 = vadd.f32 %v5802_v4, %v1749_v34  ;;  %v3006_v6 = vmul.f32 %v3005_v13, %v5939_v3  ;;  %v3034_v10 = vstv %s6211_s23  ;;  %s4066_s23 = sld [smem:[#allocation3 + $0x61]] }
 0x238   : > { %v1784_v14 = vadd.f32 %v5894_v40, %v1750_v46  ;;  %v7653_v30 = vrot.slane %v6125_v31, 4  ;;  %v7654_v60 = vrot.slane %v6084_v17, 4  ;;  %v2987_v39 = vsel %vm2714_vm9, %v2985_v16, %v2986_v57 }
 0x239   : > { %v6261_v51 = vpop.permute.xlu0 %2394  ;;  %v3008_v37 = vmul.f32 %v3005_v13, %v5982_v45  ;;  %v7655_v63 = vrot.slane %v5819_v12, 3  ;;  %v1785_v34 = vadd.f32 %v5802_v4, %v1751_v32  ;;  %v7656_v55 = vrot.slane %v5827_v5, 3 }
 0x23a   : > { %v6273_v38 = vsel %vm2205_vm8, %v7654_v60, %v7653_v30  ;;  %v7657_v40 = vrot.slane %v6107_v19, 4  ;;  %v6287_v17 = vpop.permute.xlu1 %2396  ;;  %v2989_v46 = vsel %vm2714_vm9, %v2986_v57, %v2988_v47  ;;  %v3013_v13 = vrot.slane %v3007_v7, 5  ;;  %2992 = vrot.lane.b32.xlu1 %v2987_v39, %s4204_s24  ;;  %v7663_v30 = vld [vmem:[#allocation83_spill] sm:$0xff] }
 0x23b   : > { %v1809_v42 = vadd.f32 %v7655_v63, %v1782_v54  ;;  %v1786_v29 = vadd.f32 %v7656_v55, %v1752_v33  ;;  %2990 = vrot.lane.b32.xlu0 %v2985_v16, %s4204_s24  ;;  %v3035_v12 = vmul.f32 %v3034_v10, %v5848_v18  ;;  %v3036_v54 = vmul.f32 %v6060_v15, %v3034_v10  ;;  %v7659_v33 = vld [vmem:[#allocation82_spill] sm:$0xff] }
 0x23c   : > { %v6285_v31 = vsel %vm2205_vm8, %v7657_v40, %v2247_v11  ;;  %v1808_v4 = vadd.f32 %v5843_v1, %v1781_v52  ;;  %v1810_v5 = vadd.f32 %v5843_v1, %v1783_v41  ;;  %v7658_v19 = vrot.slane %v6117_v20, 4  ;;  %v7660_v11 = vld [vmem:[#allocation81_spill] sm:$0xff] }
 0x23d   : > { %v6301_v16 = vpop.permute.xlu0 %2398  ;;  %v3012_v57 = vrot.slane %v3006_v6, 5  ;;  %v1811_v32 = vadd.f32 %v6026_v2, %v1784_v14  ;;  %v1843_v35 = vsel %vm412_vm3, %v7660_v11, %v7659_v33  ;;  %v1853_v47 = vadd.f32 %v7659_v33, %v1809_v42  ;;  %v7662_v14 = vld [vmem:[#allocation84_spill] sm:$0xff]  ;;  %v7665_v42 = vld [vmem:[#allocation85_spill] sm:$0xff]  ;;  %v7668_v11 = vld [vmem:[#allocation87_spill] sm:$0xff] }
 0x23e   : > { %v6298_v24 = vsel %vm2205_vm8, %v7658_v19, %v2249_v0  ;;  %v3015_v7 = vrot.slane %v3008_v37, 5  ;;  %v1812_v20 = vadd.f32 %v5843_v1, %v1785_v34  ;;  %v7661_v0 = vrot.slane %v5846_v21, 3  ;;  %v6313_v41 = vpop.permute.xlu1 %2400  ;;  %v7664_v21 = vld [vmem:[#allocation86_spill] sm:$0xff]  ;;  %v7667_v33 = vld [vmem:[#allocation88_spill] sm:$0xff] }
 0x23f   : > { %2994 = vrot.lane.b32.xlu0 %v2989_v46, %s4204_s24  ;;  %v3037_v6 = vmul.f32 %v3034_v10, %v5886_v36  ;;  %v3061_v2 = vstv %s6250_s25  ;;  %v1844_v60 = vsel %vm412_vm3, %v7663_v30, %v7662_v14  ;;  %v3014_v39 = vsel %vm2714_vm9, %v3012_v57, %v3013_v13  ;;  %3017 = vrot.lane.b32.xlu1 %v3012_v57, %s4204_s24  ;;  %s4070_s25 = sshll.u32 %s7785_s15, 4 }
 0x240   : > { %v1813_v52 = vadd.f32 %v7661_v0, %v1786_v29  ;;  %v3041_v37 = vrot.slane %v3035_v12, 5  ;;  %v3042_v63 = vrot.slane %v3036_v54, 5  ;;  %v1852_v1 = vadd.f32 %v1843_v35, %v1808_v4 }
 0x241   : > { %v1845_v34 = vsel %vm412_vm3, %v7665_v42, %v7664_v21  ;;  %v6328_v55 = vpop.permute.xlu0 %2440  ;;  %v3063_v10 = vmul.f32 %v6113_v9, %v3061_v2  ;;  %v3090_v29 = vstv %s6265_s26  ;;  %v1855_v40 = vadd.f32 %v7662_v14, %v1811_v32 }
 0x242   : > { %7666 = vst [vmem:[#allocation47_spill] sm:$0xff] %v6328_v55  ;;  %v3016_v46 = vsel %vm2714_vm9, %v3013_v13, %v3015_v7  ;;  %v3062_v12 = vmul.f32 %v3061_v2, %v5939_v3  ;;  %v3064_v54 = vmul.f32 %v3061_v2, %v5982_v45  ;;  %v1854_v4 = vadd.f32 %v1844_v60, %v1810_v5  ;;  %v6340_v35 = vpop.permute.xlu1 %2442 }
 0x243   : > { %v1857_v19 = vadd.f32 %v7664_v21, %v1813_v52  ;;  %v1885_v57 = vsel %vm412_vm3, %v7668_v11, %v7667_v33  ;;  %7669 = vst [vmem:[#allocation46_spill] sm:$0xff] %v6340_v35  ;;  %3019 = vrot.lane.b32.xlu0 %v3014_v39, %s4204_s24  ;;  %v3044_v0 = vrot.slane %v3037_v6, 5  ;;  %v1856_v32 = vadd.f32 %v1845_v34, %v1812_v20  ;;  %v7670_v20 = vld [vmem:[#allocation90_spill] sm:$0xff]  ;;  %v7671_v39 = vld [vmem:[#allocation89_spill] sm:$0xff]  ;;  %v7675_v35 = vld [vmem:[#allocation95_spill] sm:$0xff] }
 0x244   : > { %v3043_v13 = vsel %vm2714_vm9, %v3041_v37, %v3042_v63  ;;  %v6345_v7 = vmul.f32 %v3090_v29, %v5848_v18  ;;  %v3092_v2 = vmul.f32 %v6060_v15, %v3090_v29  ;;  %v1895_v5 = vadd.f32 %v7667_v33, %v1853_v47  ;;  %3021 = vrot.lane.b32.xlu1 %v3016_v46, %s4204_s24  ;;  %v7672_v33 = vld [vmem:[#allocation93_spill] sm:$0xff]  ;;  %v7673_v46 = vld [vmem:[#allocation92_spill] sm:$0xff] }
 0x245   : > { %v6350_v52 = vpop.permute.xlu0 %2444  ;;  %v3069_v14 = vrot.slane %v3063_v10, 5  ;;  %v3093_v30 = vmul.f32 %v3090_v29, %v5886_v36  ;;  %v3117_v60 = vstv %s6303_s28  ;;  %v1894_v6 = vadd.f32 %v1885_v57, %v1852_v1 }
 0x246   : > { %v1886_v21 = vsel %vm412_vm3, %v7671_v39, %v7670_v20  ;;  %v3068_v42 = vrot.slane %v3062_v12, 5  ;;  %v3071_v34 = vrot.slane %v3064_v54, 5  ;;  %v1897_v47 = vadd.f32 %v7670_v20, %v1855_v40  ;;  %v6363_v10 = vpop.permute.xlu1 %2446 }
 0x247   : > { %v1887_v11 = vsel %vm412_vm3, %v7673_v46, %v7672_v33  ;;  %3046 = vrot.lane.b32.xlu0 %v3041_v37, %s4205_s27  ;;  %v3045_v1 = vsel %vm2714_vm9, %v3042_v63, %v3044_v0  ;;  %v6368_v29 = vmul.f32 %v6113_v9, %v3117_v60  ;;  %v3097_v12 = vrot.slane %v6345_v7, 5 }
 0x248   : > { %v3098_v54 = vrot.slane %v3092_v2, 5  ;;  %v6372_v57 = vmul.f32 %v3117_v60, %v5939_v3  ;;  %v3146_v40 = vstv %s6322_s29  ;;  %v1896_v20 = vadd.f32 %v1886_v21, %v1854_v4  ;;  %3048 = vrot.lane.b32.xlu1 %v3043_v13, %s4205_s27  ;;  %v7676_v4 = vld [vmem:[#allocation94_spill] sm:$0xff]  ;;  %s253_s29 = scalar_lea.vmem %s7248_s2, %s4070_s25 }
 0x249   : > { %v6376_v39 = vpop.permute.xlu0 %2448  ;;  %v3070_v46 = vsel %vm2714_vm9, %v3068_v42, %v3069_v14  ;;  %v3100_v37 = vrot.slane %v3093_v30, 5  ;;  %v3120_v63 = vmul.f32 %v3117_v60, %v5982_v45  ;;  %v1898_v0 = vadd.f32 %v1887_v11, %v1856_v32 }
 0x24a   : > { %7674 = vst [vmem:[#allocation49_spill] sm:$0xff] %v6376_v39  ;;  %v1899_v55 = vadd.f32 %v7672_v33, %v1857_v19  ;;  %v1929_v7 = vsel %vm495_vm4, %v5539_v26, %v5545_v61  ;;  %v3072_v2 = vsel %vm2714_vm9, %v3069_v14, %v3071_v34  ;;  %v1930_v13 = vsel %vm495_vm4, %v7676_v4, %v7675_v35  ;;  %v6388_v21 = vpop.permute.xlu1 %2450 }
 0x24b   : > { %3050 = vrot.lane.b32.xlu0 %v3045_v1, %s4205_s27  ;;  %v3125_v30 = vrot.slane %v6368_v29, 5  ;;  %v6393_v32 = vmul.f32 %v3146_v40, %v5848_v18  ;;  %v3148_v19 = vmul.f32 %v6060_v15, %v3146_v40  ;;  %v1939_v26 = vadd.f32 %v5545_v61, %v1895_v5 }
 0x24c   : > { %v1941_v14 = vadd.f32 %v7675_v35, %v1897_v47  ;;  %v3099_v60 = vsel %vm2714_vm9, %v3097_v12, %v3098_v54  ;;  %v3124_v34 = vrot.slane %v6372_v57, 5  ;;  %v1938_v33 = vadd.f32 %v1929_v7, %v1894_v6  ;;  %3073 = vrot.lane.b32.xlu1 %v3068_v42, %s4205_s27 }
 0x24d   : > { %v6403_v11 = vpop.permute.xlu0 %2481  ;;  %v3101_v1 = vsel %vm2714_vm9, %v3098_v54, %v3100_v37  ;;  %v3127_v29 = vrot.slane %v3120_v63, 5  ;;  %v3149_v4 = vmul.f32 %v3146_v40, %v5886_v36  ;;  %v1940_v39 = vadd.f32 %v1930_v13, %v1896_v20 }
 0x24e   : > { %7677 = vst [vmem:[#allocation48_spill] sm:$0xff] %v6403_v11  ;;  %v1931_v61 = vsel %vm495_vm4, %v5606_v25, %v5619_v50  ;;  %v1983_v35 = vadd.f32 %v5673_v59, %v1941_v14  ;;  %v3173_v5 = vstv %s6357_s30  ;;  %v1943_v47 = vadd.f32 %v5619_v50, %v1899_v55  ;;  %v6413_v6 = vpop.permute.xlu1 %2483 }
 0x24f   : > { %3075 = vrot.lane.b32.xlu0 %v3070_v46, %s4205_s27  ;;  %v6419_v42 = vsel %vm2714_vm9, %v3124_v34, %v3125_v30  ;;  %v7371_v54 = vrot.slane %v6393_v32, 5  ;;  %v3154_v40 = vrot.slane %v3148_v19, 5  ;;  %v1971_v25 = vsel %vm495_vm4, %v5638_v44, %v5646_v8 }
 0x250   : > { %v1972_v50 = vsel %vm495_vm4, %v5659_v62, %v5673_v59  ;;  %v1973_v55 = vsel %vm495_vm4, %v5684_v56, %v5692_v27  ;;  %v2008_v20 = vadd.f32 %v5720_v23, %v1983_v35  ;;  %v1942_v46 = vadd.f32 %v1931_v61, %v1898_v0  ;;  %3077 = vrot.lane.b32.xlu1 %v3072_v2, %s4205_s27  ;;  %v7678_v59 = vld [vmem:[#allocation7_spill] sm:$0xff] }
 0x251   : > { %v1981_v37 = vadd.f32 %v5646_v8, %v1939_v26  ;;  %v6434_v63 = vpop.permute.xlu0 %2485  ;;  %v3156_v7 = vrot.slane %v3149_v4, 5  ;;  %v6437_v44 = vmul.f32 %v3173_v5, %v5939_v3  ;;  %v1985_v62 = vadd.f32 %v5692_v27, %v1943_v47  ;;  %v7679_v26 = vld [vmem:[#allocation11_spill] sm:$0xff]  ;;  %v7681_v4 = vld [vmem:[#allocation10_spill] sm:$0xff] }
 0x252   : > { %v2031_v13 = vadd.f32 %v7678_v59, %v2008_v20  ;;  %v3175_v56 = vmul.f32 %v6113_v9, %v3173_v5  ;;  %v3176_v19 = vmul.f32 %v3173_v5, %v5982_v45  ;;  %v1980_v0 = vadd.f32 %v1971_v25, %v1938_v33  ;;  %v6444_v61 = vpop.permute.xlu1 %2508  ;;  %v6455_v45 = vld [vmem:[#allocation2 + $0x18] sm:$0xf8]  ;;  %v7683_v25 = vld [vmem:[#allocation12_spill] sm:$0xff] }
 0x253   : > { %v1982_v14 = vadd.f32 %v1972_v50, %v1940_v39  ;;  %v1984_v8 = vadd.f32 %v1973_v55, %v1942_v46  ;;  %v2006_v2 = vadd.f32 %v7679_v26, %v1981_v37  ;;  %7680 = vst [vmem:[#allocation51_spill] sm:$0xff] %v6444_v61  ;;  %3102 = vrot.lane.b32.xlu0 %v3097_v12, %s4206_s6  ;;  %v3283_v47 = vstv %s6400_s5  ;;  %v6470_v37 = vld [vmem:[#allocation2 + $0x30] sm:$0x7] }
 0x254   : > { %v2010_v3 = vadd.f32 %v7681_v4, %v1985_v62  ;;  %v3128_v35 = vsel %vm2714_vm9, %v3125_v30, %v3127_v29  ;;  %v6452_v27 = vsel %vm2714_vm9, %v7371_v54, %v3154_v40  ;;  %v2005_v39 = vadd.f32 %v7679_v26, %v1980_v0  ;;  %3104 = vrot.lane.b32.xlu1 %v3099_v60, %s4206_s6  ;;  %v6464_v29 = vld [vmem:[#allocation2 + $0x38] sm:$0x7]  ;;  %v7691_v30 = vld [vmem:[#allocation14_spill] sm:$0xff] }
 0x255   : > { %v2007_v33 = vadd.f32 %v5720_v23, %v1982_v14  ;;  %v2009_v5 = vadd.f32 %v7681_v4, %v1984_v8  ;;  %v6461_v12 = vpop.permute.xlu0 %2510  ;;  %7682 = vst [vmem:[#allocation50_spill] sm:$0xff] %v6464_v29  ;;  %v2056_v50 = vadd.f32 %v7683_v25, %v2031_v13  ;;  %v6468_v55 = vsel %vm2714_vm9, %v3154_v40, %v3156_v7  ;;  %v7685_v23 = vld [vmem:[#allocation6_spill] sm:$0xff]  ;;  %v6479_v14 = vld [vmem:[#allocation2 + $0x10] sm:$0xf8]  ;;  %v7689_v4 = vld [vmem:[#allocation9_spill] sm:$0xff] }
 0x256   : > { %v3181_v20 = vrot.slane %v3175_v56, 5  ;;  %v3183_v46 = vrot.slane %v3176_v19, 5  ;;  %7684 = vst [vmem:[#allocation53_spill] sm:$0xff] %v6470_v37  ;;  %v2029_v62 = vadd.f32 %v7685_v23, %v2006_v2  ;;  %v6476_v0 = vpop.permute.xlu1 %2512  ;;  %v6482_v13 = vmul.f32 %v3283_v47, %v6455_v45  ;;  %v7687_v7 = vld [vmem:[#allocation8_spill] sm:$0xff]  ;;  %v7688_v19 = vld [vmem:[#allocation15_spill] sm:$0xff] }
 0x257   : > { %v2030_v60 = vadd.f32 %v7678_v59, %v2007_v33  ;;  %7686 = vst [vmem:[#allocation52_spill] sm:$0xff] %v6476_v0  ;;  %3106 = vrot.lane.b32.xlu0 %v3101_v1, %s4206_s6  ;;  %v3287_v40 = vmul.f32 %v6060_v15, %v3283_v47  ;;  %v2033_v56 = vadd.f32 %v7687_v7, %v2010_v3  ;;  %v7692_v61 = vrot.slane %v6437_v44, 5 }
 0x258   : > { %v2079_v8 = vadd.f32 %v7688_v19, %v2056_v50  ;;  %v3286_v26 = vmul.f32 %v6146_v58, %v3283_v47  ;;  %v3289_v59 = vmul.f32 %v3283_v47, %v6464_v29  ;;  %v2028_v2 = vadd.f32 %v7685_v23, %v2005_v39  ;;  %3129 = vrot.lane.b32.xlu1 %v3124_v34, %s4206_s6 }
 0x259   : > { %v2032_v1 = vadd.f32 %v7687_v7, %v2009_v5  ;;  %v2054_v33 = vadd.f32 %v7689_v4, %v2029_v62  ;;  %v6497_v54 = vpop.permute.xlu0 %2537  ;;  %v3288_v3 = vmul.f32 %v3283_v47, %v6470_v37  ;;  %v2058_v50 = vadd.f32 %v7691_v30, %v2033_v56  ;;  %v7694_v7 = vld [vmem:[#allocation20_spill] sm:$0xff] }
 0x25a   : > { %7690 = vst [vmem:[#allocation55_spill] sm:$0xff] %v6497_v54  ;;  %v6504_v29 = vsel %vm2714_vm9, %v7692_v61, %v3181_v20  ;;  %v6507_v39 = vsel %vm2714_vm9, %v3181_v20, %v3183_v46  ;;  %v6510_v5 = vmul.f32 %v3283_v47, %v6479_v14  ;;  %v2053_v57 = vadd.f32 %v7689_v4, %v2028_v2  ;;  %v6515_v62 = vpop.permute.xlu1 %2539  ;;  %v7695_v54 = vld [vmem:[#allocation13_spill] sm:$0xff]  ;;  %v7697_v2 = vld [vmem:[#allocation16_spill] sm:$0xff] }
 0x25b   : > { %v2055_v34 = vadd.f32 %v7683_v25, %v2030_v60  ;;  %v2057_v23 = vadd.f32 %v7691_v30, %v2032_v1  ;;  %7693 = vst [vmem:[#allocation54_spill] sm:$0xff] %v6515_v62  ;;  %3131 = vrot.lane.b32.xlu0 %v6419_v42, %s4206_s6  ;;  %v2104_v20 = vadd.f32 %v7694_v7, %v2079_v8  ;;  %v3298_v46 = vrot.slane %v3286_v26, 6  ;;  %v7698_v1 = vld [vmem:[#allocation91_spill] sm:$0xff]  ;;  %v7718_v62 = vld [vmem:[#allocation24_spill] sm:$0xff] }
 0x25c   : > { %v3300_v56 = vrot.slane %v3287_v40, 6  ;;  %v3304_v47 = vrot.slane %v3289_v59, 6  ;;  %v2077_v37 = vadd.f32 %v7695_v54, %v2054_v33  ;;  %3133 = vrot.lane.b32.xlu1 %v3128_v35, %s4206_s6  ;;  %v3302_v60 = vrot.slane %v3288_v3, 6  ;;  %v7699_v59 = vld [vmem:[#allocation17_spill] sm:$0xff] }
 0x25d   : > { %v2078_v25 = vadd.f32 %v7688_v19, %v2055_v34  ;;  %v6524_v30 = vpop.permute.xlu0 %2541  ;;  %v2081_v42 = vadd.f32 %v7697_v2, %v2058_v50  ;;  %v2127_v4 = vadd.f32 %v7698_v1, %v2104_v20  ;;  %v7378_v8 = vrot.slane %v6510_v5, 6  ;;  %v6543_v34 = vld [vmem:[#allocation2 + $0x50] sm:$0xf8] }
 0x25e   : > { %7696 = vst [vmem:[#allocation56_spill] sm:$0xff] %v6524_v30  ;;  %v6530_v26 = vstv %s6472_s7  ;;  %v2076_v40 = vadd.f32 %v7695_v54, %v2053_v57  ;;  %v2080_v19 = vadd.f32 %v7697_v2, %v2057_v23  ;;  %v2102_v35 = vadd.f32 %v7699_v59, %v2077_v37  ;;  %v6537_v33 = vpop.permute.xlu1 %2564  ;;  %7702 = vst [vmem:[#allocation58_spill] sm:$0xff] %v6543_v34  ;;  %v7703_v20 = vld [vmem:[#allocation80_spill] sm:$0xff]  ;;  %s256_s7 = scalar_lea.vmem %s7249_s3, %s7785_s15 }
 0x25f   : > { %7700 = vst [vmem:[#allocation57_spill] sm:$0xff] %v6537_v33  ;;  %v7701_v3 = vrot.slane %v6393_v32, 5  ;;  %v2701_v50 = vstv %s6485_s10  ;;  %v2106_v61 = vadd.f32 %v7703_v20, %v2081_v42  ;;  %v6549_v30 = vsel %vm3223_vm10, %v7378_v8, %v3298_v46  ;;  %v6559_v32 = vld [vmem:[#allocation2 + $0x58] sm:$0xf8] }
 0x260   : > { %v7704_v54 = vrot.slane %v6482_v13, 6  ;;  %v6557_v57 = vsel %vm3223_vm10, %v3300_v56, %v3304_v47  ;;  %7705 = vst [vmem:[#allocation59_spill] sm:$0xff] %v6559_v32  ;;  %v2101_v23 = vadd.f32 %v7699_v59, %v2076_v40  ;;  %v2103_v2 = vadd.f32 %v7694_v7, %v2078_v25  ;;  %3160 = vrot.lane.b32.xlu1 %v6452_v27, %s4207_s11  ;;  %v7710_v25 = vld [vmem:[#allocation19_spill] sm:$0xff]  ;;  %v7713_v59 = vld [vmem:[#allocation25_spill] sm:$0xff] }
 0x261   : > { %3158 = vrot.lane.b32.xlu0 %v7701_v3, %s4207_s11  ;;  %v2105_v42 = vadd.f32 %v7703_v20, %v2080_v19  ;;  %v6566_v3 = vpop.permute.xlu0 %2566  ;;  %v6569_v8 = vsel %vm3223_vm10, %v3298_v46, %v3302_v60  ;;  %v6575_v0 = vmul.f32 %v2701_v50, %v5848_v18  ;;  %v6579_v7 = vmul.f32 %v6530_v26, %v6543_v34  ;;  %v7712_v60 = vld [vmem:[#allocation21_spill] sm:$0xff] }
 0x262   : > { %v6554_v37 = vsel %vm3223_vm10, %v7704_v54, %v3300_v56  ;;  %7706 = vst [vmem:[#allocation60_spill] sm:$0xff] %v6566_v3  ;;  %v7707_v54 = vld [vmem:[#allocation23_spill] sm:$0xff]  ;;  %v4144_v56 = vld [vmem:[#allocation2 + $0x10] sm:$0xfc]  ;;  %v2125_v40 = vadd.f32 %v7710_v25, %v2102_v35  ;;  %v2126_v27 = vadd.f32 %v7698_v1, %v2103_v2  ;;  %v6583_v19 = vpop.permute.xlu1 %2568  ;;  %v6589_v46 = vmul.f32 %v6530_v26, %v6559_v32 }
 0x263   : > { %v2152_v33 = vadd.f32 %v7707_v54, %v2127_v4  ;;  %v6572_v47 = vmul.f32 %v4144_v56, %v2701_v50  ;;  %7709 = vst [vmem:[#allocation62_spill] sm:$0xff] %v6575_v0  ;;  %7711 = vst [vmem:[#allocation63_spill] sm:$0xff] %v6583_v19  ;;  %v2704_v18 = vmul.f32 %v6146_v58, %v2701_v50  ;;  %v7714_v56 = vld [vmem:[#allocation18_spill] sm:$0xff]  ;;  %v7716_v32 = vrot.slane %v6437_v44, 5 }
 0x264   : > { %v2129_v4 = vadd.f32 %v7712_v60, %v2106_v61  ;;  %v2705_v35 = vmul.f32 %v6060_v15, %v2701_v50  ;;  %v2706_v1 = vmul.f32 %v2701_v50, %v7714_v56  ;;  %v2124_v2 = vadd.f32 %v7710_v25, %v2101_v23 }
 0x265   : > { %7708 = vst [vmem:[#allocation61_spill] sm:$0xff] %v6572_v47  ;;  %3162 = vrot.lane.b32.xlu0 %v6468_v55, %s4207_s11  ;;  %v2175_v20 = vadd.f32 %v7713_v59, %v2152_v33  ;;  %v2128_v34 = vadd.f32 %v7712_v60, %v2105_v42  ;;  %v7715_v55 = vld [vmem:[#allocation22_spill] sm:$0xff]  ;;  %3185 = vrot.lane.b32.xlu1 %v7716_v32, %s4207_s11  ;;  %v6602_v3 = vpop.permute.xlu0 %2593  ;;  %v6615_v42 = vstv %s6532_s12  ;;  %v2717_v25 = vrot.slane %v2704_v18, 5 }
 0x266   : > { %v2150_v19 = vadd.f32 %v7715_v55, %v2125_v40  ;;  %7717 = vst [vmem:[#allocation64_spill] sm:$0xff] %v6602_v3  ;;  %v2707_v61 = vmul.f32 %v2701_v50, %v5886_v36  ;;  %v2154_v33 = vadd.f32 %v7718_v62, %v2129_v4  ;;  %v6608_v11 = vmul.f32 %v6146_v58, %v6530_v26  ;;  %v6622_v50 = vpop.permute.xlu1 %2595  ;;  %v7719_v3 = vld [vmem:[#allocation26_spill] sm:$0xff] }
 0x267   : > { %v6612_v23 = vmul.f32 %v6113_v9, %v6530_v26  ;;  %v2149_v44 = vadd.f32 %v7715_v55, %v2124_v2  ;;  %v2151_v32 = vadd.f32 %v7707_v54, %v2126_v27  ;;  %v2153_v36 = vadd.f32 %v7718_v62, %v2128_v34  ;;  %v7720_v27 = vld [vmem:[#allocation27_spill] sm:$0xff] }
 0x268   : > { %v2225_v40 = vadd.f32 %v6158_v28, %v2175_v20  ;;  %v7391_v60 = vrot.slane %v6572_v47, 5  ;;  %v2719_v4 = vrot.slane %v2705_v35, 5  ;;  %v2721_v56 = vrot.slane %v2706_v1, 5  ;;  %v6641_v35 = vld [vmem:[#allocation2 + $0x78] sm:$0x7] }
 0x269   : > { %3187 = vrot.lane.b32.xlu0 %v6504_v29, %s4207_s11  ;;  %v2173_v9 = vadd.f32 %v7719_v3, %v2150_v19  ;;  %v2174_v2 = vadd.f32 %v7713_v59, %v2151_v32  ;;  %3189 = vrot.lane.b32.xlu1 %v6507_v39, %s4207_s11  ;;  %v6632_v62 = vpop.permute.xlu0 %2597  ;;  %v7392_v34 = vrot.slane %v6575_v0, 5  ;;  %v2723_v54 = vrot.slane %v2707_v61, 5  ;;  %v6635_v29 = vld [vmem:[#allocation2 + $0x70] sm:$0x7]  ;;  %v7738_v47 = vld [vmem:[#allocation37_spill] sm:$0xff] }
 0x26a   : > { %v2177_v28 = vadd.f32 %v7720_v27, %v2154_v33  ;;  %v7395_v18 = vrot.slane %v6579_v7, 6  ;;  %v7394_v20 = vrot.slane %v6608_v11, 6  ;;  %v7393_v19 = vrot.slane %v6612_v23, 6  ;;  %v6645_v1 = vpop.permute.xlu1 %2620  ;;  %v7727_v61 = vld [vmem:[#allocation36_spill] sm:$0xff] }
 0x26b   : > { %v2172_v59 = vadd.f32 %v7719_v3, %v2149_v44  ;;  %v2176_v39 = vadd.f32 %v7720_v27, %v2153_v36  ;;  %v7721_v55 = vrot.slane %v6510_v5, 6  ;;  %v6654_v33 = vsel %vm2714_vm9, %v7391_v60, %v2717_v25  ;;  %v7725_v36 = vld [vmem:[#allocation29_spill] sm:$0xff] }
 0x26c   : > { %7722 = vst [vmem:[#allocation65_spill] sm:$0xff] %v6654_v33  ;;  %v2260_v32 = vadd.f32 %v6235_v43, %v2225_v40  ;;  %v6660_v3 = vsel %vm2714_vm9, %v7392_v34, %v2719_v4  ;;  %v6663_v44 = vsel %vm2714_vm9, %v2717_v25, %v2721_v56  ;;  %v6667_v5 = vmul.f32 %v6530_v26, %v6635_v29 }
 0x26d   : > { %3306 = vrot.lane.b32.xlu0 %v7721_v55, %s4202_s8  ;;  %7723 = vst [vmem:[#allocation66_spill] sm:$0xff] %v6660_v3  ;;  %7724 = vst [vmem:[#allocation68_spill] sm:$0xff] %v6663_v44  ;;  %v7726_v27 = vrot.slane %v7725_v36, 4  ;;  %v2224_v60 = vadd.f32 %v7727_v61, %v2174_v2  ;;  %v7728_v43 = vrot.slane %v6482_v13, 6  ;;  %v6675_v40 = vpop.permute.xlu0 %2622  ;;  %v6678_v34 = vsel %vm2714_vm9, %v2719_v4, %v2723_v54  ;;  %v4145_v36 = vld [vmem:[#allocation2 + $0x50] sm:$0xfc] }
 0x26e   : > { %7729 = vst [vmem:[#allocation67_spill] sm:$0xff] %v6678_v34  ;;  %v6682_v25 = vmul.f32 %v6530_v26, %v6641_v35  ;;  %v2227_v56 = vadd.f32 %v6273_v38, %v2177_v28  ;;  %v7730_v13 = vrot.slane %v6589_v46, 6  ;;  %v6700_v2 = vstv %s6617_s13  ;;  %v7731_v26 = vld [vmem:[#allocation28_spill] sm:$0xff]  ;;  %v6705_v28 = vpop.permute.xlu1 %2624  ;;  %v7741_v44 = vld [vmem:[#allocation33_spill] sm:$0xff]  ;;  %v7743_v34 = vld [vmem:[#allocation31_spill] sm:$0xff] }
 0x26f   : > { %v2223_v55 = vadd.f32 %v7726_v27, %v2173_v9  ;;  %3308 = vrot.lane.b32.xlu1 %v7728_v43, %s4202_s8  ;;  %v6690_v9 = vsel %vm3223_vm10, %v7395_v18, %v7394_v20  ;;  %v7732_v54 = vrot.slane %v7731_v26, 4  ;;  %v2226_v38 = vadd.f32 %v6255_v22, %v2176_v39  ;;  %v4146_v43 = vld [vmem:[#allocation2 + $0x58] sm:$0xfc]  ;;  %v7734_v20 = vld [vmem:[#allocation32_spill] sm:$0xff] }
 0x270   : > { %v6697_v4 = vsel %vm3223_vm10, %v7730_v13, %v7393_v19  ;;  %v6710_v27 = vmul.f32 %v4145_v36, %v6615_v42  ;;  %v6713_v13 = vmul.f32 %v4146_v43, %v6615_v42  ;;  %v7733_v19 = vld [vmem:[#allocation35_spill] sm:$0xff]  ;;  %v3352_v22 = vrot.slane %v6667_v5, 6  ;;  %v7736_v36 = vld [vmem:[#allocation42_spill] sm:$0xff]  ;;  %v7746_v3 = vld [vmem:[#allocation45_spill] sm:$0xff] }
 0x271   : > { %v2222_v61 = vadd.f32 %v7732_v54, %v2172_v59  ;;  %3310 = vrot.lane.b32.xlu0 %v6549_v30, %s4202_s8  ;;  %v2301_v26 = vsel %vm412_vm3, %v7734_v20, %v7733_v19  ;;  %v2312_v59 = vadd.f32 %v7733_v19, %v2260_v32  ;;  %v6722_v39 = vmul.f32 %v6146_v58, %v6615_v42  ;;  %v6729_v43 = vpop.permute.xlu0 %2649  ;;  %v7737_v5 = vld [vmem:[#allocation39_spill] sm:$0xff] }
 0x272   : > { %v7735_v30 = vrot.slane %v6068_v53, 4  ;;  %v2259_v18 = vadd.f32 %v7736_v36, %v2224_v60  ;;  %v6734_v19 = vmul.f32 %v6700_v2, %v6479_v14  ;;  %v2262_v32 = vadd.f32 %v6298_v24, %v2227_v56  ;;  %v7744_v14 = vld [vmem:[#allocation30_spill] sm:$0xff]  ;;  %v6750_v56 = vpop.permute.xlu1 %2651 }
 0x273   : > { %3312 = vrot.lane.b32.xlu1 %v6554_v37, %s4202_s8  ;;  %v2302_v53 = vsel %vm412_vm3, %v7738_v47, %v7737_v5  ;;  %v2261_v36 = vadd.f32 %v6285_v31, %v2226_v38  ;;  %v7742_v20 = vrot.slane %v7741_v44, 4  ;;  %v2300_v33 = vsel %vm412_vm3, %v7744_v14, %v7743_v34  ;;  %v7747_v38 = vld [vmem:[#allocation41_spill] sm:$0xff] }
 0x274   : > { %v2258_v54 = vadd.f32 %v7735_v30, %v2223_v55  ;;  %v7739_v55 = vld [vmem:[#allocation43_spill] sm:$0xff]  ;;  %v7740_v30 = vld [vmem:[#allocation40_spill] sm:$0xff]  ;;  %v2311_v24 = vadd.f32 %v2301_v26, %v2259_v18  ;;  %v2314_v47 = vadd.f32 %v7737_v5, %v2262_v32  ;;  %v2403_v31 = vsel %vm495_vm4, %v6261_v51, %v6287_v17  ;;  %v7748_v26 = vld [vmem:[#allocation38_spill] sm:$0xff] }
 0x275   : > { %v2351_v60 = vsel %vm412_vm3, %v7740_v30, %v7739_v55  ;;  %v2362_v37 = vadd.f32 %v7739_v55, %v2312_v59  ;;  %v2257_v0 = vadd.f32 %v7742_v20, %v2222_v61  ;;  %3314 = vrot.lane.b32.xlu0 %v6569_v8, %s4202_s8  ;;  %v7745_v30 = vld [vmem:[#allocation44_spill] sm:$0xff]  ;;  %v2313_v18 = vadd.f32 %v2302_v53, %v2261_v36  ;;  %v6768_v32 = vpop.permute.xlu0 %2653 }
 0x276   : > { %v2352_v59 = vsel %vm412_vm3, %v7746_v3, %v7745_v30  ;;  %v2310_v61 = vadd.f32 %v7743_v34, %v2258_v54  ;;  %v2350_v20 = vsel %vm412_vm3, %v7748_v26, %v7747_v38  ;;  %v2361_v8 = vadd.f32 %v2351_v60, %v2311_v24 }
 0x277   : > { %v2414_v44 = vadd.f32 %v6287_v17, %v2362_v37  ;;  %3316 = vrot.lane.b32.xlu1 %v6557_v57, %s4202_s8  ;;  %v2364_v3 = vadd.f32 %v7745_v30, %v2314_v47  ;;  %v2404_v51 = vsel %vm495_vm4, %v6301_v16, %v6313_v41  ;;  %v2453_v17 = vsel %vm495_vm4, %v6350_v52, %v6363_v10  ;;  %v6779_v57 = vpop.permute.xlu1 %2676  ;;  %v7750_v52 = vld [vmem:[#allocation49_spill] sm:$0xff]  ;;  %v7753_v30 = vld [vmem:[#allocation47_spill] sm:$0xff] }
 0x278   : > { %v2309_v54 = vadd.f32 %v2300_v33, %v2257_v0  ;;  %v2360_v5 = vadd.f32 %v7747_v38, %v2310_v61  ;;  %v2363_v53 = vadd.f32 %v2352_v59, %v2313_v18  ;;  %v2413_v55 = vadd.f32 %v2403_v31, %v2361_v8 }
 0x279   : > { %v2464_v34 = vadd.f32 %v6363_v10, %v2414_v44  ;;  %v7749_v60 = vrot.slane %v6579_v7, 6  ;;  %v2402_v16 = vsel %vm495_vm4, %v6238_v48, %v6247_v49  ;;  %v2416_v37 = vadd.f32 %v6313_v41, %v2364_v3  ;;  %v6796_v47 = vpop.permute.xlu0 %2678  ;;  %v7752_v48 = vld [vmem:[#allocation46_spill] sm:$0xff] }
 0x27a   : > { %v2454_v10 = vsel %vm495_vm4, %v7750_v52, %v6388_v21  ;;  %v2359_v33 = vadd.f32 %v2350_v20, %v2309_v54  ;;  %v2412_v36 = vadd.f32 %v6247_v49, %v2360_v5  ;;  %v2415_v14 = vadd.f32 %v2404_v51, %v2363_v53  ;;  %v7755_v51 = vld [vmem:[#allocation48_spill] sm:$0xff] }
 0x27b   : > { %3356 = vrot.lane.b32.xlu0 %v7749_v60, %s4202_s8  ;;  %v2493_v0 = vadd.f32 %v6413_v6, %v2464_v34  ;;  %v2463_v24 = vadd.f32 %v2453_v17, %v2413_v55  ;;  %v7751_v7 = vrot.slane %v6589_v46, 6  ;;  %v2452_v41 = vsel %vm495_vm4, %v7753_v30, %v7752_v48  ;;  %v6809_v38 = vpop.permute.xlu1 %2680  ;;  %v7759_v60 = vld [vmem:[#allocation34_spill] sm:$0xff]  ;;  %v7760_v52 = vld [vmem:[#allocation52_spill] sm:$0xff] }
 0x27c   : > { %v2466_v59 = vadd.f32 %v6388_v21, %v2416_v37  ;;  %v3387_v44 = vmul.f32 %v6700_v2, %v6455_v45  ;;  %v2411_v49 = vadd.f32 %v2402_v16, %v2359_v33  ;;  %v2462_v61 = vadd.f32 %v7752_v48, %v2412_v36  ;;  %v7762_v36 = vld [vmem:[#allocation53_spill] sm:$0xff] }
 0x27d   : > { %3358 = vrot.lane.b32.xlu1 %v7751_v7, %s4202_s8  ;;  %v2520_v31 = vadd.f32 %v6461_v12, %v2493_v0  ;;  %v2465_v46 = vadd.f32 %v2454_v10, %v2415_v14  ;;  %v2492_v18 = vadd.f32 %v6413_v6, %v2463_v24  ;;  %v7754_v26 = vrot.slane %v6608_v11, 6  ;;  %v6830_v11 = vpop.permute.xlu0 %2797  ;;  %v7761_v10 = vld [vmem:[#allocation60_spill] sm:$0xff]  ;;  %v7763_v24 = vld [vmem:[#allocation51_spill] sm:$0xff] }
 0x27e   : > { %v2495_v21 = vadd.f32 %v6434_v63, %v2466_v59  ;;  %v6819_v8 = vmul.f32 %v6146_v58, %v6700_v2  ;;  %v6823_v3 = vmul.f32 %v6060_v15, %v6700_v2  ;;  %v2461_v6 = vadd.f32 %v2452_v41, %v2411_v49  ;;  %v7764_v59 = vld [vmem:[#allocation56_spill] sm:$0xff]  ;;  %v7765_v49 = vld [vmem:[#allocation50_spill] sm:$0xff] }
 0x27f   : > { %3360 = vrot.lane.b32.xlu0 %v6690_v9, %s4202_s8  ;;  %v3353_v20 = vsel %vm3223_vm10, %v7754_v26, %v3352_v22  ;;  %v2491_v17 = vadd.f32 %v7755_v51, %v2462_v61  ;;  %v2494_v34 = vadd.f32 %v6434_v63, %v2465_v46  ;;  %v2519_v9 = vadd.f32 %v6461_v12, %v2492_v18  ;;  %v7756_v22 = vld [vmem:[#allocation54_spill] sm:$0xff]  ;;  %v6844_v16 = vpop.permute.xlu1 %2799 }
 0x280   : > { %v2549_v54 = vadd.f32 %v7756_v22, %v2520_v31  ;;  %v2750_v5 = vrot.slane %v6710_v27, 5  ;;  %v7757_v53 = vrot.slane %v6682_v25, 6  ;;  %v7758_v15 = vrot.slane %v6612_v23, 6 }
 0x281   : > { %3362 = vrot.lane.b32.xlu1 %v6697_v4, %s4202_s8  ;;  %v6841_v63 = vmul.f32 %v7759_v60, %v6615_v42  ;;  %v2490_v12 = vadd.f32 %v7755_v51, %v2461_v6  ;;  %v2752_v4 = vrot.slane %v6722_v39, 5  ;;  %v3398_v37 = vrot.slane %v6734_v19, 6  ;;  %v6858_v41 = vpop.permute.xlu0 %2801 }
 0x282   : > { %v3355_v55 = vsel %vm3223_vm10, %v7758_v15, %v7757_v53  ;;  %v3399_v25 = vrot.slane %v3387_v44, 6  ;;  %v2522_v23 = vadd.f32 %v7760_v52, %v2495_v21  ;;  %v2576_v0 = vadd.f32 %v7761_v10, %v2549_v54  ;;  %v7766_v21 = vld [vmem:[#allocation55_spill] sm:$0xff]  ;;  %v4147_v54 = vld [vmem:[#allocation2 + $0x70] sm:$0x3] }
 0x283   : > { %3364 = vrot.lane.b32.xlu0 %v3353_v20, %s4202_s8  ;;  %v3400_v33 = vrot.slane %v6819_v8, 6  ;;  %v3390_v14 = vmul.f32 %v6700_v2, %v7762_v36  ;;  %v2518_v7 = vadd.f32 %v7763_v24, %v2491_v17  ;;  %v2521_v48 = vadd.f32 %v7760_v52, %v2494_v34  ;;  %v6872_v6 = vpop.permute.xlu1 %2803  ;;  %v7768_v52 = vld [vmem:[#allocation58_spill] sm:$0xff] }
 0x284   : > { %v2548_v30 = vadd.f32 %v7756_v22, %v2519_v9  ;;  %v3402_v19 = vrot.slane %v6823_v3, 6  ;;  %v2551_v31 = vadd.f32 %v7764_v59, %v2522_v23  ;;  %v2751_v44 = vrot.slane %v6713_v13, 5 }
 0x285   : > { %3366 = vrot.lane.b32.xlu1 %v3355_v55, %s4202_s8  ;;  %v3391_v61 = vmul.f32 %v6700_v2, %v7765_v49  ;;  %v6866_v46 = vstv %s6805_s14  ;;  %v2517_v18 = vadd.f32 %v7763_v24, %v2490_v12  ;;  %v2547_v26 = vadd.f32 %v7766_v21, %v2518_v7  ;;  %s6875_s8 = sld [smem:[#allocation3 + $0x2d]]  ;;  %v6889_v22 = vpop.permute.xlu0 %2805  ;;  %v7767_v55 = vld [vmem:[#allocation63_spill] sm:$0xff]  ;;  %s259_s14 = scalar_lea.vmem %s7250_s4, %s7785_s15 }
 0x286   : > { %v2550_v20 = vadd.f32 %v7764_v59, %v2521_v48  ;;  %v2575_v8 = vadd.f32 %v7761_v10, %v2548_v30  ;;  %v2605_v3 = vadd.f32 %v6622_v50, %v2576_v0  ;;  %v2754_v2 = vrot.slane %v6841_v63, 5  ;;  %v7769_v10 = vld [vmem:[#allocation57_spill] sm:$0xff]  ;;  %v7770_v7 = vld [vmem:[#allocation59_spill] sm:$0xff] }
 0x287   : > { %3408 = vrot.lane.b32.xlu0 %v3398_v37, %s4203_s9  ;;  %v3401_v51 = vsel %vm3223_vm10, %v3398_v37, %v3400_v33  ;;  %v3404_v17 = vrot.slane %v3390_v14, 6  ;;  %v2546_v34 = vadd.f32 %v7766_v21, %v2517_v18  ;;  %v6886_v9 = vsel %vm2714_vm9, %v2750_v5, %v2752_v4  ;;  %v6902_v24 = vpop.permute.xlu1 %2807  ;;  %v7771_v18 = vld [vmem:[#allocation64_spill] sm:$0xff] }
 0x288   : > { %v6892_v53 = vmul.f32 %v4147_v54, %v6615_v42  ;;  %v3403_v15 = vsel %vm3223_vm10, %v3399_v25, %v3402_v19  ;;  %v2578_v60 = vadd.f32 %v7767_v55, %v2551_v31  ;;  %v2632_v12 = vadd.f32 %v6675_v40, %v2605_v3  ;;  %v6913_v31 = vld [vmem:[#allocation2 + $0x68] sm:$0xff]  ;;  %v4149_v3 = vld [vmem:[#allocation2 + $0x78] sm:$0x3] }
 0x289   : > { %3410 = vrot.lane.b32.xlu1 %v3399_v25, %s4203_s9  ;;  %v3406_v37 = vrot.slane %v3391_v61, 6  ;;  %v3436_v23 = vmul.f32 %v6866_v46, %v7768_v52  ;;  %v2574_v0 = vadd.f32 %v7769_v10, %v2547_v26  ;;  %v2577_v36 = vadd.f32 %v7767_v55, %v2550_v20 }
 0x28a   : > { %v2604_v14 = vadd.f32 %v6622_v50, %v2575_v8  ;;  %v3437_v25 = vmul.f32 %v6866_v46, %v7770_v7  ;;  %v2607_v48 = vadd.f32 %v6632_v62, %v2578_v60  ;;  %v3405_v30 = vsel %vm3223_vm10, %v3400_v33, %v3404_v17  ;;  %v6924_v33 = vpop.permute.xlu0 %2847 }
 0x28b   : > { %3412 = vrot.lane.b32.xlu0 %v3401_v51, %s4203_s9  ;;  %v6911_v59 = vmul.f32 %v6146_v58, %v6866_v46  ;;  %v6917_v50 = vmul.f32 %v6913_v31, %v6866_v46  ;;  %v2573_v61 = vadd.f32 %v7769_v10, %v2546_v34  ;;  %v2603_v21 = vadd.f32 %v7771_v18, %v2574_v0  ;;  %v6939_v17 = vpop.permute.xlu1 %2849 }
 0x28c   : > { %v2606_v26 = vadd.f32 %v6632_v62, %v2577_v36  ;;  %v2631_v20 = vadd.f32 %v6675_v40, %v2604_v14  ;;  %v2661_v58 = vadd.f32 %v6750_v56, %v2632_v12  ;;  %v2755_v8 = vsel %vm2714_vm9, %v2751_v44, %v2754_v2 }
 0x28d   : > { %3414 = vrot.lane.b32.xlu1 %v3403_v15, %s4203_s9  ;;  %v6935_v51 = vmul.f32 %v4149_v3, %v6615_v42  ;;  %v3407_v62 = vsel %vm3223_vm10, %v3402_v19, %v3406_v37  ;;  %v2602_v40 = vadd.f32 %v7771_v18, %v2573_v61  ;;  %v3448_v34 = vrot.slane %v3436_v23, 6 }
 0x28e   : > { %v3449_v54 = vrot.slane %v3437_v25, 6  ;;  %v3487_v15 = vstv %s6875_s8  ;;  %v2634_v55 = vadd.f32 %v6705_v28, %v2607_v48  ;;  %v2688_v60 = vadd.f32 %v6796_v47, %v2661_v58  ;;  %v2852_v23 = vpop.permute.xlu0 %2851  ;;  %v6959_v48 = vld [vmem:[#allocation2 + $0x28] sm:$0xff] }
 0x28f   : > { %3416 = vrot.lane.b32.xlu0 %v3405_v30, %s4203_s9  ;;  %v3450_v12 = vrot.slane %v6911_v59, 6  ;;  %v3440_v42 = vmul.f32 %v6866_v46, %v6635_v29  ;;  %v2630_v19 = vadd.f32 %v6645_v1, %v2603_v21  ;;  %v2633_v37 = vadd.f32 %v6705_v28, %v2606_v26  ;;  %v2854_v61 = vpop.permute.xlu1 %2853 }
 0x290   : > { %v2660_v10 = vadd.f32 %v6750_v56, %v2631_v20  ;;  %v3452_v0 = vrot.slane %v6917_v50, 6  ;;  %v2663_v36 = vadd.f32 %v6768_v32, %v2634_v55  ;;  %v3441_v14 = vmul.f32 %v6866_v46, %v6641_v35  ;;  %v7772_v46 = vld [vmem:[#allocation66_spill] sm:$0xff] }
 0x291   : > { %3418 = vrot.lane.b32.xlu1 %v3407_v62, %s4203_s9  ;;  %v6957_v25 = vmul.f32 %v3487_v15, %v6455_v45  ;;  %v3489_v30 = vmul.f32 %v6959_v48, %v3487_v15  ;;  %v2629_v28 = vadd.f32 %v6645_v1, %v2602_v40  ;;  %v2659_v56 = vadd.f32 %v6729_v43, %v2630_v19 }
 0x292   : > { %v2662_v59 = vadd.f32 %v6768_v32, %v2633_v37  ;;  %v2687_v50 = vadd.f32 %v6796_v47, %v2660_v10  ;;  %v2734_v18 = vadd.f32 %v7772_v46, %v2688_v60  ;;  %v3451_v21 = vsel %vm3223_vm10, %v3448_v34, %v3450_v12  ;;  %v2856_v32 = vpop.permute.xlu0 %2855 }
 0x293   : > { %3458 = vrot.lane.b32.xlu0 %v3448_v34, %s4203_s9  ;;  %v3454_v26 = vrot.slane %v3440_v42, 6  ;;  %v3490_v20 = vmul.f32 %v3487_v15, %v7765_v49  ;;  %v2658_v58 = vadd.f32 %v6729_v43, %v2629_v28  ;;  %v2756_v1 = vrot.slane %v6892_v53, 5  ;;  %v7773_v43 = vld [vmem:[#allocation65_spill] sm:$0xff] }
 0x294   : > { %v2758_v3 = vrot.slane %v6935_v51, 5  ;;  %v3514_v47 = vstv %s6926_s18  ;;  %v2690_v62 = vadd.f32 %v6809_v38, %v2663_v36  ;;  %v3453_v40 = vsel %vm3223_vm10, %v3449_v54, %v3452_v0  ;;  %v2858_v51 = vpop.permute.xlu1 %2857 }
 0x295   : > { %3460 = vrot.lane.b32.xlu1 %v3449_v54, %s4203_s9  ;;  %v3456_v55 = vrot.slane %v3441_v14, 6  ;;  %v3494_v34 = vrot.slane %v6957_v25, 6  ;;  %v2686_v15 = vadd.f32 %v6779_v57, %v2659_v56  ;;  %v2733_v60 = vadd.f32 %v7773_v43, %v2687_v50  ;;  %v7777_v50 = vld [vmem:[#allocation68_spill] sm:$0xff] }
 0x296   : > { %v2689_v53 = vadd.f32 %v6809_v38, %v2662_v59  ;;  %v3495_v42 = vrot.slane %v3489_v30, 6  ;;  %v2769_v19 = vadd.f32 %v2755_v8, %v2734_v18  ;;  %v3455_v37 = vsel %vm3223_vm10, %v3450_v12, %v3454_v26  ;;  %v2900_v38 = vpop.permute.xlu0 %2899  ;;  %v7774_v12 = vld [vmem:[#allocation67_spill] sm:$0xff] }
 0x297   : > { %3462 = vrot.lane.b32.xlu0 %v3451_v21, %s4203_s9  ;;  %v3497_v10 = vrot.slane %v3490_v20, 6  ;;  %v6986_v54 = vmul.f32 %v3514_v47, %v7770_v7  ;;  %v2685_v36 = vadd.f32 %v6779_v57, %v2658_v58  ;;  %v2757_v14 = vsel %vm2714_vm9, %v2752_v4, %v2756_v1  ;;  %v7775_v4 = vld [vmem:[#allocation62_spill] sm:$0xff]  ;;  %v7778_v20 = vld [vmem:[#allocation61_spill] sm:$0xff] }
 0x298   : > { %v6994_v25 = vmul.f32 %v6913_v31, %v3514_v47  ;;  %v6997_v8 = vmul.f32 %v3514_v47, %v6641_v35  ;;  %v2736_v30 = vadd.f32 %v7774_v12, %v2690_v62  ;;  %v2810_v28 = vsel %vm412_vm3, %v6858_v41, %v6872_v6  ;;  %v2902_v21 = vpop.permute.xlu1 %2901 }
 0x299   : > { %3464 = vrot.lane.b32.xlu1 %v3453_v40, %s4203_s9  ;;  %v2759_v39 = vsel %vm2714_vm9, %v2754_v2, %v2758_v3  ;;  %v3457_v57 = vsel %vm3223_vm10, %v3452_v0, %v3456_v55  ;;  %v7776_v56 = vrot.slane %v7775_v4, 5  ;;  %v2735_v46 = vadd.f32 %v7777_v50, %v2689_v53 }
 0x29a   : > { %v2768_v18 = vadd.f32 %v6886_v9, %v2733_v60  ;;  %v3496_v26 = vsel %vm3223_vm10, %v3494_v34, %v3495_v42  ;;  %v2821_v41 = vadd.f32 %v6872_v6, %v2769_v19  ;;  %v2860_v63 = vsel %vm412_vm3, %v2852_v23, %v2854_v61  ;;  %v2904_v9 = vpop.permute.xlu0 %2903 }
 0x29b   : > { %v2732_v59 = vadd.f32 %v7776_v56, %v2686_v15  ;;  %3466 = vrot.lane.b32.xlu0 %v3455_v37, %s4203_s9  ;;  %v3498_v2 = vsel %vm3223_vm10, %v3495_v42, %v3497_v10  ;;  %v3521_v0 = vrot.slane %v6986_v54, 6  ;;  %v7779_v58 = vrot.slane %v7778_v20, 5 }
 0x29c   : > { %v2820_v3 = vadd.f32 %v2810_v28, %v2768_v18  ;;  %v3522_v47 = vrot.slane %v6994_v25, 6  ;;  %v3524_v62 = vrot.slane %v6997_v8, 6  ;;  %v2771_v40 = vadd.f32 %v2759_v39, %v2736_v30  ;;  %v2906_v42 = vpop.permute.xlu1 %2905 }
 0x29d   : > { %v2731_v1 = vadd.f32 %v7779_v58, %v2685_v36  ;;  %3468 = vrot.lane.b32.xlu1 %v3457_v57, %s4203_s9  ;;  %v2811_v6 = vsel %vm412_vm3, %v6889_v22, %v6902_v24  ;;  %v2871_v23 = vadd.f32 %v2854_v61, %v2821_v41  ;;  %v3543_v55 = vstv %s6978_s20  ;;  %s7046_s9 = sld [smem:[#allocation3 + $0x2f]] }
 0x29e   : > { %v2767_v15 = vadd.f32 %v2751_v44, %v2732_v59  ;;  %v2809_v43 = vsel %vm412_vm3, %v6830_v11, %v6844_v16  ;;  %v2770_v60 = vadd.f32 %v2757_v14, %v2735_v46  ;;  %v2870_v53 = vadd.f32 %v2860_v63, %v2820_v3  ;;  %v2908_v11 = vpop.permute.xlu0 %2907 }
 0x29f   : > { %3499 = vrot.lane.b32.xlu0 %v3494_v34, %s4204_s24  ;;  %v2823_v19 = vadd.f32 %v6902_v24, %v2771_v40  ;;  %v2861_v22 = vsel %vm412_vm3, %v2856_v32, %v2858_v51  ;;  %v2912_v61 = vsel %vm495_vm4, %v2904_v9, %v2906_v42  ;;  %v2923_v37 = vadd.f32 %v2906_v42, %v2871_v23 }
 0x2a0   : > { %v2766_v13 = vadd.f32 %v2750_v5, %v2731_v1  ;;  %v2822_v44 = vadd.f32 %v2811_v6, %v2770_v60  ;;  %v2922_v10 = vadd.f32 %v2912_v61, %v2870_v53  ;;  %v3544_v54 = vmul.f32 %v3543_v55, %v6455_v45  ;;  %v2910_v14 = vpop.permute.xlu1 %2909 }
 0x2a1   : > { %3501 = vrot.lane.b32.xlu1 %v3496_v26, %s4204_s24  ;;  %v2819_v36 = vadd.f32 %v6844_v16, %v2767_v15  ;;  %v2859_v24 = vsel %vm412_vm3, %v6924_v33, %v6939_v17  ;;  %v2873_v32 = vadd.f32 %v2858_v51, %v2823_v19  ;;  %v3545_v34 = vmul.f32 %v6959_v48, %v3543_v55 }
 0x2a2   : > { %v2818_v27 = vadd.f32 %v2809_v43, %v2766_v13  ;;  %v2872_v5 = vadd.f32 %v2861_v22, %v2822_v44  ;;  %v3523_v25 = vsel %vm3223_vm10, %v3521_v0, %v3522_v47  ;;  %v3546_v8 = vmul.f32 %v3543_v55, %v7765_v49  ;;  %v2950_v39 = vpop.permute.xlu0 %2949 }
 0x2a3   : > { %3503 = vrot.lane.b32.xlu0 %v3498_v2, %s4204_s24  ;;  %v2869_v16 = vadd.f32 %v6939_v17, %v2819_v36  ;;  %v2911_v12 = vsel %vm495_vm4, %v2900_v38, %v2902_v21  ;;  %v2913_v33 = vsel %vm495_vm4, %v2908_v11, %v2910_v14  ;;  %v2925_v51 = vadd.f32 %v2910_v14, %v2873_v32 }
 0x2a4   : > { %v2868_v30 = vadd.f32 %v2859_v24, %v2818_v27  ;;  %v2924_v28 = vadd.f32 %v2913_v33, %v2872_v5  ;;  %v3525_v57 = vsel %vm3223_vm10, %v3522_v47, %v3524_v62  ;;  %v3550_v56 = vrot.slane %v3544_v54, 6  ;;  %v2952_v18 = vpop.permute.xlu1 %2951 }
 0x2a5   : > { %3526 = vrot.lane.b32.xlu1 %v3521_v0, %s4204_s24  ;;  %v2921_v4 = vadd.f32 %v2902_v21, %v2869_v16  ;;  %v3551_v59 = vrot.slane %v3545_v34, 6  ;;  %v3570_v50 = vstv %s7026_s21  ;;  %v2961_v17 = vsel %vm495_vm4, %v2950_v39, %v2952_v18 }
 0x2a6   : > { %v2920_v46 = vadd.f32 %v2911_v12, %v2868_v30  ;;  %v3553_v26 = vrot.slane %v3546_v8, 6  ;;  %v3572_v41 = vmul.f32 %v6913_v31, %v3570_v50  ;;  %v2954_v2 = vpop.permute.xlu0 %2953  ;;  %v3571_v21 = vmul.f32 %v3570_v50, %v7770_v7 }
 0x2a7   : > { %3528 = vrot.lane.b32.xlu0 %v3523_v25, %s4204_s24  ;;  %v2971_v38 = vadd.f32 %v2952_v18, %v2921_v4  ;;  %v3573_v0 = vmul.f32 %v3570_v50, %v6641_v35  ;;  %v3552_v20 = vsel %vm3223_vm10, %v3550_v56, %v3551_v59  ;;  %v3599_v58 = vstv %s7046_s9 }
 0x2a8   : > { %v2970_v63 = vadd.f32 %v2961_v17, %v2920_v46  ;;  %v2956_v1 = vpop.permute.xlu1 %2955  ;;  %v3554_v47 = vsel %vm3223_vm10, %v3551_v59, %v3553_v26  ;;  %v3578_v62 = vrot.slane %v3572_v41, 6  ;;  %v3577_v23 = vrot.slane %v3571_v21, 6 }
 0x2a9   : > { %3530 = vrot.lane.b32.xlu1 %v3525_v57, %s4204_s24  ;;  %v2962_v3 = vsel %vm495_vm4, %v2954_v2, %v2956_v1  ;;  %v2973_v9 = vadd.f32 %v2956_v1, %v2923_v37  ;;  %v3580_v55 = vrot.slane %v3573_v0, 6  ;;  %v3600_v15 = vmul.f32 %v3599_v58, %v6455_v45  ;;  %s4065_s24 = sld [smem:[#allocation3 + $0x30]] }
 0x2aa   : > { %v2972_v40 = vadd.f32 %v2962_v3, %v2922_v10  ;;  %v2958_v6 = vpop.permute.xlu0 %2957  ;;  %v3601_v43 = vmul.f32 %v6959_v48, %v3599_v58  ;;  %v3579_v19 = vsel %vm3223_vm10, %v3577_v23, %v3578_v62  ;;  %v3602_v22 = vmul.f32 %v3599_v58, %v7765_v49 }
 0x2ab   : > { %3555 = vrot.lane.b32.xlu0 %v3550_v56, %s4205_s27  ;;  %v3581_v13 = vsel %vm3223_vm10, %v3578_v62, %v3580_v55  ;;  %v3606_v44 = vrot.slane %v3600_v15, 6  ;;  %v3626_v36 = vstv %s4064_s22 }
 0x2ac   : > { %v2960_v60 = vpop.permute.xlu1 %2959  ;;  %v3607_v54 = vrot.slane %v3601_v43, 6  ;;  %v3609_v27 = vrot.slane %v3602_v22, 6  ;;  %v3628_v5 = vmul.f32 %v6913_v31, %v3626_v36  ;;  %v3627_v25 = vmul.f32 %v3626_v36, %v7770_v7 }
 0x2ad   : > { %3557 = vrot.lane.b32.xlu1 %v3552_v20, %s4205_s27  ;;  %v2963_v53 = vsel %vm495_vm4, %v2958_v6, %v2960_v60  ;;  %v2975_v42 = vadd.f32 %v2960_v60, %v2925_v51  ;;  %v3629_v8 = vmul.f32 %v3626_v36, %v6641_v35 }
 0x2ae   : > { %v2974_v61 = vadd.f32 %v2963_v53, %v2924_v28  ;;  %v2991_v37 = vpop.permute.xlu0 %2990  ;;  %v3608_v33 = vsel %vm3223_vm10, %v3606_v44, %v3607_v54  ;;  %v3610_v57 = vsel %vm3223_vm10, %v3607_v54, %v3609_v27  ;;  %v3634_v4 = vrot.slane %v3628_v5, 6 }
 0x2af   : > { %3559 = vrot.lane.b32.xlu0 %v3554_v47, %s4205_s27  ;;  %v2999_v10 = vadd.f32 %v2991_v37, %v2970_v63  ;;  %v3000_v11 = vadd.f32 %v2991_v37, %v2971_v38  ;;  %v3655_v51 = vstv %s4065_s24  ;;  %v3633_v59 = vrot.slane %v3627_v25, 6 }
 0x2b0   : > { %v2993_v24 = vpop.permute.xlu1 %2992  ;;  %v3636_v50 = vrot.slane %v3629_v8, 6  ;;  %v3656_v46 = vmul.f32 %v3655_v51, %v6455_v45  ;;  %v3657_v38 = vmul.f32 %v6959_v48, %v3655_v51  ;;  %v3658_v21 = vmul.f32 %v3655_v51, %v7765_v49 }
 0x2b1   : > { %3582 = vrot.lane.b32.xlu1 %v3577_v23, %s4205_s27  ;;  %v3001_v32 = vadd.f32 %v2993_v24, %v2972_v40  ;;  %v3002_v34 = vadd.f32 %v2993_v24, %v2973_v9  ;;  %v3635_v2 = vsel %vm3223_vm10, %v3633_v59, %v3634_v4  ;;  %v3682_v9 = vstv %s4066_s23 }
 0x2b2   : > { %v2995_v14 = vpop.permute.xlu0 %2994  ;;  %v3637_v20 = vsel %vm3223_vm10, %v3634_v4, %v3636_v50  ;;  %v3662_v58 = vrot.slane %v3656_v46, 6  ;;  %v3663_v3 = vrot.slane %v3657_v38, 6  ;;  %v3665_v6 = vrot.slane %v3658_v21, 6  ;;  %v4152_v21 = vld [vmem:[#allocation2 + $0x10] sm:$0xf8] }
 0x2b3   : > { %3584 = vrot.lane.b32.xlu0 %v3579_v19, %s4205_s27  ;;  %v3003_v16 = vadd.f32 %v2995_v14, %v2974_v61  ;;  %v3004_v12 = vadd.f32 %v2995_v14, %v2975_v42  ;;  %v3684_v23 = vmul.f32 %v6913_v31, %v3682_v9  ;;  %v3683_v55 = vmul.f32 %v3682_v9, %v7770_v7 }
 0x2b4   : > { %v3018_v30 = vpop.permute.xlu1 %3017  ;;  %v3664_v60 = vsel %vm3223_vm10, %v3662_v58, %v3663_v3  ;;  %v3685_v53 = vmul.f32 %v3682_v9, %v6641_v35  ;;  %v3666_v61 = vsel %vm3223_vm10, %v3663_v3, %v3665_v6 }
 0x2b5   : > { %3586 = vrot.lane.b32.xlu1 %v3581_v13, %s4205_s27  ;;  %v3026_v28 = vadd.f32 %v3018_v30, %v2999_v10  ;;  %v3027_v39 = vadd.f32 %v3018_v30, %v3000_v11  ;;  %v3690_v37 = vrot.slane %v3684_v23, 6  ;;  %s4053_s27 = sld [smem:[#allocation3 + $0x2a]] }
 0x2b6   : > { %v3020_v56 = vpop.permute.xlu0 %3019  ;;  %v3692_v54 = vrot.slane %v3685_v53, 6 }
 0x2b7   : > { %3611 = vrot.lane.b32.xlu0 %v3606_v44, %s4206_s6  ;;  %v3028_v18 = vadd.f32 %v3020_v56, %v3001_v32  ;;  %v3029_v17 = vadd.f32 %v3020_v56, %v3002_v34  ;;  %v3689_v44 = vrot.slane %v3683_v55, 6 }
 0x2b8   : > { %v3022_v26 = vpop.permute.xlu1 %3021  ;;  %v3693_v14 = vsel %vm3223_vm10, %v3690_v37, %v3692_v54 }
 0x2b9   : > { %3613 = vrot.lane.b32.xlu1 %v3608_v33, %s4206_s6  ;;  %v3030_v41 = vadd.f32 %v3022_v26, %v3003_v16  ;;  %v3031_v63 = vadd.f32 %v3022_v26, %v3004_v12  ;;  %v3691_v32 = vsel %vm3223_vm10, %v3689_v44, %v3690_v37 }
 0x2ba   : > { %v3047_v0 = vpop.permute.xlu0 %3046 }
 0x2bb   : > { %3615 = vrot.lane.b32.xlu0 %v3610_v57, %s4206_s6  ;;  %v3055_v45 = vadd.f32 %v3047_v0, %v3026_v28  ;;  %v3056_v1 = vadd.f32 %v3047_v0, %v3027_v39  ;;  %v7108_v50 = vstv %s4053_s27 }
 0x2bc   : > { %v3049_v47 = vpop.permute.xlu1 %3048  ;;  %v3211_v0 = vmul.f32 %v4152_v21, %v7108_v50 }
 0x2bd   : > { %3638 = vrot.lane.b32.xlu1 %v3633_v59, %s4206_s6  ;;  %v3057_v62 = vadd.f32 %v3049_v47, %v3028_v18  ;;  %v3058_v40 = vadd.f32 %v3049_v47, %v3029_v17 }
 0x2be   : > { %v3051_v49 = vpop.permute.xlu0 %3050  ;;  %v3224_v23 = vrot.slane %v3211_v0, 6 }
 0x2bf   : > { %3640 = vrot.lane.b32.xlu0 %v3635_v2, %s4206_s6  ;;  %v3059_v15 = vadd.f32 %v3051_v49, %v3030_v41  ;;  %v3060_v43 = vadd.f32 %v3051_v49, %v3031_v63  ;;  %v4151_v41 = vld [vmem:[#allocation2 + $0x18] sm:$0xf8] }
 0x2c0   : > { %v3074_v42 = vpop.permute.xlu1 %3073  ;;  %v7111_v63 = vmul.f32 %v4151_v41, %v7108_v50 }
 0x2c1   : > { %3642 = vrot.lane.b32.xlu1 %v3637_v20, %s4206_s6  ;;  %v3082_v19 = vadd.f32 %v3074_v42, %v3055_v45  ;;  %v3083_v22 = vadd.f32 %v3074_v42, %v3056_v1  ;;  %s4054_s6 = sld [smem:[#allocation3 + $0x5b]]  ;;  %v4153_v20 = vld [vmem:[#allocation2 + $0x10] sm:$0xff] }
 0x2c2   : > { %v3076_v13 = vpop.permute.xlu0 %3075 }
 0x2c3   : > { %3667 = vrot.lane.b32.xlu0 %v3662_v58, %s4207_s11  ;;  %v3084_v10 = vadd.f32 %v3076_v13, %v3057_v62  ;;  %v3085_v11 = vadd.f32 %v3076_v13, %v3058_v40  ;;  %v3213_v58 = vmul.f32 %v4153_v20, %v7108_v50  ;;  %v3225_v40 = vrot.slane %v7111_v63, 6 }
 0x2c4   : > { %v3078_v36 = vpop.permute.xlu1 %3077 }
 0x2c5   : > { %3669 = vrot.lane.b32.xlu1 %v3664_v60, %s4207_s11  ;;  %v3086_v24 = vadd.f32 %v3078_v36, %v3059_v15  ;;  %v3087_v35 = vadd.f32 %v3078_v36, %v3060_v43  ;;  %v3226_v55 = vrot.slane %v3213_v58, 6  ;;  %v4154_v15 = vld [vmem:[#allocation2 + $0x30] sm:$0x7] }
 0x2c6   : > { %v3103_v34 = vpop.permute.xlu0 %3102  ;;  %v3215_v43 = vmul.f32 %v4154_v15, %v7108_v50 }
 0x2c7   : > { %3671 = vrot.lane.b32.xlu0 %v3666_v61, %s4207_s11  ;;  %v3111_v27 = vadd.f32 %v3103_v34, %v3082_v19  ;;  %v3112_v5 = vadd.f32 %v3103_v34, %v3083_v22  ;;  %v7115_v45 = vstv %s4054_s6 }
 0x2c8   : > { %v3105_v25 = vpop.permute.xlu1 %3104  ;;  %v7120_v6 = vmul.f32 %v7115_v45, %v7770_v7  ;;  %v3247_v60 = vmul.f32 %v7115_v45, %v7768_v52  ;;  %v3249_v19 = vmul.f32 %v4153_v20, %v7115_v45 }
 0x2c9   : > { %3694 = vrot.lane.b32.xlu1 %v3689_v44, %s4207_s11  ;;  %v3113_v8 = vadd.f32 %v3105_v25, %v3084_v10  ;;  %v3114_v16 = vadd.f32 %v3105_v25, %v3085_v11  ;;  %v3227_v10 = vsel %vm3223_vm10, %v3224_v23, %v3226_v55  ;;  %v3230_v11 = vrot.slane %v3215_v43, 6 }
 0x2ca   : > { %v3107_v12 = vpop.permute.xlu0 %3106  ;;  %v3260_v13 = vrot.slane %v7120_v6, 6  ;;  %v3259_v36 = vrot.slane %v3247_v60, 6 }
 0x2cb   : > { %3696 = vrot.lane.b32.xlu0 %v3691_v32, %s4207_s11  ;;  %v3115_v33 = vadd.f32 %v3107_v12, %v3086_v24  ;;  %v3116_v51 = vadd.f32 %v3107_v12, %v3087_v35  ;;  %v3261_v35 = vrot.slane %v3249_v19, 6  ;;  %v3251_v32 = vmul.f32 %v7115_v45, %v6635_v29  ;;  %v4155_v19 = vld [vmem:[#allocation2 + $0x38] sm:$0x7] }
 0x2cc   : > { %v3130_v30 = vpop.permute.xlu1 %3129 }
 0x2cd   : > { %3698 = vrot.lane.b32.xlu1 %v3693_v14, %s4207_s11  ;;  %v3138_v28 = vadd.f32 %v3130_v30, %v3111_v27  ;;  %v3139_v39 = vadd.f32 %v3130_v30, %v3112_v5  ;;  %v3231_v14 = vsel %vm3223_vm10, %v3226_v55, %v3230_v11  ;;  %s4208_s11 = smov 3  }
 0x2ce   : > { %v3132_v57 = vpop.permute.xlu0 %3131 }
 0x2cf   : > { %v3140_v4 = vadd.f32 %v3132_v57, %v3113_v8  ;;  %v3141_v56 = vadd.f32 %v3132_v57, %v3114_v16 }
 0x2d0   : > { %v3134_v59 = vpop.permute.xlu1 %3133 }
 0x2d1   : > { %v3142_v46 = vadd.f32 %v3134_v59, %v3115_v33  ;;  %v3143_v18 = vadd.f32 %v3134_v59, %v3116_v51  ;;  %v3262_v33 = vsel %vm3223_vm10, %v3259_v36, %v3261_v35  ;;  %v3265_v51 = vrot.slane %v3251_v32, 6 }
 0x2d3   : > { %v3159_v17 = vpop.permute.xlu0 %3158 }
 0x2d4   : > { %v3167_v38 = vadd.f32 %v3159_v17, %v3138_v28  ;;  %v3168_v26 = vadd.f32 %v3159_v17, %v3139_v39  ;;  %v3161_v2 = vpop.permute.xlu1 %3160 }
 0x2d5   : > { %v3169_v1 = vadd.f32 %v3161_v2, %v3140_v4  ;;  %v3170_v3 = vadd.f32 %v3161_v2, %v3141_v56  ;;  %v3266_v56 = vsel %vm3223_vm10, %v3261_v35, %v3265_v51 }
 0x2d7   : > { %v3163_v9 = vpop.permute.xlu0 %3162 }
 0x2d8   : > { %v3171_v47 = vadd.f32 %v3163_v9, %v3142_v46  ;;  %v3172_v62 = vadd.f32 %v3163_v9, %v3143_v18  ;;  %v3186_v49 = vpop.permute.xlu1 %3185 }
 0x2d9   : > { %v3194_v53 = vadd.f32 %v3186_v49, %v3167_v38  ;;  %v3195_v42 = vadd.f32 %v3186_v49, %v3168_v26 }
 0x2db   : > { %v3188_v22 = vpop.permute.xlu0 %3187  ;;  %v3241_v61 = vadd.f32 %v3225_v40, %v3195_v42  ;;  %v3240_v44 = vadd.f32 %v3224_v23, %v3194_v53  ;;  %v3214_v53 = vmul.f32 %v6959_v48, %v7108_v50 }
 0x2dc   : > { %v3196_v37 = vadd.f32 %v3188_v22, %v3169_v1  ;;  %v7128_v7 = vadd.f32 %v3188_v22, %v3170_v3  ;;  %v3190_v54 = vpop.permute.xlu1 %3189  ;;  %v3216_v22 = vmul.f32 %v4155_v19, %v7108_v50 }
 0x2dd   : > { %v3198_v52 = vadd.f32 %v3190_v54, %v3171_v47  ;;  %v7132_v24 = vadd.f32 %v3190_v54, %v3172_v62  ;;  %v3276_v27 = vadd.f32 %v3260_v13, %v3241_v61  ;;  %v3275_v25 = vadd.f32 %v3259_v36, %v3240_v44  ;;  %v4156_v54 = vld [vmem:[#allocation2 + $0x78] sm:$0x7] }
 0x2de   : > { %v3242_v5 = vadd.f32 %v3227_v10, %v3196_v37  ;;  %v3228_v37 = vrot.slane %v3214_v53, 6  ;;  %v3250_v44 = vmul.f32 %v6913_v31, %v7115_v45  ;;  %v3232_v11 = vrot.slane %v3216_v22, 6 }
 0x2df   : > { %v3307_v34 = vpop.permute.xlu0 %3306  ;;  %v3244_v39 = vadd.f32 %v3231_v14, %v3198_v52  ;;  %v3252_v36 = vmul.f32 %v4156_v54, %v7115_v45 }
 0x2e0   : > { %v3277_v29 = vadd.f32 %v3262_v33, %v3242_v5  ;;  %v3229_v35 = vsel %vm3223_vm10, %v3225_v40, %v3228_v37  ;;  %v3263_v48 = vrot.slane %v3250_v44, 6 }
 0x2e1   : > { %v3309_v8 = vpop.permute.xlu1 %3308  ;;  %v3279_v18 = vadd.f32 %v3266_v56, %v3244_v39  ;;  %v3267_v50 = vrot.slane %v3252_v36, 6  ;;  %v3243_v5 = vadd.f32 %v3229_v35, %v7128_v7 }
 0x2e2   : > { %v3318_v16 = vsel %vm412_vm3, %v3307_v34, %v3309_v8  ;;  %v7140_v12 = vadd.f32 %v3309_v8, %v3276_v27  ;;  %v3233_v34 = vsel %vm3223_vm10, %v3228_v37, %v3232_v11  ;;  %v3264_v31 = vsel %vm3223_vm10, %v3260_v13, %v3263_v48 }
 0x2e3   : > { %v3327_v30 = vadd.f32 %v3318_v16, %v3275_v25  ;;  %v3311_v28 = vpop.permute.xlu0 %3310  ;;  %v3245_v45 = vadd.f32 %v3233_v34, %v7132_v24  ;;  %v3268_v25 = vsel %vm3223_vm10, %v3263_v48, %v3267_v50  ;;  %v3278_v8 = vadd.f32 %v3264_v31, %v3243_v5 }
 0x2e5   : > { %v3313_v57 = vpop.permute.xlu1 %3312  ;;  %v3280_v33 = vadd.f32 %v3268_v25, %v3245_v45 }
 0x2e6   : > { %v3319_v4 = vsel %vm412_vm3, %v3311_v28, %v3313_v57  ;;  %v3330_v13 = vadd.f32 %v3313_v57, %v3278_v8 }
 0x2e7   : > { %v7145_v59 = vadd.f32 %v3319_v4, %v3277_v29  ;;  %v3315_v46 = vpop.permute.xlu0 %3314 }
 0x2e9   : > { %v3317_v17 = vpop.permute.xlu1 %3316 }
 0x2ea   : > { %v3320_v38 = vsel %vm412_vm3, %v3315_v46, %v3317_v17  ;;  %v3332_v29 = vadd.f32 %v3317_v17, %v3280_v33 }
 0x2eb   : > { %v3331_v26 = vadd.f32 %v3320_v38, %v3279_v18 }
 0x2ed   : > { %v3357_v41 = vpop.permute.xlu0 %3356 }
 0x2ef   : > { %v3359_v2 = vpop.permute.xlu1 %3358 }
 0x2f0   : > { %v3368_v40 = vsel %vm412_vm3, %v3357_v41, %v3359_v2  ;;  %v3378_v7 = vadd.f32 %v3359_v2, %v7140_v12 }
 0x2f1   : > { %v3361_v21 = vpop.permute.xlu0 %3360  ;;  %v3377_v28 = vadd.f32 %v3368_v40, %v3327_v30 }
 0x2f3   : > { %v3363_v0 = vpop.permute.xlu1 %3362 }
 0x2f4   : > { %v3369_v24 = vsel %vm412_vm3, %v3361_v21, %v3363_v0  ;;  %v3380_v41 = vadd.f32 %v3363_v0, %v3330_v13 }
 0x2f5   : > { %v3365_v20 = vpop.permute.xlu0 %3364  ;;  %v3379_v12 = vadd.f32 %v3369_v24, %v7145_v59 }
 0x2f7   : > { %v3367_v58 = vpop.permute.xlu1 %3366 }
 0x2f8   : > { %v3370_v6 = vsel %vm412_vm3, %v3365_v20, %v3367_v58 }
 0x2f9   : > { %v3409_v1 = vpop.permute.xlu0 %3408  ;;  %v3381_v53 = vadd.f32 %v3370_v6, %v3331_v26 }
 0x2fb   : > { %v3411_v3 = vpop.permute.xlu1 %3410 }
 0x2fc   : > { %v3420_v51 = vsel %vm495_vm4, %v3409_v1, %v3411_v3  ;;  %v3430_v46 = vadd.f32 %v3411_v3, %v3378_v7  ;;  %v3382_v1 = vadd.f32 %v3367_v58, %v3332_v29 }
 0x2fd   : > { %v3413_v9 = vpop.permute.xlu0 %3412  ;;  %v3429_v56 = vadd.f32 %v3420_v51, %v3377_v28 }
 0x2ff   : > { %v3415_v47 = vpop.permute.xlu1 %3414 }
 0x300   : > { %v3421_v30 = vsel %vm495_vm4, %v3413_v9, %v3415_v47 }
 0x301   : > { %v3417_v62 = vpop.permute.xlu0 %3416 }
 0x303   : > { %v3419_v23 = vpop.permute.xlu1 %3418 }
 0x304   : > { %v3422_v18 = vsel %vm495_vm4, %v3417_v62, %v3419_v23  ;;  %v3434_v19 = vadd.f32 %v3419_v23, %v3382_v1  ;;  %v3432_v62 = vadd.f32 %v3415_v47, %v3380_v41 }
 0x305   : > { %v3459_v49 = vpop.permute.xlu0 %3458  ;;  %v3433_v21 = vadd.f32 %v3422_v18, %v3381_v53 }
 0x307   : > { %v3461_v55 = vpop.permute.xlu1 %3460 }
 0x308   : > { %v3470_v4 = vsel %vm495_vm4, %v3459_v49, %v3461_v55  ;;  %v3480_v20 = vadd.f32 %v3461_v55, %v3430_v46  ;;  %v3431_v49 = vadd.f32 %v3421_v30, %v3379_v12 }
 0x309   : > { %v3463_v15 = vpop.permute.xlu0 %3462  ;;  %v3479_v2 = vadd.f32 %v3470_v4, %v3429_v56 }
 0x30b   : > { %v7148_v43 = vpop.permute.xlu1 %3464 }
 0x30c   : > { %v3471_v3 = vsel %vm495_vm4, %v3463_v15, %v7148_v43  ;;  %v3482_v59 = vadd.f32 %v7148_v43, %v3432_v62 }
 0x30d   : > { %v3467_v60 = vpop.permute.xlu0 %3466  ;;  %v3481_v9 = vadd.f32 %v3471_v3, %v3431_v49 }
 0x30f   : > { %v3469_v42 = vpop.permute.xlu1 %3468 }
 0x310   : > { %v3472_v57 = vsel %vm495_vm4, %v3467_v60, %v3469_v42  ;;  %v3484_v37 = vadd.f32 %v3469_v42, %v3434_v19 }
 0x311   : > { %v3500_v61 = vpop.permute.xlu0 %3499  ;;  %v3483_v58 = vadd.f32 %v3472_v57, %v3433_v21 }
 0x312   : > { %v3508_v22 = vadd.f32 %v3500_v61, %v3479_v2  ;;  %v3509_v0 = vadd.f32 %v3500_v61, %v3480_v20 }
 0x313   : > { %v3502_v10 = vpop.permute.xlu1 %3501 }
 0x314   : > { %v3510_v60 = vadd.f32 %v3502_v10, %v3481_v9  ;;  %v3511_v54 = vadd.f32 %v3502_v10, %v3482_v59 }
 0x315   : > { %v3504_v52 = vpop.permute.xlu0 %3503 }
 0x316   : > { %v3512_v55 = vadd.f32 %v3504_v52, %v3483_v58  ;;  %v3513_v11 = vadd.f32 %v3504_v52, %v3484_v37 }
 0x317   : > { %v3527_v32 = vpop.permute.xlu1 %3526 }
 0x318   : > { %v3535_v36 = vadd.f32 %v3527_v32, %v3508_v22  ;;  %v3536_v23 = vadd.f32 %v3527_v32, %v3509_v0 }
 0x319   : > { %v3529_v27 = vpop.permute.xlu0 %3528 }
 0x31a   : > { %v3537_v48 = vadd.f32 %v3529_v27, %v3510_v60  ;;  %v3538_v15 = vadd.f32 %v3529_v27, %v3511_v54 }
 0x31b   : > { %v3531_v14 = vpop.permute.xlu1 %3530 }
 0x31c   : > { %v3539_v61 = vadd.f32 %v3531_v14, %v3512_v55  ;;  %v3540_v5 = vadd.f32 %v3531_v14, %v3513_v11 }
 0x31d   : > { %v3556_v63 = vpop.permute.xlu0 %3555 }
 0x31e   : > { %v3564_v34 = vadd.f32 %v3556_v63, %v3535_v36  ;;  %v3565_v47 = vadd.f32 %v3556_v63, %v3536_v23 }
 0x31f   : > { %v3558_v16 = vpop.permute.xlu1 %3557 }
 0x320   : > { %v3566_v25 = vadd.f32 %v3558_v16, %v3537_v48  ;;  %v3567_v43 = vadd.f32 %v3558_v16, %v3538_v15 }
 0x321   : > { %v3560_v39 = vpop.permute.xlu0 %3559 }
 0x322   : > { %v3568_v42 = vadd.f32 %v3560_v39, %v3539_v61  ;;  %v3569_v45 = vadd.f32 %v3560_v39, %v3540_v5 }
 0x323   : > { %v3583_v38 = vpop.permute.xlu1 %3582 }
 0x324   : > { %v3591_v8 = vadd.f32 %v3583_v38, %v3564_v34  ;;  %v3592_v40 = vadd.f32 %v3583_v38, %v3565_v47 }
 0x325   : > { %v3585_v17 = vpop.permute.xlu0 %3584 }
 0x326   : > { %v3593_v33 = vadd.f32 %v3585_v17, %v3566_v25  ;;  %v3594_v10 = vadd.f32 %v3585_v17, %v3567_v43 }
 0x327   : > { %v3587_v26 = vpop.permute.xlu1 %3586 }
 0x328   : > { %v3595_v7 = vadd.f32 %v3587_v26, %v3568_v42  ;;  %v3596_v27 = vadd.f32 %v3587_v26, %v3569_v45 }
 0x329   : > { %v3612_v44 = vpop.permute.xlu0 %3611 }
 0x32a   : > { %v3620_v51 = vadd.f32 %v3612_v44, %v3591_v8  ;;  %v3621_v32 = vadd.f32 %v3612_v44, %v3592_v40 }
 0x32b   : > { %v3614_v35 = vpop.permute.xlu1 %3613 }
 0x32c   : > { %v3622_v29 = vadd.f32 %v3614_v35, %v3593_v33  ;;  %v3623_v14 = vadd.f32 %v3614_v35, %v3594_v10 }
 0x32d   : > { %v3616_v50 = vpop.permute.xlu0 %3615 }
 0x32e   : > { %v3624_v63 = vadd.f32 %v3616_v50, %v3595_v7  ;;  %v3625_v13 = vadd.f32 %v3616_v50, %v3596_v27 }
 0x32f   : > { %v3639_v31 = vpop.permute.xlu1 %3638 }
 0x330   : > { %v3647_v24 = vadd.f32 %v3639_v31, %v3620_v51  ;;  %v3648_v4 = vadd.f32 %v3639_v31, %v3621_v32 }
 0x331   : > { %v3641_v52 = vpop.permute.xlu0 %3640 }
 0x332   : > { %v3649_v56 = vadd.f32 %v3641_v52, %v3622_v29  ;;  %v3650_v16 = vadd.f32 %v3641_v52, %v3623_v14 }
 0x333   : > { %v3643_v28 = vpop.permute.xlu1 %3642 }
 0x334   : > { %v3651_v41 = vadd.f32 %v3643_v28, %v3624_v63  ;;  %v3652_v53 = vadd.f32 %v3643_v28, %v3625_v13 }
 0x335   : > { %v3668_v6 = vpop.permute.xlu0 %3667 }
 0x336   : > { %v3676_v46 = vadd.f32 %v3668_v6, %v3647_v24  ;;  %v3677_v18 = vadd.f32 %v3668_v6, %v3648_v4 }
 0x337   : > { %v3670_v39 = vpop.permute.xlu1 %3669 }
 0x338   : > { %v3678_v2 = vadd.f32 %v3670_v39, %v3649_v56  ;;  %v3679_v20 = vadd.f32 %v3670_v39, %v3650_v16 }
 0x339   : > { %v3672_v38 = vpop.permute.xlu0 %3671 }
 0x33a   : > { %v3680_v30 = vadd.f32 %v3672_v38, %v3651_v41  ;;  %v3681_v12 = vadd.f32 %v3672_v38, %v3652_v53 }
 0x33b   : > { %v3695_v1 = vpop.permute.xlu1 %3694 }
 0x33c   : > { %v7179_v57 = vadd.f32 %v3695_v1, %v3676_v46  ;;  %v7181_v17 = vadd.f32 %v3695_v1, %v3677_v18 }
 0x33d   : > { %v3697_v21 = vpop.permute.xlu0 %3696 }
 0x33e   : > { %v3705_v19 = vadd.f32 %v3697_v21, %v3678_v2  ;;  %v3706_v3 = vadd.f32 %v3697_v21, %v3679_v20  ;;  %v3739_v0 = vrot.slane %v7179_v57, 5  ;;  %v3742_v26 = vrot.slane %v7181_v17, 5 }
 0x33f   : > { %v3699_v49 = vpop.permute.xlu1 %3698  ;;  %v3776_v54 = vmul.f32 %v7179_v57, %v7179_v57  ;;  %v3777_v36 = vmul.f32 %v7181_v17, %v7181_v17 }
 0x340   : > { %v3707_v62 = vadd.f32 %v3699_v49, %v3680_v30  ;;  %v3708_v22 = vadd.f32 %v3699_v49, %v3681_v12  ;;  %v3740_v58 = vrot.slane %v3705_v19, 5  ;;  %v3743_v37 = vrot.slane %v3706_v3, 5 }
 0x341   : > { %v3778_v9 = vmul.f32 %v3705_v19, %v3705_v19  ;;  %v3779_v59 = vmul.f32 %v3706_v3, %v3706_v3  ;;  %v3788_v50 = vrot.slane %v3776_v54, 5  ;;  %v3791_v61 = vrot.slane %v3777_v36, 5 }
 0x342   : > { %v3745_v44 = vrot.slane %v3707_v62, 5  ;;  %v3747_v55 = vrot.slane %v3708_v22, 5  ;;  %v3741_v11 = vsel %vm2714_vm9, %v3739_v0, %v3740_v58  ;;  %v3744_v60 = vsel %vm2714_vm9, %v3742_v26, %v3743_v37 }
 0x343   : > { %3749 = vrot.lane.b32.xlu0 %v3741_v11, %s4208_s11  ;;  %3751 = vrot.lane.b32.xlu1 %v3744_v60, %s4208_s11  ;;  %v3780_v23 = vmul.f32 %v3707_v62, %v3707_v62  ;;  %v3781_v35 = vmul.f32 %v3708_v22, %v3708_v22  ;;  %v3789_v48 = vrot.slane %v3778_v9, 5  ;;  %v3792_v15 = vrot.slane %v3779_v59, 5 }
 0x344   : > { %v3746_v34 = vsel %vm2714_vm9, %v3740_v58, %v3745_v44  ;;  %v3748_v47 = vsel %vm2714_vm9, %v3743_v37, %v3747_v55 }
 0x345   : > { %v3794_v5 = vrot.slane %v3780_v23, 5  ;;  %v3796_v31 = vrot.slane %v3781_v35, 5  ;;  %v3790_v42 = vsel %vm2714_vm9, %v3788_v50, %v3789_v48  ;;  %v3793_v45 = vsel %vm2714_vm9, %v3791_v61, %v3792_v15 }
 0x347   : > { %3753 = vrot.lane.b32.xlu0 %v3746_v34, %s4208_s11  ;;  %3755 = vrot.lane.b32.xlu1 %v3748_v47, %s4208_s11  ;;  %v3795_v25 = vsel %vm2714_vm9, %v3789_v48, %v3794_v5  ;;  %v3797_v43 = vsel %vm2714_vm9, %v3792_v15, %v3796_v31 }
 0x34b   : > { %3798 = vrot.lane.b32.xlu0 %v3790_v42, %s4208_s11  ;;  %3800 = vrot.lane.b32.xlu1 %v3793_v45, %s4208_s11 }
 0x34f   : > { %3802 = vrot.lane.b32.xlu0 %v3795_v25, %s4208_s11  ;;  %3804 = vrot.lane.b32.xlu1 %v3797_v43, %s4208_s11 }
 0x3b5   : > { %v3750_v8 = vpop.permute.xlu0 %3749  ;;  %v3752_v40 = vpop.permute.xlu1 %3751 }
 0x3b6   : > { %v3757_v52 = vsel %vm3727_vm11, %v3750_v8, %v3752_v40 }
 0x3b7   : > { %v3761_v32 = vsel %vm268_vm1, %v3757_v52, 0.0 }
 0x3b9   : > { %v3754_v33 = vpop.permute.xlu0 %3753  ;;  %v3756_v10 = vpop.permute.xlu1 %3755 }
 0x3ba   : > { %v3758_v51 = vsel %vm3727_vm11, %v3754_v33, %v3756_v10 }
 0x3bb   : > { %v3762_v28 = vsel %vm268_vm1, %v3758_v51, 0.0 }
 0x3bc   : > { %v3763_v7 = vadd.f32 %v3762_v28, %v3761_v32 }
 0x3bd   : > { %v3799_v27 = vpop.permute.xlu0 %3798  ;;  %v3801_v6 = vpop.permute.xlu1 %3800 }
 0x3be   : > { %3764 = vadd.xlane.f32.xlu0 %v3763_v7  ;;  %v3806_v63 = vsel %vm3727_vm11, %v3799_v27, %v3801_v6 }
 0x3bf   : > { %v3810_v24 = vsel %vm268_vm1, %v3806_v63, 0.0 }
 0x3c1   : > { %v3803_v13 = vpop.permute.xlu0 %3802  ;;  %v3805_v29 = vpop.permute.xlu1 %3804 }
 0x3c2   : > { %v3807_v14 = vsel %vm3727_vm11, %v3803_v13, %v3805_v29 }
 0x3c3   : > { %v3811_v4 = vsel %vm268_vm1, %v3807_v14, 0.0 }
 0x3c4   : > { %v3812_v39 = vadd.f32 %v3811_v4, %v3810_v24 }
 0x3c6   : > { %3813 = vadd.xlane.f32.xlu1 %v3812_v39 }
 0x3d4   : > { %3715 = vrot.lane.b32.xlu0 %v7179_v57, %s4208_s11 }
 0x3d7   : > { %3717 = vrot.lane.b32.xlu1 %v7181_v17, %s4208_s11 }
 0x3d8   : > { %3719 = vrot.lane.b32.xlu0 %v3705_v19, %s4208_s11 }
 0x3db   : > { %3721 = vrot.lane.b32.xlu1 %v3706_v3, %s4208_s11 }
 0x3dc   : > { %3723 = vrot.lane.b32.xlu0 %v3707_v62, %s4208_s11 }
 0x3df   : > { %3725 = vrot.lane.b32.xlu1 %v3708_v22, %s4208_s11 }
 0x44b   : > { %v3765_v56 = vpop.xlane.xlu0 %3764 }
 0x44c   : > { %v3766_v16 = vrot.slane %v3765_v56, 4 }
 0x44e   : > { %v3767_v46 = vadd.f32 %v3766_v16, %v3765_v56 }
 0x44f   : > { %v3716_v41 = vpop.permute.xlu0 %3715 }
 0x450   : > { %v3768_v18 = vrot.slane %v3767_v46, 2 }
 0x452   : > { %v3769_v38 = vadd.f32 %v3768_v18, %v3767_v46 }
 0x453   : > { %v3814_v53 = vpop.xlane.xlu1 %3813  ;;  %v3720_v21 = vpop.permute.xlu0 %3719 }
 0x454   : > { %v3815_v1 = vrot.slane %v3814_v53, 4  ;;  %v3770_v30 = vrot.slane %v3769_v38, 1 }
 0x456   : > { %v3816_v12 = vadd.f32 %v3815_v1, %v3814_v53  ;;  %v3771_v2 = vadd.f32 %v3770_v30, %v3769_v38 }
 0x457   : > { %v3718_v20 = vpop.permute.xlu1 %3717  ;;  %v3724_v0 = vpop.permute.xlu0 %3723 }
 0x458   : > { %v3817_v57 = vrot.slane %v3816_v12, 2  ;;  %v3728_v17 = vsel %vm3727_vm11, %v3716_v41, %v3718_v20  ;;  %4071 = vpush %v3771_v2 }
 0x459   : > { %3735 = vst.msk [vmem:[%s253_s29 - $0x5] sm:$0xe0] %vm3734_vm12, %v3728_v17 }
 0x45a   : > { %v3818_v19 = vadd.f32 %v3817_v57, %v3816_v12 }
 0x45b   : > { %v3722_v3 = vpop.permute.xlu1 %3721 }
 0x45c   : > { %v3729_v49 = vsel %vm3727_vm11, %v3720_v21, %v3722_v3  ;;  %v3819_v62 = vrot.slane %v3818_v19, 1 }
 0x45d   : > { %3736 = vst.msk [vmem:[%s253_s29 + $0x3] sm:$0xff] %vm268_vm1, %v3729_v49 }
 0x45e   : > { %v3820_v22 = vadd.f32 %v3819_v62, %v3818_v19 }
 0x45f   : > { %v3726_v26 = vpop.permute.xlu1 %3725 }
 0x460   : > { %v3730_v58 = vsel %vm3727_vm11, %v3724_v0, %v3726_v26  ;;  %4073 = vpush %v3820_v22 }
 0x461   : > { %3738 = vst.msk [vmem:[%s253_s29 + $0xb] sm:$0x1f] %vm3737_vm13, %v3730_v58 }
 0x489   : > { %s4072_s10 = spop %4071 }
 0x48a   : > { %v3773_v37 = vstv %s4072_s10 }
 0x48b   : > { %3775 = vst.msk [vmem:[%s256_s7] sm:$0x1] %vm3774_vm14, %v3773_v37 }
 0x491   : > { %s4074_s8 = spop %4073 }
 0x492   : > { %v3822_v9 = vstv %s4074_s8 }
 0x493   : > { %3823 = vst.msk [vmem:[%s259_s14] sm:$0x1] %vm3774_vm14, %v3822_v9 }
 0x494 PF: > { %s16_s17 = sadd.s32 1, %s4198_s17   ;;  %s7780_s15 = smov %s4194_s16 }
 0x495   : > { %p13_p2 = scmp.ge.s32.totalorder %s16_s17, 4   ;;  %s7781_s16 = smov %s7783_s19 }
 0x497   :  { %15 = sbr.rel (!%p13_p2) target bundleno = 2 (0x2), region = 102 }
 0x49e   :  { %3869 = vsyncpa [#allocation4], 1 }
 0x49f   :  { %3871 = vsyncpa [#allocation4 + $0x1], 1 }

</bundles_post_ra>
